<compile_context>
chip_gen: v7x
topology: tpu7x:2x2x1
jax: 0.10.0
libtpu: 0.0.40
codegen_flags: <defaults>
</compile_context>

<pallas_src>
import functools

import numpy as np

import jax
import jax.numpy as jnp
from jax import lax
from jax.experimental import pallas as pl
from jax.experimental.pallas import tpu as pltpu


# --------------------------------------------------------------------------
# Fused kernel: fractional-delay filters + per-row delay correction +
#               single-matmul reconstruction
# --------------------------------------------------------------------------
def _module_optim_kernel(u_ref, toa_ref, h_ref, w_ref, ht_ref, x_ref, *,
                         S, D, fs, delay_max, mxu_bf16):
    """u_ref:   (K, bm, 1)  raw optimisation parameters U for this mic tile
       toa_ref: (K, bm, 1)  measured times of arrival
       h_ref:   (K, bm, P)  noisy forward-operator rows
       w_ref:   (K*P, Tpad) block-Toeplitz of the wall IRs (lane padded)
       ht_ref:  (bm, K*P)   out: corrected operator rows, lane-dense
       x_ref:   (bm, Tpad)  out: reconstructed signals, lane-dense."""
    K, bm, P = h_ref.shape

    # ---------------- scalar prep (per echo row) ----------------------------
    u = u_ref[...]                                    # (K, bm, 1)
    toa = toa_ref[...]                                # (K, bm, 1)
    th = jnp.tanh(u)
    th = jnp.where(jnp.isnan(th), 0.0, th)            # torch .nan_to_num()
    delta = jnp.float32(delay_max) * th
    fd = delta * jnp.float32(fs)                      # signed fractional delay
    absfd = jnp.abs(fd)
    new_toa = delta + toa
    new_toa = jnp.where(new_toa == 0.0, 1.0, new_toa)
    ratio = toa / new_toa                             # exact divide (deliberate)
    is_neg = fd < 0.0                                 # (K, bm, 1)

    # ---------------- windowed-sinc fractional-delay filters (K, bm, D) -----
    j_f = lax.broadcasted_iota(jnp.int32, (K, bm, D), 2).astype(jnp.float32)
    T = j_f - jnp.float32(S) - absfd
    window = 0.5 * (1.0 + jnp.cos(jnp.pi * T / jnp.float32(S)))
    safe_T = jnp.where(T == 0.0, 1.0, T)
    sinc = jnp.where(T == 0.0, 1.0, jnp.sin(jnp.pi * safe_T) / (jnp.pi * safe_T))
    phi = ratio * window * sinc                       # scaled filter

    # finite support around the FIRST argmax of each row (torch.argmax ties)
    max_val = jnp.max(phi, axis=-1, keepdims=True)
    amax = jnp.min(jnp.where(phi == max_val, j_f, jnp.float32(D)),
                   axis=-1, keepdims=True)
    mask_out = (j_f < amax - jnp.float32(S)) | (j_f > amax + jnp.float32(S))
    phi_m = jnp.where(mask_out, 0.0, phi)             # masked, un-flipped filter

    # ---------------- per-row convolution, both delay signs, in vregs -------
    #   fd >= 0 : ht[p] = sum_d phi_m[d] * H[p + S - d]
    #   fd <  0 : ht[p] = sum_d phi_m[d] * H[p - S + d]
    # (the second line is torch's "flip filter then flip output" path with the
    #  flips folded into the tap direction -> no lane reversal / JP matmul)
    h = h_ref[...]                                    # (K, bm, P)
    zpad = jnp.zeros((K, bm, D - 1), jnp.float32)
    hp = jnp.concatenate([zpad, h, zpad], axis=-1)    # (K, bm, P + 2D - 2)
    acc_p = jnp.zeros((K, bm, P), jnp.float32)
    acc_n = jnp.zeros((K, bm, P), jnp.float32)
    # TODO(synk): for large D use lax.fori_loop(..., unroll=k) + pltpu.roll.
    for d in range(D):
        coef = phi_m[:, :, d:d + 1]                   # (K, bm, 1)
        op = D - 1 + S - d
        on = D - 1 - S + d
        acc_p = acc_p + coef * hp[:, :, op:op + P]
        acc_n = acc_n + coef * hp[:, :, on:on + P]
    ht = jnp.where(is_neg, acc_n, acc_p)              # (K, bm, P)

    # ---------------- lane-dense operator + single reconstruction matmul ----
    # ht2[mm, k*P + p] = ht[k, mm, p]   (built with lane concats, no reshape)
    ht2 = jnp.concatenate([ht[k] for k in range(K)], axis=-1)  # (bm, K*P)
    ht_ref[...] = ht2                                 # unmasked 128-lane store

    w = w_ref[...]                                    # (K*P, Tpad)
    if mxu_bf16:
        # single bf16 MXU pass (production choice on v5e/v6e/v7x)
        x = jnp.dot(ht2.astype(jnp.bfloat16), w.astype(jnp.bfloat16),
                    preferred_element_type=jnp.float32)
    else:
        x = jnp.dot(ht2, w, preferred_element_type=jnp.float32)
    x_ref[...] = x                                    # unmasked 128-lane store


# --------------------------------------------------------------------------
# Wrapper: cheap reshapes + one-time block-Toeplitz of v_known
# --------------------------------------------------------------------------
def module_optim_forward(U, H_noise, v_known, measured_toa,
                         simulator_offset, fs, delay_max, *, mxu_bf16=False):
    """JAX/Pallas equivalent of ModuleOptim.forward (B == 1, targets_at_top=False)."""
    M, K, P = H_noise.shape
    S = int(simulator_offset)
    D = int(delay_max * fs) + 2 * S                   # fractional-delay filter length
    L = int(v_known.shape[-1])
    Tout = P + L - 1
    Tpad = ((Tout + 127) // 128) * 128                # lane-dense x / W last dim

    # mic-axis tiling: every grid step owns all K image sources of `bm` mics
    if M <= 8 or M % 8 != 0:
        bm = M          # TODO(synk): pad ragged mic counts at production sizes
    else:
        bm = 8
    assert M % bm == 0
    grid = (M // bm,)

    # Inputs as (K, M, ...) so each grid step gets a contiguous (K, bm, ...) slab.
    u3 = U.astype(jnp.float32).T.reshape(K, M, 1)
    toa3 = measured_toa.astype(jnp.float32).T.reshape(K, M, 1)
    h3 = jnp.transpose(H_noise.astype(jnp.float32), (1, 0, 2))       # (K, M, P)

    # Block-Toeplitz of v_known (constant across optimisation steps):
    #   W2[k*P + p, t] = v[k, t - p] for 0 <= t - p < L else 0, lane-padded.
    v2 = v_known.astype(jnp.float32).reshape(K, L)
    lag = jnp.arange(Tout)[None, :] - jnp.arange(P)[:, None]         # (P, Tout)
    valid = (lag >= 0) & (lag < L)
    Wk = jnp.where(valid[None, :, :], v2[:, jnp.clip(lag, 0, L - 1)], 0.0)
    W2 = Wk.reshape(K * P, Tout)
    W2 = jnp.pad(W2, ((0, 0), (0, Tpad - Tout)))                     # (K*P, Tpad)

    kernel = functools.partial(_module_optim_kernel, S=S, D=D,
                               fs=float(fs), delay_max=float(delay_max),
                               mxu_bf16=mxu_bf16)
    ht2, x_pad = pl.pallas_call(
        kernel,
        out_shape=(jax.ShapeDtypeStruct((M, K * P), jnp.float32),
                   jax.ShapeDtypeStruct((M, Tpad), jnp.float32)),
        grid=grid,
        in_specs=[pl.BlockSpec((K, bm, 1), lambda i: (0, i, 0)),
                  pl.BlockSpec((K, bm, 1), lambda i: (0, i, 0)),
                  pl.BlockSpec((K, bm, P), lambda i: (0, i, 0)),
                  pl.BlockSpec((K * P, Tpad), lambda i: (0, 0))],
        out_specs=(pl.BlockSpec((bm, K * P), lambda i: (i, 0)),
                   pl.BlockSpec((bm, Tpad), lambda i: (i, 0))),
        compiler_params=pltpu.CompilerParams(
            dimension_semantics=("parallel",),
            vmem_limit_bytes=32 * 1024 * 1024),
    )(u3, toa3, h3, W2)

    x_estimate = x_pad[:, :Tout].T                    # (P + L - 1, M), as in torch
    H_estimate = ht2.reshape(1, M, K, P)              # ht2[m, k*P+p] = H_est[0,m,k,p]
    return x_estimate, H_estimate


# --------------------------------------------------------------------------
# Pure numpy reference (follows the torch code path literally)
# --------------------------------------------------------------------------
def _reference_forward(U, H, v, toa, S, fs, delay_max):
    U = np.asarray(U, np.float32)
    H = np.asarray(H, np.float32)
    v = np.asarray(v, np.float32)
    toa = np.asarray(toa, np.float32)
    M, K, P = H.shape
    N = M * K
    delta = (delay_max * np.tanh(U)).astype(np.float32)
    fd = (delta * fs).reshape(N).astype(np.float32)
    Dlen = int(delay_max * fs) + 2 * S
    T = (np.arange(-S, int(delay_max * fs) + S, dtype=np.float32)[None, :]
         - np.abs(fd)[:, None])
    new_toa = delta + toa
    new_toa = np.where(new_toa == 0, np.float32(1.0), new_toa)
    win = 0.5 * (1.0 + np.cos(2 * np.pi * T / (2 * S))) * np.sinc(T)
    win = (toa / new_toa).reshape(N)[:, None] * win
    amax = np.argmax(win, axis=-1)
    idx = np.arange(Dlen)[None, :]
    mask = (idx < amax[:, None] - S) | (idx > amax[:, None] + S)
    win = np.where(mask, 0.0, win)
    win[fd < 0, :] = win[fd < 0, ::-1]
    Hf = H.reshape(N, P)
    Ht = np.zeros((N, P), np.float64)
    for n in range(N):
        full = np.convolve(Hf[n].astype(np.float64), win[n].astype(np.float64))
        off = S if fd[n] >= 0 else Dlen - 1 - S
        Ht[n] = full[off:off + P]
    H_est = Ht.reshape(1, M, K, P)
    L = v.shape[-1]
    vv = v.reshape(K, L).astype(np.float64)
    Tout = P + L - 1
    x = np.zeros((M, Tout), np.float64)
    for m in range(M):
        for k in range(K):
            x[m] += np.convolve(H_est[0, m, k], vv[k])
    return x.T, H_est


if __name__ == "__main__":
    key = jax.random.PRNGKey(0)
    M, K, P = 16, 4, 32         # mics, image sources, operator length (2-step grid)
    L = 8                       # wall impulse response length
    simulator_offset = 4
    fs = 16.0
    delay_max = 0.5

    k1, k2, k3, k4 = jax.random.split(key, 4)
    U = jax.random.normal(k1, (M, K), jnp.float32)
    H_noise = jax.random.normal(k2, (M, K, P), jnp.float32)
    v_known = jax.random.normal(k3, (1, K, L), jnp.float32)
    measured_toa = jax.random.uniform(k4, (M, K), jnp.float32, 0.6, 1.5)

    x_est, H_est = module_optim_forward(U, H_noise, v_known, measured_toa,
                                        simulator_offset, fs, delay_max)
    jax.block_until_ready((x_est, H_est))

    x_ref, H_ref = _reference_forward(U, H_noise, v_known, measured_toa,
                                      simulator_offset, fs, delay_max)

    assert x_est.shape == (P + L - 1, M), x_est.shape
    assert H_est.shape == (1, M, K, P), H_est.shape
    # The H_estimate path is now MXU-free f32 (no permutation matmuls, exact
    # divide), so it is checked tightly against the float64 reference.
    assert np.allclose(np.asarray(H_est), H_ref, rtol=1e-3, atol=1e-3), (
        float(np.max(np.abs(np.asarray(H_est) - H_ref))))
    # x goes through one MXU matmul; tolerance is scaled to the signal
    # magnitude so the check is robust to the MXU's f32 pass decomposition
    # (with mxu_bf16=False the expected error is ~1e-5).
    x_tol = 1e-2 * float(np.max(np.abs(x_ref))) + 1e-3
    assert np.allclose(np.asarray(x_est), x_ref, rtol=1e-2, atol=x_tol), (
        float(np.max(np.abs(np.asarray(x_est) - x_ref))))
    print("KERNEL_OK")
</pallas_src>

<mosaic_0001>
module attributes {stable_mosaic.version = 11 : i64} {
  func.func @_module_optim_kernel(%arg0: i32, %arg1: memref<4x8x1xf32, #tpu.memory_space<vmem>>, %arg2: memref<4x8x1xf32, #tpu.memory_space<vmem>>, %arg3: memref<4x8x32xf32, #tpu.memory_space<vmem>>, %arg4: memref<128x128xf32, #tpu.memory_space<vmem>>, %arg5: memref<8x128xf32, #tpu.memory_space<vmem>>, %arg6: memref<8x128xf32, #tpu.memory_space<vmem>>) attributes {dimension_semantics = [#tpu.dimension_semantics<parallel>], iteration_bounds = array<i64: 2>, scalar_prefetch = 0 : i64, scratch_operands = 0 : i64, tpu.core_type = #tpu.core_type<tc>, window_params = [{transform_indices = @transform_0, window_bounds = array<i64: 4, 8, 1>}, {transform_indices = @transform_1, window_bounds = array<i64: 4, 8, 1>}, {transform_indices = @transform_2, window_bounds = array<i64: 4, 8, 32>}, {pipeline_mode = #tpu.pipeline_mode<synchronous>, transform_indices = @transform_3, window_bounds = array<i64: 128, 128>}, {transform_indices = @transform_4, window_bounds = array<i64: 8, 128>}, {transform_indices = @transform_5, window_bounds = array<i64: 8, 128>}]} {
    %c0 = arith.constant 0 : index
    %c0_0 = arith.constant 0 : index
    %c0_1 = arith.constant 0 : index
    %0 = vector.load %arg1[%c0, %c0_0, %c0_1] : memref<4x8x1xf32, #tpu.memory_space<vmem>>, vector<4x8x1xf32>
    %c0_2 = arith.constant 0 : index
    %c0_3 = arith.constant 0 : index
    %c0_4 = arith.constant 0 : index
    %1 = vector.load %arg2[%c0_2, %c0_3, %c0_4] : memref<4x8x1xf32, #tpu.memory_space<vmem>>, vector<4x8x1xf32>
    %2 = math.tanh %0 : vector<4x8x1xf32>
    %3 = arith.cmpf one, %2, %2 : vector<4x8x1xf32>
    %cst = arith.constant 0.000000e+00 : f32
    %4 = vector.broadcast %cst : f32 to vector<4x8x1xf32>
    %5 = arith.select %3, %4, %2 : vector<4x8x1xi1>, vector<4x8x1xf32>
    %cst_5 = arith.constant 5.000000e-01 : f32
    %6 = vector.broadcast %cst_5 : f32 to vector<4x8x1xf32>
    %7 = arith.mulf %6, %5 : vector<4x8x1xf32>
    %cst_6 = arith.constant 1.600000e+01 : f32
    %8 = vector.broadcast %cst_6 : f32 to vector<4x8x1xf32>
    %9 = arith.mulf %7, %8 : vector<4x8x1xf32>
    %10 = math.absf %9 : vector<4x8x1xf32>
    %11 = arith.addf %7, %1 : vector<4x8x1xf32>
    %cst_7 = arith.constant 0.000000e+00 : f32
    %12 = vector.broadcast %cst_7 : f32 to vector<4x8x1xf32>
    %13 = arith.cmpf oeq, %11, %12 : vector<4x8x1xf32>
    %cst_8 = arith.constant 1.000000e+00 : f32
    %14 = vector.broadcast %cst_8 : f32 to vector<4x8x1xf32>
    %15 = arith.select %13, %14, %11 : vector<4x8x1xi1>, vector<4x8x1xf32>
    %16 = arith.divf %1, %15 : vector<4x8x1xf32>
    %cst_9 = arith.constant 0.000000e+00 : f32
    %17 = vector.broadcast %cst_9 : f32 to vector<4x8x1xf32>
    %18 = arith.cmpf olt, %9, %17 : vector<4x8x1xf32>
    %19 = tpu.iota {dimensions = array<i32: 2>} : vector<4x8x16xi32>
    %20 = arith.sitofp %19 : vector<4x8x16xi32> to vector<4x8x16xf32>
    %cst_10 = arith.constant 4.000000e+00 : f32
    %21 = vector.broadcast %cst_10 : f32 to vector<4x8x16xf32>
    %22 = arith.subf %20, %21 : vector<4x8x16xf32>
    %23 = vector.broadcast %10 : vector<4x8x1xf32> to vector<4x8x16xf32>
    %24 = arith.subf %22, %23 : vector<4x8x16xf32>
    %cst_11 = arith.constant 3.14159274 : f32
    %25 = vector.broadcast %cst_11 : f32 to vector<4x8x16xf32>
    %26 = arith.mulf %25, %24 : vector<4x8x16xf32>
    %cst_12 = arith.constant 4.000000e+00 : f32
    %27 = vector.broadcast %cst_12 : f32 to vector<4x8x16xf32>
    %28 = arith.divf %26, %27 : vector<4x8x16xf32>
    %29 = math.cos %28 : vector<4x8x16xf32>
    %cst_13 = arith.constant 1.000000e+00 : f32
    %30 = vector.broadcast %cst_13 : f32 to vector<4x8x16xf32>
    %31 = arith.addf %30, %29 : vector<4x8x16xf32>
    %cst_14 = arith.constant 5.000000e-01 : f32
    %32 = vector.broadcast %cst_14 : f32 to vector<4x8x16xf32>
    %33 = arith.mulf %32, %31 : vector<4x8x16xf32>
    %cst_15 = arith.constant 0.000000e+00 : f32
    %34 = vector.broadcast %cst_15 : f32 to vector<4x8x16xf32>
    %35 = arith.cmpf oeq, %24, %34 : vector<4x8x16xf32>
    %cst_16 = arith.constant 1.000000e+00 : f32
    %36 = vector.broadcast %cst_16 : f32 to vector<4x8x16xf32>
    %37 = arith.select %35, %36, %24 : vector<4x8x16xi1>, vector<4x8x16xf32>
    %cst_17 = arith.constant 0.000000e+00 : f32
    %38 = vector.broadcast %cst_17 : f32 to vector<4x8x16xf32>
    %39 = arith.cmpf oeq, %24, %38 : vector<4x8x16xf32>
    %cst_18 = arith.constant 3.14159274 : f32
    %40 = vector.broadcast %cst_18 : f32 to vector<4x8x16xf32>
    %41 = arith.mulf %40, %37 : vector<4x8x16xf32>
    %42 = math.sin %41 : vector<4x8x16xf32>
    %cst_19 = arith.constant 3.14159274 : f32
    %43 = vector.broadcast %cst_19 : f32 to vector<4x8x16xf32>
    %44 = arith.mulf %43, %37 : vector<4x8x16xf32>
    %45 = arith.divf %42, %44 : vector<4x8x16xf32>
    %cst_20 = arith.constant 1.000000e+00 : f32
    %46 = vector.broadcast %cst_20 : f32 to vector<4x8x16xf32>
    %47 = arith.select %39, %46, %45 : vector<4x8x16xi1>, vector<4x8x16xf32>
    %48 = vector.broadcast %16 : vector<4x8x1xf32> to vector<4x8x16xf32>
    %49 = arith.mulf %48, %33 : vector<4x8x16xf32>
    %50 = arith.mulf %49, %47 : vector<4x8x16xf32>
    %cst_21 = arith.constant dense<0xFF800000> : vector<4x8xf32>
    %51 = vector.multi_reduction <maximumf>, %50, %cst_21 [2] : vector<4x8x16xf32> to vector<4x8xf32>
    %52 = vector.shape_cast %51 : vector<4x8xf32> to vector<4x8x1xf32>
    %53 = vector.broadcast %52 : vector<4x8x1xf32> to vector<4x8x16xf32>
    %54 = arith.cmpf oeq, %50, %53 : vector<4x8x16xf32>
    %cst_22 = arith.constant 1.600000e+01 : f32
    %55 = vector.broadcast %cst_22 : f32 to vector<4x8x16xf32>
    %56 = arith.select %54, %20, %55 : vector<4x8x16xi1>, vector<4x8x16xf32>
    %cst_23 = arith.constant dense<0x7F800000> : vector<4x8xf32>
    %57 = vector.multi_reduction <minimumf>, %56, %cst_23 [2] : vector<4x8x16xf32> to vector<4x8xf32>
    %58 = vector.shape_cast %57 : vector<4x8xf32> to vector<4x8x1xf32>
    %cst_24 = arith.constant 4.000000e+00 : f32
    %59 = vector.broadcast %cst_24 : f32 to vector<4x8x1xf32>
    %60 = arith.subf %58, %59 : vector<4x8x1xf32>
    %61 = vector.broadcast %60 : vector<4x8x1xf32> to vector<4x8x16xf32>
    %62 = arith.cmpf olt, %20, %61 : vector<4x8x16xf32>
    %cst_25 = arith.constant 4.000000e+00 : f32
    %63 = vector.broadcast %cst_25 : f32 to vector<4x8x1xf32>
    %64 = arith.addf %58, %63 : vector<4x8x1xf32>
    %65 = vector.broadcast %64 : vector<4x8x1xf32> to vector<4x8x16xf32>
    %66 = arith.cmpf ogt, %20, %65 : vector<4x8x16xf32>
    %67 = arith.ori %62, %66 : vector<4x8x16xi1>
    %cst_26 = arith.constant 0.000000e+00 : f32
    %68 = vector.broadcast %cst_26 : f32 to vector<4x8x16xf32>
    %69 = arith.select %67, %68, %50 : vector<4x8x16xi1>, vector<4x8x16xf32>
    %c0_27 = arith.constant 0 : index
    %c0_28 = arith.constant 0 : index
    %c0_29 = arith.constant 0 : index
    %70 = vector.load %arg3[%c0_27, %c0_28, %c0_29] : memref<4x8x32xf32, #tpu.memory_space<vmem>>, vector<4x8x32xf32>
    %cst_30 = arith.constant 0.000000e+00 : f32
    %71 = vector.broadcast %cst_30 : f32 to vector<4x8x15xf32>
    %72 = tpu.concatenate %71, %70, %71 in 2 : vector<4x8x15xf32>, vector<4x8x32xf32>, vector<4x8x15xf32> -> vector<4x8x62xf32>
    %cst_31 = arith.constant 0.000000e+00 : f32
    %73 = vector.broadcast %cst_31 : f32 to vector<4x8x32xf32>
    %cst_32 = arith.constant 0.000000e+00 : f32
    %74 = vector.broadcast %cst_32 : f32 to vector<4x8x32xf32>
    %75 = vector.extract_strided_slice %69 {offsets = [0, 0, 0], sizes = [4, 8, 1], strides = [1, 1, 1]} : vector<4x8x16xf32> to vector<4x8x1xf32>
    %76 = vector.extract_strided_slice %72 {offsets = [0, 0, 19], sizes = [4, 8, 32], strides = [1, 1, 1]} : vector<4x8x62xf32> to vector<4x8x32xf32>
    %77 = vector.broadcast %75 : vector<4x8x1xf32> to vector<4x8x32xf32>
    %78 = arith.mulf %77, %76 : vector<4x8x32xf32>
    %79 = arith.addf %73, %78 : vector<4x8x32xf32>
    %80 = vector.extract_strided_slice %72 {offsets = [0, 0, 11], sizes = [4, 8, 32], strides = [1, 1, 1]} : vector<4x8x62xf32> to vector<4x8x32xf32>
    %81 = vector.broadcast %75 : vector<4x8x1xf32> to vector<4x8x32xf32>
    %82 = arith.mulf %81, %80 : vector<4x8x32xf32>
    %83 = arith.addf %74, %82 : vector<4x8x32xf32>
    %84 = vector.extract_strided_slice %69 {offsets = [0, 0, 1], sizes = [4, 8, 1], strides = [1, 1, 1]} : vector<4x8x16xf32> to vector<4x8x1xf32>
    %85 = vector.extract_strided_slice %72 {offsets = [0, 0, 18], sizes = [4, 8, 32], strides = [1, 1, 1]} : vector<4x8x62xf32> to vector<4x8x32xf32>
    %86 = vector.broadcast %84 : vector<4x8x1xf32> to vector<4x8x32xf32>
    %87 = arith.mulf %86, %85 : vector<4x8x32xf32>
    %88 = arith.addf %79, %87 : vector<4x8x32xf32>
    %89 = vector.extract_strided_slice %72 {offsets = [0, 0, 12], sizes = [4, 8, 32], strides = [1, 1, 1]} : vector<4x8x62xf32> to vector<4x8x32xf32>
    %90 = vector.broadcast %84 : vector<4x8x1xf32> to vector<4x8x32xf32>
    %91 = arith.mulf %90, %89 : vector<4x8x32xf32>
    %92 = arith.addf %83, %91 : vector<4x8x32xf32>
    %93 = vector.extract_strided_slice %69 {offsets = [0, 0, 2], sizes = [4, 8, 1], strides = [1, 1, 1]} : vector<4x8x16xf32> to vector<4x8x1xf32>
    %94 = vector.extract_strided_slice %72 {offsets = [0, 0, 17], sizes = [4, 8, 32], strides = [1, 1, 1]} : vector<4x8x62xf32> to vector<4x8x32xf32>
    %95 = vector.broadcast %93 : vector<4x8x1xf32> to vector<4x8x32xf32>
    %96 = arith.mulf %95, %94 : vector<4x8x32xf32>
    %97 = arith.addf %88, %96 : vector<4x8x32xf32>
    %98 = vector.extract_strided_slice %72 {offsets = [0, 0, 13], sizes = [4, 8, 32], strides = [1, 1, 1]} : vector<4x8x62xf32> to vector<4x8x32xf32>
    %99 = vector.broadcast %93 : vector<4x8x1xf32> to vector<4x8x32xf32>
    %100 = arith.mulf %99, %98 : vector<4x8x32xf32>
    %101 = arith.addf %92, %100 : vector<4x8x32xf32>
    %102 = vector.extract_strided_slice %69 {offsets = [0, 0, 3], sizes = [4, 8, 1], strides = [1, 1, 1]} : vector<4x8x16xf32> to vector<4x8x1xf32>
    %103 = vector.extract_strided_slice %72 {offsets = [0, 0, 16], sizes = [4, 8, 32], strides = [1, 1, 1]} : vector<4x8x62xf32> to vector<4x8x32xf32>
    %104 = vector.broadcast %102 : vector<4x8x1xf32> to vector<4x8x32xf32>
    %105 = arith.mulf %104, %103 : vector<4x8x32xf32>
    %106 = arith.addf %97, %105 : vector<4x8x32xf32>
    %107 = vector.extract_strided_slice %72 {offsets = [0, 0, 14], sizes = [4, 8, 32], strides = [1, 1, 1]} : vector<4x8x62xf32> to vector<4x8x32xf32>
    %108 = vector.broadcast %102 : vector<4x8x1xf32> to vector<4x8x32xf32>
    %109 = arith.mulf %108, %107 : vector<4x8x32xf32>
    %110 = arith.addf %101, %109 : vector<4x8x32xf32>
    %111 = vector.extract_strided_slice %69 {offsets = [0, 0, 4], sizes = [4, 8, 1], strides = [1, 1, 1]} : vector<4x8x16xf32> to vector<4x8x1xf32>
    %112 = vector.extract_strided_slice %72 {offsets = [0, 0, 15], sizes = [4, 8, 32], strides = [1, 1, 1]} : vector<4x8x62xf32> to vector<4x8x32xf32>
    %113 = vector.broadcast %111 : vector<4x8x1xf32> to vector<4x8x32xf32>
    %114 = arith.mulf %113, %112 : vector<4x8x32xf32>
    %115 = arith.addf %106, %114 : vector<4x8x32xf32>
    %116 = vector.extract_strided_slice %72 {offsets = [0, 0, 15], sizes = [4, 8, 32], strides = [1, 1, 1]} : vector<4x8x62xf32> to vector<4x8x32xf32>
    %117 = vector.broadcast %111 : vector<4x8x1xf32> to vector<4x8x32xf32>
    %118 = arith.mulf %117, %116 : vector<4x8x32xf32>
    %119 = arith.addf %110, %118 : vector<4x8x32xf32>
    %120 = vector.extract_strided_slice %69 {offsets = [0, 0, 5], sizes = [4, 8, 1], strides = [1, 1, 1]} : vector<4x8x16xf32> to vector<4x8x1xf32>
    %121 = vector.extract_strided_slice %72 {offsets = [0, 0, 14], sizes = [4, 8, 32], strides = [1, 1, 1]} : vector<4x8x62xf32> to vector<4x8x32xf32>
    %122 = vector.broadcast %120 : vector<4x8x1xf32> to vector<4x8x32xf32>
    %123 = arith.mulf %122, %121 : vector<4x8x32xf32>
    %124 = arith.addf %115, %123 : vector<4x8x32xf32>
    %125 = vector.extract_strided_slice %72 {offsets = [0, 0, 16], sizes = [4, 8, 32], strides = [1, 1, 1]} : vector<4x8x62xf32> to vector<4x8x32xf32>
    %126 = vector.broadcast %120 : vector<4x8x1xf32> to vector<4x8x32xf32>
    %127 = arith.mulf %126, %125 : vector<4x8x32xf32>
    %128 = arith.addf %119, %127 : vector<4x8x32xf32>
    %129 = vector.extract_strided_slice %69 {offsets = [0, 0, 6], sizes = [4, 8, 1], strides = [1, 1, 1]} : vector<4x8x16xf32> to vector<4x8x1xf32>
    %130 = vector.extract_strided_slice %72 {offsets = [0, 0, 13], sizes = [4, 8, 32], strides = [1, 1, 1]} : vector<4x8x62xf32> to vector<4x8x32xf32>
    %131 = vector.broadcast %129 : vector<4x8x1xf32> to vector<4x8x32xf32>
    %132 = arith.mulf %131, %130 : vector<4x8x32xf32>
    %133 = arith.addf %124, %132 : vector<4x8x32xf32>
    %134 = vector.extract_strided_slice %72 {offsets = [0, 0, 17], sizes = [4, 8, 32], strides = [1, 1, 1]} : vector<4x8x62xf32> to vector<4x8x32xf32>
    %135 = vector.broadcast %129 : vector<4x8x1xf32> to vector<4x8x32xf32>
    %136 = arith.mulf %135, %134 : vector<4x8x32xf32>
    %137 = arith.addf %128, %136 : vector<4x8x32xf32>
    %138 = vector.extract_strided_slice %69 {offsets = [0, 0, 7], sizes = [4, 8, 1], strides = [1, 1, 1]} : vector<4x8x16xf32> to vector<4x8x1xf32>
    %139 = vector.extract_strided_slice %72 {offsets = [0, 0, 12], sizes = [4, 8, 32], strides = [1, 1, 1]} : vector<4x8x62xf32> to vector<4x8x32xf32>
    %140 = vector.broadcast %138 : vector<4x8x1xf32> to vector<4x8x32xf32>
    %141 = arith.mulf %140, %139 : vector<4x8x32xf32>
    %142 = arith.addf %133, %141 : vector<4x8x32xf32>
    %143 = vector.extract_strided_slice %72 {offsets = [0, 0, 18], sizes = [4, 8, 32], strides = [1, 1, 1]} : vector<4x8x62xf32> to vector<4x8x32xf32>
    %144 = vector.broadcast %138 : vector<4x8x1xf32> to vector<4x8x32xf32>
    %145 = arith.mulf %144, %143 : vector<4x8x32xf32>
    %146 = arith.addf %137, %145 : vector<4x8x32xf32>
    %147 = vector.extract_strided_slice %69 {offsets = [0, 0, 8], sizes = [4, 8, 1], strides = [1, 1, 1]} : vector<4x8x16xf32> to vector<4x8x1xf32>
    %148 = vector.extract_strided_slice %72 {offsets = [0, 0, 11], sizes = [4, 8, 32], strides = [1, 1, 1]} : vector<4x8x62xf32> to vector<4x8x32xf32>
    %149 = vector.broadcast %147 : vector<4x8x1xf32> to vector<4x8x32xf32>
    %150 = arith.mulf %149, %148 : vector<4x8x32xf32>
    %151 = arith.addf %142, %150 : vector<4x8x32xf32>
    %152 = vector.extract_strided_slice %72 {offsets = [0, 0, 19], sizes = [4, 8, 32], strides = [1, 1, 1]} : vector<4x8x62xf32> to vector<4x8x32xf32>
    %153 = vector.broadcast %147 : vector<4x8x1xf32> to vector<4x8x32xf32>
    %154 = arith.mulf %153, %152 : vector<4x8x32xf32>
    %155 = arith.addf %146, %154 : vector<4x8x32xf32>
    %156 = vector.extract_strided_slice %69 {offsets = [0, 0, 9], sizes = [4, 8, 1], strides = [1, 1, 1]} : vector<4x8x16xf32> to vector<4x8x1xf32>
    %157 = vector.extract_strided_slice %72 {offsets = [0, 0, 10], sizes = [4, 8, 32], strides = [1, 1, 1]} : vector<4x8x62xf32> to vector<4x8x32xf32>
    %158 = vector.broadcast %156 : vector<4x8x1xf32> to vector<4x8x32xf32>
    %159 = arith.mulf %158, %157 : vector<4x8x32xf32>
    %160 = arith.addf %151, %159 : vector<4x8x32xf32>
    %161 = vector.extract_strided_slice %72 {offsets = [0, 0, 20], sizes = [4, 8, 32], strides = [1, 1, 1]} : vector<4x8x62xf32> to vector<4x8x32xf32>
    %162 = vector.broadcast %156 : vector<4x8x1xf32> to vector<4x8x32xf32>
    %163 = arith.mulf %162, %161 : vector<4x8x32xf32>
    %164 = arith.addf %155, %163 : vector<4x8x32xf32>
    %165 = vector.extract_strided_slice %69 {offsets = [0, 0, 10], sizes = [4, 8, 1], strides = [1, 1, 1]} : vector<4x8x16xf32> to vector<4x8x1xf32>
    %166 = vector.extract_strided_slice %72 {offsets = [0, 0, 9], sizes = [4, 8, 32], strides = [1, 1, 1]} : vector<4x8x62xf32> to vector<4x8x32xf32>
    %167 = vector.broadcast %165 : vector<4x8x1xf32> to vector<4x8x32xf32>
    %168 = arith.mulf %167, %166 : vector<4x8x32xf32>
    %169 = arith.addf %160, %168 : vector<4x8x32xf32>
    %170 = vector.extract_strided_slice %72 {offsets = [0, 0, 21], sizes = [4, 8, 32], strides = [1, 1, 1]} : vector<4x8x62xf32> to vector<4x8x32xf32>
    %171 = vector.broadcast %165 : vector<4x8x1xf32> to vector<4x8x32xf32>
    %172 = arith.mulf %171, %170 : vector<4x8x32xf32>
    %173 = arith.addf %164, %172 : vector<4x8x32xf32>
    %174 = vector.extract_strided_slice %69 {offsets = [0, 0, 11], sizes = [4, 8, 1], strides = [1, 1, 1]} : vector<4x8x16xf32> to vector<4x8x1xf32>
    %175 = vector.extract_strided_slice %72 {offsets = [0, 0, 8], sizes = [4, 8, 32], strides = [1, 1, 1]} : vector<4x8x62xf32> to vector<4x8x32xf32>
    %176 = vector.broadcast %174 : vector<4x8x1xf32> to vector<4x8x32xf32>
    %177 = arith.mulf %176, %175 : vector<4x8x32xf32>
    %178 = arith.addf %169, %177 : vector<4x8x32xf32>
    %179 = vector.extract_strided_slice %72 {offsets = [0, 0, 22], sizes = [4, 8, 32], strides = [1, 1, 1]} : vector<4x8x62xf32> to vector<4x8x32xf32>
    %180 = vector.broadcast %174 : vector<4x8x1xf32> to vector<4x8x32xf32>
    %181 = arith.mulf %180, %179 : vector<4x8x32xf32>
    %182 = arith.addf %173, %181 : vector<4x8x32xf32>
    %183 = vector.extract_strided_slice %69 {offsets = [0, 0, 12], sizes = [4, 8, 1], strides = [1, 1, 1]} : vector<4x8x16xf32> to vector<4x8x1xf32>
    %184 = vector.extract_strided_slice %72 {offsets = [0, 0, 7], sizes = [4, 8, 32], strides = [1, 1, 1]} : vector<4x8x62xf32> to vector<4x8x32xf32>
    %185 = vector.broadcast %183 : vector<4x8x1xf32> to vector<4x8x32xf32>
    %186 = arith.mulf %185, %184 : vector<4x8x32xf32>
    %187 = arith.addf %178, %186 : vector<4x8x32xf32>
    %188 = vector.extract_strided_slice %72 {offsets = [0, 0, 23], sizes = [4, 8, 32], strides = [1, 1, 1]} : vector<4x8x62xf32> to vector<4x8x32xf32>
    %189 = vector.broadcast %183 : vector<4x8x1xf32> to vector<4x8x32xf32>
    %190 = arith.mulf %189, %188 : vector<4x8x32xf32>
    %191 = arith.addf %182, %190 : vector<4x8x32xf32>
    %192 = vector.extract_strided_slice %69 {offsets = [0, 0, 13], sizes = [4, 8, 1], strides = [1, 1, 1]} : vector<4x8x16xf32> to vector<4x8x1xf32>
    %193 = vector.extract_strided_slice %72 {offsets = [0, 0, 6], sizes = [4, 8, 32], strides = [1, 1, 1]} : vector<4x8x62xf32> to vector<4x8x32xf32>
    %194 = vector.broadcast %192 : vector<4x8x1xf32> to vector<4x8x32xf32>
    %195 = arith.mulf %194, %193 : vector<4x8x32xf32>
    %196 = arith.addf %187, %195 : vector<4x8x32xf32>
    %197 = vector.extract_strided_slice %72 {offsets = [0, 0, 24], sizes = [4, 8, 32], strides = [1, 1, 1]} : vector<4x8x62xf32> to vector<4x8x32xf32>
    %198 = vector.broadcast %192 : vector<4x8x1xf32> to vector<4x8x32xf32>
    %199 = arith.mulf %198, %197 : vector<4x8x32xf32>
    %200 = arith.addf %191, %199 : vector<4x8x32xf32>
    %201 = vector.extract_strided_slice %69 {offsets = [0, 0, 14], sizes = [4, 8, 1], strides = [1, 1, 1]} : vector<4x8x16xf32> to vector<4x8x1xf32>
    %202 = vector.extract_strided_slice %72 {offsets = [0, 0, 5], sizes = [4, 8, 32], strides = [1, 1, 1]} : vector<4x8x62xf32> to vector<4x8x32xf32>
    %203 = vector.broadcast %201 : vector<4x8x1xf32> to vector<4x8x32xf32>
    %204 = arith.mulf %203, %202 : vector<4x8x32xf32>
    %205 = arith.addf %196, %204 : vector<4x8x32xf32>
    %206 = vector.extract_strided_slice %72 {offsets = [0, 0, 25], sizes = [4, 8, 32], strides = [1, 1, 1]} : vector<4x8x62xf32> to vector<4x8x32xf32>
    %207 = vector.broadcast %201 : vector<4x8x1xf32> to vector<4x8x32xf32>
    %208 = arith.mulf %207, %206 : vector<4x8x32xf32>
    %209 = arith.addf %200, %208 : vector<4x8x32xf32>
    %210 = vector.extract_strided_slice %69 {offsets = [0, 0, 15], sizes = [4, 8, 1], strides = [1, 1, 1]} : vector<4x8x16xf32> to vector<4x8x1xf32>
    %211 = vector.extract_strided_slice %72 {offsets = [0, 0, 4], sizes = [4, 8, 32], strides = [1, 1, 1]} : vector<4x8x62xf32> to vector<4x8x32xf32>
    %212 = vector.broadcast %210 : vector<4x8x1xf32> to vector<4x8x32xf32>
    %213 = arith.mulf %212, %211 : vector<4x8x32xf32>
    %214 = arith.addf %205, %213 : vector<4x8x32xf32>
    %215 = vector.extract_strided_slice %72 {offsets = [0, 0, 26], sizes = [4, 8, 32], strides = [1, 1, 1]} : vector<4x8x62xf32> to vector<4x8x32xf32>
    %216 = vector.broadcast %210 : vector<4x8x1xf32> to vector<4x8x32xf32>
    %217 = arith.mulf %216, %215 : vector<4x8x32xf32>
    %218 = arith.addf %209, %217 : vector<4x8x32xf32>
    %219 = vector.shape_cast %18 : vector<4x8x1xi1> to vector<4x8x1xi1>
    %220 = vector.broadcast %219 : vector<4x8x1xi1> to vector<4x8x32xi1>
    %221 = arith.select %220, %218, %214 : vector<4x8x32xi1>, vector<4x8x32xf32>
    %222 = vector.extract_strided_slice %221 {offsets = [0, 0, 0], sizes = [1, 8, 32], strides = [1, 1, 1]} : vector<4x8x32xf32> to vector<1x8x32xf32>
    %223 = vector.shape_cast %222 : vector<1x8x32xf32> to vector<8x32xf32>
    %224 = vector.extract_strided_slice %221 {offsets = [1, 0, 0], sizes = [1, 8, 32], strides = [1, 1, 1]} : vector<4x8x32xf32> to vector<1x8x32xf32>
    %225 = vector.shape_cast %224 : vector<1x8x32xf32> to vector<8x32xf32>
    %226 = vector.extract_strided_slice %221 {offsets = [2, 0, 0], sizes = [1, 8, 32], strides = [1, 1, 1]} : vector<4x8x32xf32> to vector<1x8x32xf32>
    %227 = vector.shape_cast %226 : vector<1x8x32xf32> to vector<8x32xf32>
    %228 = vector.extract_strided_slice %221 {offsets = [3, 0, 0], sizes = [1, 8, 32], strides = [1, 1, 1]} : vector<4x8x32xf32> to vector<1x8x32xf32>
    %229 = vector.shape_cast %228 : vector<1x8x32xf32> to vector<8x32xf32>
    %230 = tpu.concatenate %223, %225, %227, %229 in 1 : vector<8x32xf32>, vector<8x32xf32>, vector<8x32xf32>, vector<8x32xf32> -> vector<8x128xf32>
    %c0_33 = arith.constant 0 : index
    %c0_34 = arith.constant 0 : index
    %231 = vector.load %arg5[%c0_33, %c0_34] : memref<8x128xf32, #tpu.memory_space<vmem>>, vector<8x128xf32>
    tpu.vector_store %arg5[%c0_33, %c0_34], %230 {strides = array<i32>} : memref<8x128xf32, #tpu.memory_space<vmem>>, vector<8x128xf32>,
    %c0_35 = arith.constant 0 : index
    %c0_36 = arith.constant 0 : index
    %232 = vector.load %arg4[%c0_35, %c0_36] : memref<128x128xf32, #tpu.memory_space<vmem>>, vector<128x128xf32>
    %cst_37 = arith.constant dense<0.000000e+00> : vector<8x128xf32>
    %233 = tpu.matmul %230, %232, %cst_37 {dimension_numbers = #tpu.dot_dimension_numbers<[1], [0], [0], [1], [0, 0, 1, 1], [], []>} : vector<8x128xf32>, vector<128x128xf32>, vector<8x128xf32> -> vector<8x128xf32>
    %c0_38 = arith.constant 0 : index
    %c0_39 = arith.constant 0 : index
    %234 = vector.load %arg6[%c0_38, %c0_39] : memref<8x128xf32, #tpu.memory_space<vmem>>, vector<8x128xf32>
    tpu.vector_store %arg6[%c0_38, %c0_39], %233 {strides = array<i32>} : memref<8x128xf32, #tpu.memory_space<vmem>>, vector<8x128xf32>,
    return
  }
  func.func @transform_0(%arg0: i32) -> (i32, i32, i32) {
    %c0_i32 = arith.constant 0 : i32
    %c0_i32_0 = arith.constant 0 : i32
    %c0_i32_1 = arith.constant 0 : i32
    return %c0_i32, %arg0, %c0_i32_0 : i32, i32, i32
  }
  func.func @transform_1(%arg0: i32) -> (i32, i32, i32) {
    %c0_i32 = arith.constant 0 : i32
    %c0_i32_0 = arith.constant 0 : i32
    %c0_i32_1 = arith.constant 0 : i32
    return %c0_i32, %arg0, %c0_i32_0 : i32, i32, i32
  }
  func.func @transform_2(%arg0: i32) -> (i32, i32, i32) {
    %c0_i32 = arith.constant 0 : i32
    %c0_i32_0 = arith.constant 0 : i32
    %c0_i32_1 = arith.constant 0 : i32
    return %c0_i32, %arg0, %c0_i32_0 : i32, i32, i32
  }
  func.func @transform_3(%arg0: i32) -> (i32, i32) {
    %c0_i32 = arith.constant 0 : i32
    %c0_i32_0 = arith.constant 0 : i32
    %c0_i32_1 = arith.constant 0 : i32
    return %c0_i32, %c0_i32_0 : i32, i32
  }
  func.func @transform_4(%arg0: i32) -> (i32, i32) {
    %c0_i32 = arith.constant 0 : i32
    %c0_i32_0 = arith.constant 0 : i32
    return %arg0, %c0_i32 : i32, i32
  }
  func.func @transform_5(%arg0: i32) -> (i32, i32) {
    %c0_i32 = arith.constant 0 : i32
    %c0_i32_0 = arith.constant 0 : i32
    return %arg0, %c0_i32 : i32, i32
  }
}

</mosaic_0001>

<bundles_post_ra>
// kernel: tpu_custom_call.1
= control target key start
LH: loop header
LB: loop body
LE: loop exit
PB: predicated region body
PF: predicated region fallthrough
CT: control target
= control target key end

     0   :  { %11 = vsyncpa [#allocation5], 0  ;;  %s4956_s0 = inlined_call_operand.vmem [shape: f32[4,16,1], index: 0, kind: input, shape index: {}]   ;;  %s4957_s1 = inlined_call_operand.vmem [shape: f32[4,16,1], index: 1, kind: input, shape index: {}]   ;;  %s4958_s2 = inlined_call_operand.hbm [shape: f32[4,16,32], index: 2, kind: input, shape index: {}]   ;;  %s4959_s3 = inlined_call_operand.vmem [shape: f32[128,128], index: 3, kind: input, shape index: {}]   ;;  %s4960_s4 = inlined_call_operand.hbm [shape: f32[16,128], index: 4, kind: output, shape index: {0}]   ;;  %s4961_s5 = inlined_call_operand.hbm [shape: f32[16,128], index: 5, kind: output, shape index: {1}]  }
   0x1   :  { %13 = vsyncpa [#allocation5 + $0x1], 0 }
   0x2   :  { %14 = vsyncpa [#allocation6], 0 }
   0x3   :  { %16 = vsyncpa [#allocation6 + $0x1], 0 }
   0x4   :  { %17 = vsyncpa [#allocation9], 0 }
   0x5   :  { %19 = vsyncpa [#allocation9 + $0x1], 0  ;;  %s3225_s18 = smov 0   ;;  %s3227_s19 = smov 0  }
   0x6   :  { %s3229_s20 = smov 0   ;;  %s3231_s21 = smov 0  }
   0x7 LB: > { %s3246_s22 = sadd.s32 4294967295, %s3129_s21   ;;  %s2641_s23 = sadd.s32 4294967294, %s3129_s21   ;;  %s3129_s21 = sphi %s3231_s21, %s5058_s21   ;;  %s3125_s20 = sphi %s3229_s20, %s5057_s20   ;;  %s3121_s19 = sphi %s3227_s19, %s5056_s19   ;;  %s3117_s18 = sphi %s3225_s18, %s5055_s18  }
   0x8   : > { %s3250_s24 = sadd.s32 1, %s3129_s21   ;;  %s32_s25 = sadd.s32 1, %s3125_s20 }
   0x9   : > { %s29_s26 = ssub.s32 %s3129_s21, %s3250_s24  ;;  %p39_p0 = scmp.ne.s32.totalorder %s3125_s20, %s3121_s19 }
   0xa   : > { %p30_p1 = scmp.eq.s32.totalorder %s29_s26, 0  ;;  %p40_p2 = scmp.eq.s32.totalorder %s3129_s21, 0 }
   0xb   : > { %p97_p3 = scmp.ne.s32.totalorder %s3121_s19, %s3117_s18  ;;  %p98_p4 = scmp.eq.s32.totalorder %s3246_s22, 0 }
   0xc   : > { %s3262_s27 = scalar_select %p30_p1, %s3125_s20, %s32_s25  }
   0xd   : > { %p3264_p5 = por %p40_p2, %p39_p0  ;;  %p3268_p6 = por %p98_p4, %p97_p3 }
   0xe   : > { %p142_p7 = scmp.eq.s32.totalorder %s3246_s22, 1  ;;  %p148_p8 = scmp.eq.s32.totalorder %s2641_s23, 1 }
   0xf   : > { %p4962_p11 = scmp.ge.s32.totalorder %s3129_s21, 2 }
  0x10   : > { %p3273_p9 = por %p142_p7, %p39_p0  ;;  %p3277_p10 = por %p148_p8, %p97_p3 }
  0x11   : > { %193 = sbr.rel (%p4962_p11) target bundleno = 65 (0x41), region = 20 }
  0x12   : > { %s4985_s30 = scalar_select %p3273_p9, 1, 0 }
  0x13   : > { %s4986_s6 = scalar_select %p3277_p10, 1, 0 }
  0x18   : > { %196 = sbr.rel (!%p3264_p5) target bundleno = 31 (0x1f), region = 24  ;;  %s198_s7 = sand.u32 (%p3264_p5), 1, %s3125_s20  }
  0x19   : > { %s2645_s8 = sshll.u32 (%p3264_p5), %s3129_s21, 3  ;;  %s2644_s9 = sshll.u32 (%p3264_p5), %s198_s7, 5 }
  0x1a   : > { %s202_s12 = scalar_lea.vmem (%p3264_p5), %s4956_s0, %s2645_s8  ;;  %s200_s13 = scalar_lea.vmem (%p3264_p5), [#allocation2], %s2644_s9 }
  0x1b   : > { %v236_v0 = vld [vmem:[%s202_s12] sm:$0xff] (%p3264_p5)  ;;  %v238_v1 = vld [vmem:[%s202_s12 + $0x10] sm:$0xff] (%p3264_p5) }
  0x1c   : > { %v240_v2 = vld [vmem:[%s202_s12 + $0x20] sm:$0xff] (%p3264_p5)  ;;  %237 = vst [vmem:[%s200_s13] sm:$0xff] (%p3264_p5), %v236_v0  ;;  %239 = vst [vmem:[%s200_s13 + $0x8] sm:$0xff] (%p3264_p5), %v238_v1  ;;  %v242_v3 = vld [vmem:[%s202_s12 + $0x30] sm:$0xff] (%p3264_p5) }
  0x1d   : > { %241 = vst [vmem:[%s200_s13 + $0x10] sm:$0xff] (%p3264_p5), %v240_v2  ;;  %243 = vst [vmem:[%s200_s13 + $0x18] sm:$0xff] (%p3264_p5), %v242_v3 }
  0x1f PF: > { %249 = sbr.rel (!%p3264_p5) target bundleno = 38 (0x26), region = 62  ;;  %s251_s14 = sand.u32 (%p3264_p5), 1, %s3125_s20  }
  0x20   : > { %s2647_s15 = sshll.u32 (%p3264_p5), %s3129_s21, 3  ;;  %s2646_s16 = sshll.u32 (%p3264_p5), %s251_s14, 5 }
  0x21   : > { %s255_s25 = scalar_lea.vmem (%p3264_p5), %s4957_s1, %s2647_s15  ;;  %s253_s26 = scalar_lea.vmem (%p3264_p5), [#allocation3], %s2646_s16 }
  0x22   : > { %v289_v4 = vld [vmem:[%s255_s25] sm:$0xff] (%p3264_p5)  ;;  %v291_v5 = vld [vmem:[%s255_s25 + $0x10] sm:$0xff] (%p3264_p5) }
  0x23   : > { %v293_v6 = vld [vmem:[%s255_s25 + $0x20] sm:$0xff] (%p3264_p5)  ;;  %290 = vst [vmem:[%s253_s26] sm:$0xff] (%p3264_p5), %v289_v4  ;;  %292 = vst [vmem:[%s253_s26 + $0x8] sm:$0xff] (%p3264_p5), %v291_v5  ;;  %v295_v7 = vld [vmem:[%s255_s25 + $0x30] sm:$0xff] (%p3264_p5) }
  0x24   : > { %294 = vst [vmem:[%s253_s26 + $0x10] sm:$0xff] (%p3264_p5), %v293_v6  ;;  %296 = vst [vmem:[%s253_s26 + $0x18] sm:$0xff] (%p3264_p5), %v295_v7 }
  0x26 PF: > { %s303_s7 = sand.u32 1, %s3125_s20   ;;  %s2649_s8 = sshll.u32 %s3129_s21, 7 }
  0x27   : > { %s2648_s9 = sshll.u32 %s303_s7, 5  ;;  %s3303_s12 = scalar_lea.hbm %s4958_s2, %s2649_s8 }
  0x28   : > { %s307_s13 = scalar_lea.vmem [#allocation4], %s2648_s9  ;;  %s3307_s15 = scalar_lea.sflag [#allocation5], %s303_s7 }
  0x29   : > { %s313_s14 = sshll.u32 %s307_s13, 4  ;;  %s3003_s16 = scalar_lea.hbm %s3303_s12, 512  ;;  %s3305_s14 = int_to_ptr.vmem [resolvable:$true] %s313_s14 }
  0x2a   : > { %p3004_p12 = scmp.ne.s32.totalorder %s3303_s12, %s3003_s16  ;;  %s3007_s25 = scalar_lea.hbm %s4958_s2, 1024 }
  0x2b   : > { %p3008_p1 = scmp.lt.u32.totalorder %s3303_s12, %s4958_s2  ;;  %p3009_p2 = scmp.lt.u32.totalorder %s3007_s25, %s3003_s16 }
  0x2c   : > { %p3005_p13 = pnand %p3004_p12, %p3264_p5  ;;  %p3011_p4 = scmp.lt.u32.totalorder %s3003_s16, %s3303_s12 }
  0x2d   : > { %p3010_p3 = por %p3009_p2, %p3008_p1 }
  0x2e   : > { %p3006_p0 = pneg %p3005_p13 }
  0x2f   : > { %p3012_p7 = por %p3011_p4, %p3010_p3 }
  0x31   : > { %p3013_p8 = pnand %p3012_p7, %p3006_p0 }
  0x33   : > { %3016 = shalt.err (!%p3013_p8)
}
  0x34   : > { %s3017_s7 = scalar_lea.vmem %s3305_s14, 512  ;;  %s3131_s9 = smov [#allocation4]  }
  0x35   : > { %p3018_p12 = scmp.ne.s32.totalorder %s3305_s14, %s3017_s7  ;;  %s3021_s10 = sshll.u32 %s3131_s9, 4  ;;  %s3022_s10 = int_to_ptr.vmem [resolvable:$false] %s3021_s10 }
  0x36   : > { %s3023_s11 = scalar_lea.vmem %s3022_s10, 1024  ;;  %p3024_p10 = scmp.lt.s32.totalorder %s3305_s14, %s3022_s10 }
  0x37   : > { %p3019_p13 = pnand %p3018_p12, %p3264_p5  ;;  %p3025_p9 = scmp.lt.s32.totalorder %s3023_s11, %s3017_s7 }
  0x39   : > { %p3020_p11 = pneg %p3019_p13  ;;  %p3026_p1 = por %p3025_p9, %p3024_p10 }
  0x3b   : > { %p3027_p2 = pnand %p3026_p1, %p3020_p11 }
  0x3d   : > { %3030 = shalt.err (!%p3027_p2)
}
  0x3e   : > { %s3132_s13 = smov 256   ;;  %s3133_s16 = smov 128  }
  0x3f   : > { %s3134_s17 = smov 8  }
  0x40   : > { %2807 = dma.hbm_to_vmem [thread:$0]  (%p3264_p5), %s3303_s12, 512, %s3305_s14, %s3307_s15, %s3132_s13, %s3133_s16, %s3134_s17  }
  0x41 PF: > { %p2650_p0 = scmp.ge.s32.totalorder %s3129_s21, 1  ;;  %p321_p3 = scmp.lt.s32.totalorder %s3129_s21, 3 }
  0x43   : > { %p322_p4 = pnand %p2650_p0, %p321_p3 }
  0x45   : > { %325 = sbr.rel (%p322_p4) target bundleno = 1657 (0x679), region = 104 }
  0x4c   : > { %s3334_s23 = sand.u32 1, %s3121_s19  }
  0x4d   : > { %s2651_s25 = sshll.u32 %s3334_s23, 5  ;;  %s342_s7 = scalar_lea.sflag [#allocation5], %s3334_s23 }
  0x4e   : > { %s330_s26 = scalar_lea.vmem [#allocation2], %s2651_s25  ;;  %s3337_s8 = scalar_lea.vmem [#allocation3], %s2651_s25 }
  0x4f   : > { %s3340_s28 = scalar_lea.vmem [#allocation4], %s2651_s25 }
  0x50   : > { %3104 = dma.done.wait (%p3268_p6), %s342_s7, 512  }
  0x51   : > { %3106 = vsyncadd (%p3268_p6), %s342_s7, 4294966784  ;;  %v4964_v8 = vmov 0   ;;  %v1423_v9 = vld [vmem:[%s3340_s28] sm:$0xff]  ;;  %v1424_v10 = vld [vmem:[%s3340_s28 + $0x8] sm:$0xff]  ;;  %s3136_s12 = smov 15   ;;  %v441_v61 = vlaneseq  ;;  %s3158_s29 = smov 1  }
  0x52   : > { %2915 = vset.pattern.permute.xlu1 %v4964_v8  ;;  %2914 = vset.pattern.permute.xlu0 %v4964_v8  ;;  %v387_v11 = vld [vmem:[%s330_s26 + $0x10] sm:$0xff]  ;;  %v385_v12 = vld [vmem:[%s330_s26] sm:$0xff]  ;;  %v388_v14 = vld [vmem:[%s330_s26 + $0x18] sm:$0xff]  ;;  %s3159_s14 = smov 2   ;;  %s3160_s15 = smov 3  }
  0x53   : > { %1431 = vrot.lane.b32.xlu1 %v1423_v9, %s3136_s12  ;;  %1433 = vrot.lane.b32.xlu0 %v1424_v10, %s3136_s12  ;;  %v1425_v13 = vld [vmem:[%s3340_s28 + $0x10] sm:$0xff]  ;;  %2947 = vtanh.f32 %v387_v11  ;;  %v386_v15 = vld [vmem:[%s330_s26 + $0x8] sm:$0xff]  ;;  %v442_v62 = vand.u32 127, %v441_v61  ;;  %s3161_s9 = smov 4   ;;  %s3162_s10 = smov 127  }
  0x54   : > { %2949 = vtanh.f32 %v385_v12  ;;  %v391_v20 = vld [vmem:[%s3337_s8 + $0x10] sm:$0xff]  ;;  %v389_v24 = vld [vmem:[%s3337_s8] sm:$0xff]  ;;  %v392_v27 = vld [vmem:[%s3337_s8 + $0x18] sm:$0xff]  ;;  %s3163_s11 = smov 5   ;;  %s3164_s13 = smov 6  }
  0x55   : > { %2951 = vtanh.f32 %v388_v14  ;;  %v390_v31 = vld [vmem:[%s3337_s8 + $0x8] sm:$0xff]  ;;  %v1426_v48 = vld [vmem:[%s3340_s28 + $0x18] sm:$0xff]  ;;  %v3364_v63 = vcvt.s32.f32 %v442_v62  ;;  %s3165_s16 = smov 7   ;;  %s3166_s17 = smov 8  }
  0x56   : > { %2953 = vtanh.f32 %v386_v15  ;;  %s3167_s25 = smov 9   ;;  %s3168_s26 = smov 10  }
  0x57   : > { %1435 = vrot.lane.b32.xlu1 %v1425_v13, %s3136_s12  ;;  %v3369_v1 = vadd.f32 -4.0, %v3364_v63  ;;  %s3169_s8 = smov 11   ;;  %s3170_s7 = smov 12  }
  0x58   : > { %s3171_s28 = smov 13   ;;  %p5052_p6 = scmp.ne.s32.totalorder %s4985_s30, 0 }
  0x5d   : > { %v2948_v16 = vpop.eup %2947 }
  0x5e   : > { %v2950_v17 = vpop.eup %2949  ;;  %vm399_vm0 = vcmp.ne.f32.partialorder %v2948_v16, %v2948_v16 }
  0x5f   : > { %v2952_v18 = vpop.eup %2951  ;;  %v403_v19 = vsel %vm399_vm0, 0.0, %v2948_v16  ;;  %vm397_vm1 = vcmp.ne.f32.partialorder %v2950_v17, %v2950_v17 }
  0x60   : > { %v2954_v21 = vpop.eup %2953  ;;  %v407_v22 = vmul.f32 0.5, %v403_v19  ;;  %v401_v23 = vsel %vm397_vm1, 0.0, %v2950_v17  ;;  %vm400_vm2 = vcmp.ne.f32.partialorder %v2952_v18, %v2952_v18 }
  0x61   : > { %v405_v25 = vmul.f32 0.5, %v401_v23  ;;  %v404_v26 = vsel %vm400_vm2, 0.0, %v2952_v18  ;;  %vm398_vm3 = vcmp.ne.f32.partialorder %v2954_v21, %v2954_v21 }
  0x62   : > { %v411_v28 = vmul.f32 16.0, %v407_v22  ;;  %v408_v29 = vmul.f32 0.5, %v404_v26  ;;  %v402_v30 = vsel %vm398_vm3, 0.0, %v2954_v21  ;;  %v419_v32 = vadd.f32 %v407_v22, %v391_v20 }
  0x63   : > { %v409_v33 = vmul.f32 16.0, %v405_v25  ;;  %v406_v34 = vmul.f32 0.5, %v402_v30  ;;  %v417_v35 = vadd.f32 %v405_v25, %v389_v24 }
  0x64   : > { %v415_v36 = vand.u32 2147483647, %v411_v28  ;;  %v412_v37 = vmul.f32 16.0, %v408_v29  ;;  %v420_v38 = vadd.f32 %v408_v29, %v392_v27  ;;  %vm423_vm4 = vcmp.eq.f32.partialorder %v419_v32, 0.0 }
  0x65   : > { %v413_v39 = vand.u32 2147483647, %v409_v33  ;;  %v410_v40 = vmul.f32 16.0, %v406_v34  ;;  %v418_v41 = vadd.f32 %v406_v34, %v390_v31  ;;  %vm421_vm5 = vcmp.eq.f32.partialorder %v417_v35, 0.0 }
  0x66   : > { %457 = vperm.xlu1 %2915, %v415_v36   ;;  %v416_v42 = vand.u32 2147483647, %v412_v37  ;;  %v425_v43 = vsel %vm421_vm5, 1.0, %v417_v35  ;;  %vm424_vm6 = vcmp.eq.f32.partialorder %v420_v38, 0.0  ;;  %v427_v44 = vsel %vm423_vm4, 1.0, %v419_v32 }
  0x67   : > { %447 = vperm.xlu0 %2914, %v413_v39   ;;  %v414_v45 = vand.u32 2147483647, %v410_v40  ;;  %vm422_vm7 = vcmp.eq.f32.partialorder %v418_v41, 0.0  ;;  %2955 = vrcp.f32 %v425_v43  ;;  %v428_v46 = vsel %vm424_vm6, 1.0, %v420_v38 }
  0x68   : > { %v426_v47 = vsel %vm422_vm7, 1.0, %v418_v41  ;;  %2957 = vrcp.f32 %v428_v46  ;;  %vm438_vm8 = vcmp.lt.f32.partialorder %v410_v40, 0.0  ;;  %vm437_vm9 = vcmp.lt.f32.partialorder %v409_v33, 0.0 }
  0x69   : > { %2959 = vrcp.f32 %v426_v47  ;;  %v2322_v57 = vsel %vm438_vm8, 1, %v4964_v8  ;;  %v2321_v58 = vsel %vm437_vm9, 1, %v4964_v8  ;;  %vm439_vm10 = vcmp.lt.f32.partialorder %v411_v28, 0.0 }
  0x6a   : > { %462 = vperm.xlu1 %2915, %v416_v42   ;;  %2961 = vrcp.f32 %v427_v44  ;;  %v2323_v59 = vsel %vm439_vm10, 1, %v4964_v8  ;;  %vm440_vm11 = vcmp.lt.f32.partialorder %v412_v37, 0.0  ;;  %v3137_v43 = vmov 683565275  }
  0x6b   : > { %452 = vperm.xlu0 %2914, %v414_v45   ;;  %v2324_v60 = vsel %vm440_vm11, 1, %v4964_v8  ;;  %v3138_v45 = vmov 2475754826   ;;  %v3139_v47 = vmov 2131351028  }
  0x6e   : > { %1437 = vrot.lane.b32.xlu1 %v1426_v48, %s3136_s12 }
  0x71   : > { %v2956_v49 = vpop.eup %2955 }
  0x72   : > { %v2958_v50 = vpop.eup %2957  ;;  %v430_v51 = vmul.f32 %v2956_v49, %v389_v24  ;;  %v3140_v49 = vmov 2102212464  }
  0x73   : > { %v2960_v52 = vpop.eup %2959  ;;  %v436_v56 = vmul.f32 %v2958_v50, %v392_v27 }
  0x74   : > { %v2962_v53 = vpop.eup %2961  ;;  %v432_v54 = vmul.f32 %v2960_v52, %v390_v31  ;;  %1340 = vperm.xlu0 %2914, %v430_v51  }
  0x75   : > { %v434_v55 = vmul.f32 %v2962_v53, %v391_v20 }
  0x76   : > { %1345 = vperm.xlu1 %2915, %v432_v54   ;;  %v3141_v54 = vmov 920167782  }
  0x78   : > { %1350 = vperm.xlu0 %2914, %v434_v55  }
  0x7a   : > { %1355 = vperm.xlu1 %2915, %v436_v56  }
  0x7c   : > { %2329 = vperm.xlu0 %2914, %v2322_v57  }
  0x7e   : > { %2326 = vperm.xlu1 %2915, %v2321_v58   ;;  %v3142_v58 = vmov 1326507024  }
  0x82   : > { %2332 = vperm.xlu1 %2915, %v2323_v59  }
  0x86   : > { %2335 = vperm.xlu1 %2915, %v2324_v60  }
  0xc5   : > { %v3366_v0 = vpop.permute.xlu0 %1433  ;;  %v3374_v4 = vpop.permute.xlu1 %1431 }
  0xc9   : > { %v3388_v13 = vpop.permute.xlu1 %1435 }
  0xe5   : > { %v3396_v20 = vpop.permute.xlu1 %457 }
  0xe6   : > { %v448_v2 = vpop.permute.xlu0 %447 }
  0xe7   : > { %v3372_v3 = vsub.f32 %v3369_v1, %v448_v2 }
  0xe9   : > { %v469_v5 = vmul.f32 3.1415927, %v3372_v3  ;;  %vm898_vm14 = vcmp.eq.f32.partialorder %v3372_v3, 0.0  ;;  %v463_v29 = vpop.permute.xlu1 %462 }
  0xea   : > { %v453_v6 = vpop.permute.xlu0 %452  ;;  %v3413_v36 = vsub.f32 %v3369_v1, %v463_v29  ;;  %v902_v38 = vsel %vm898_vm14, 1.0, %v3372_v3 }
  0xeb   : > { %v3377_v7 = vmul.f32 0.25, %v469_v5  ;;  %v3380_v9 = vsub.f32 %v3369_v1, %v453_v6 }
  0xed   : > { %v481_v10 = vand.u32 2139095040, %v3377_v7  ;;  %v470_v11 = vmul.f32 3.1415927, %v3380_v9  ;;  %vm899_vm12 = vcmp.eq.f32.partialorder %v3380_v9, 0.0 }
  0xee   : > { %v903_v12 = vsel %vm899_vm12, 1.0, %v3380_v9 }
  0xef   : > { %v482_v14 = vshrl.u32 %v481_v10, 23  ;;  %v3390_v15 = vmul.f32 0.25, %v470_v11  ;;  %v3394_v19 = vmul.f32 3.1415927, %v903_v12 }
  0xf1   : > { %v2657_v16 = vadd.s32 4294967169, %v482_v14  ;;  %v584_v17 = vand.u32 2139095040, %v3390_v15  ;;  %v581_v18 = vand.u32 2147483647, %v3390_v15  ;;  %v1014_v25 = vand.u32 2147483647, %v3394_v19 }
  0xf2   : > { %v1017_v27 = vand.u32 2139095040, %v3394_v19 }
  0xf3   : > { %v488_v21 = vadd.s32 1, %v2657_v16  ;;  %v585_v22 = vshrl.u32 %v584_v17, 23  ;;  %v588_v24 = vand.u32 8388607, %v581_v18  ;;  %v3407_v31 = vand.u32 8388607, %v1014_v25 }
  0xf4   : > { %v1018_v33 = vshrl.u32 %v1017_v27, 23 }
  0xf5   : > { %v2661_v23 = vadd.s32 4294967169, %v585_v22  ;;  %vm489_vm13 = vcmp.gt.s32.totalorder %v488_v21, 0  ;;  %v589_v30 = vor.u32 8388608, %v588_v24  ;;  %v1022_v42 = vor.u32 8388608, %v3407_v31 }
  0xf6   : > { %v3403_v28 = vsel %vm489_vm13, %v488_v21, 0  ;;  %v2677_v41 = vadd.s32 4294967169, %v1018_v33 }
  0xf7   : > { %v591_v26 = vadd.s32 1, %v2661_v23  ;;  %v3410_v35 = vand.u32 31, %v3403_v28  ;;  %v3418_v40 = vshll.u32 %v589_v30, 8 }
  0xf8   : > { %v1024_v2 = vadd.s32 1, %v2677_v41 }
  0xf9   : > { %vm592_vm15 = vcmp.gt.s32.totalorder %v591_v26, 0 }
  0xfa   : > { %v593_v32 = vsel %vm592_vm15, %v591_v26, 0  ;;  %vm1025_vm3 = vcmp.gt.s32.totalorder %v1024_v2, 0 }
  0xfb   : > { %v595_v34 = vand.u32 31, %v593_v32  ;;  %v594_v37 = vshrl.u32 %v593_v32, 5  ;;  %v1026_v24 = vsel %vm1025_vm3, %v1024_v2, 0 }
  0xfc   : > { %v3432_v30 = vshrl.u32 %v1026_v24, 5  ;;  %v1028_v41 = vand.u32 31, %v1026_v24 }
  0xfd   : > { %v596_v39 = vsub.s32 32, %v595_v34  ;;  %v598_v44 = vshll.u32 %v3137_v43, %v595_v34  ;;  %v601_v46 = vshll.u32 %v3138_v45, %v595_v34  ;;  %v604_v48 = vshll.u32 %v3139_v47, %v595_v34 }
  0xfe   : > { %v607_v50 = vshll.u32 %v3140_v49, %v595_v34  ;;  %v610_v55 = vshll.u32 %v3141_v54, %v595_v34  ;;  %vm613_vm0 = vcmp.lt.s32.totalorder %v594_v37, 1  ;;  %vm615_vm1 = vcmp.lt.s32.totalorder %v594_v37, 3 }
  0xff   : > { %v599_v51 = vshrl.u32 %v3138_v45, %v596_v39  ;;  %v602_v52 = vshrl.u32 %v3139_v47, %v596_v39  ;;  %v605_v53 = vshrl.u32 %v3140_v49, %v596_v39  ;;  %v597_v56 = vshrl.u32 %v3137_v43, %v596_v39 }
 0x100   : > { %v608_v57 = vshrl.u32 %v3141_v54, %v596_v39  ;;  %v611_v59 = vshrl.u32 %v3142_v58, %v596_v39  ;;  %vm616_vm2 = vcmp.lt.s32.totalorder %v594_v37, 4  ;;  %vm614_vm4 = vcmp.lt.s32.totalorder %v594_v37, 2 }
 0x101   : > { %v600_v60 = vor.u32 %v599_v51, %v598_v44  ;;  %v603_v61 = vor.u32 %v602_v52, %v601_v46  ;;  %v606_v62 = vor.u32 %v605_v53, %v604_v48  ;;  %v3445_v37 = vsub.f32 %v3369_v1, %v3396_v20 }
 0x102   : > { %v609_v5 = vor.u32 %v608_v57, %v607_v50  ;;  %v612_v6 = vor.u32 %v611_v59, %v610_v55  ;;  %v3448_v39 = vmul.f32 3.1415927, %v3413_v36  ;;  %v3450_v44 = vmul.f32 3.1415927, %v902_v38 }
 0x103   : > { %v617_v10 = vsel %vm613_vm0, %v597_v56, %v600_v60  ;;  %v618_v11 = vsel %vm616_vm2, %v606_v62, 2102212464  ;;  %v621_v12 = vsel %vm613_vm0, %v600_v60, %v603_v61  ;;  %v625_v14 = vsel %vm613_vm0, %v603_v61, %v606_v62 }
 0x104   : > { %v619_v16 = vsel %vm615_vm1, %v603_v61, %v618_v11  ;;  %v622_v17 = vsel %vm616_vm2, %v609_v5, 920167782  ;;  %v626_v21 = vsel %vm616_vm2, %v612_v6, 1326507024  ;;  %v3453_v46 = vshrl.u32 %v3403_v28, 5 }
 0x105   : > { %v623_v22 = vsel %vm615_vm1, %v606_v62, %v622_v17  ;;  %v627_v23 = vsel %vm615_vm1, %v609_v5, %v626_v21  ;;  %v620_v26 = vsel %vm614_vm4, %v617_v10, %v619_v16  ;;  %v3456_v48 = vsub.s32 32, %v3410_v35 }
 0x106   : > { %v624_v27 = vsel %vm614_vm4, %v621_v12, %v623_v22  ;;  %v628_v29 = vsel %vm614_vm4, %v625_v14, %v627_v23  ;;  %v3458_v50 = vshll.u32 %v1022_v42, 8  ;;  %v4966_v51 = vand.u32 2147483647, %v3377_v7 }
 0x107   : > { %v3435_v31 = vmul.u32.u64.low %v3418_v40, %v628_v29  ;;  %v3436_v32 = vmul.u32.u64.high %v3418_v40, %v628_v29, %v3435_v31  ;;  %v3439_v33 = vmul.u32.u64.low %v3418_v40, %v624_v27  ;;  %v3440_v34 = vmul.u32.u64.high %v3418_v40, %v624_v27, %v3439_v33 }
 0x108   : > { %v636_v52 = vmul.u32 %v3418_v40, %v620_v26  ;;  %v1029_v1 = vsub.s32 32, %v1028_v41  ;;  %v1031_v20 = vshll.u32 %v3137_v43, %v1028_v41  ;;  %vm1046_vm5 = vcmp.lt.s32.totalorder %v3432_v30, 1 }
 0x109   : > { %vm638_vm6 = vc.u32 %v3436_v32, %v3439_v33  ;;  %v639_v28 = vadd.s32 1, %v3440_v34  ;;  %v1034_v38 = vshll.u32 %v3138_v45, %v1028_v41  ;;  %v1037_v53 = vshll.u32 %v3139_v47, %v1028_v41 }
 0x10a   : > { %v1032_v42 = vshrl.u32 %v3138_v45, %v1029_v1  ;;  %v1035_v55 = vshrl.u32 %v3139_v47, %v1029_v1  ;;  %v1038_v40 = vshrl.u32 %v3140_v49, %v1029_v1  ;;  %v1040_v56 = vshll.u32 %v3140_v49, %v1028_v41 }
 0x10b   : > { %v640_v57 = vsel %vm638_vm6, %v639_v28, %v3440_v34  ;;  %v1041_v59 = vshrl.u32 %v3141_v54, %v1029_v1  ;;  %v1043_v60 = vshll.u32 %v3141_v54, %v1028_v41  ;;  %v1044_v61 = vshrl.u32 %v3142_v58, %v1029_v1 }
 0x10c   : > { %v641_v62 = vadd.s32 %v640_v57, %v636_v52  ;;  %v1033_v2 = vor.u32 %v1032_v42, %v1031_v20  ;;  %v1036_v5 = vor.u32 %v1035_v55, %v1034_v38  ;;  %v1039_v6 = vor.u32 %v1038_v40, %v1037_v53 }
 0x10d   : > { %v1042_v10 = vor.u32 %v1041_v59, %v1040_v56  ;;  %v1045_v11 = vor.u32 %v1044_v61, %v1043_v60  ;;  %vm1047_vm7 = vcmp.lt.s32.totalorder %v3432_v30, 2  ;;  %vm1048_vm8 = vcmp.lt.s32.totalorder %v3432_v30, 3 }
 0x10e   : > { %v642_v12 = vadd.s32 536870912, %v641_v62  ;;  %v1030_v14 = vshrl.u32 %v3137_v43, %v1029_v1  ;;  %vm1049_vm9 = vcmp.lt.s32.totalorder %v3432_v30, 4  ;;  %v1054_v16 = vsel %vm1046_vm5, %v1033_v2, %v1036_v5 }
 0x10f   : > { %v1051_v17 = vsel %vm1049_vm9, %v1039_v6, 2102212464  ;;  %v1055_v21 = vsel %vm1049_vm9, %v1042_v10, 920167782  ;;  %v1058_v22 = vsel %vm1046_vm5, %v1036_v5, %v1039_v6  ;;  %v1059_v23 = vsel %vm1049_vm9, %v1045_v11, 1326507024 }
 0x110   : > { %v3485_v24 = vshrl.u32 %v642_v12, 30  ;;  %v1056_v26 = vsel %vm1048_vm8, %v1039_v6, %v1055_v21  ;;  %v1060_v27 = vsel %vm1048_vm8, %v1042_v10, %v1059_v23  ;;  %v496_v29 = vshrl.u32 %v3138_v45, %v3456_v48 }
 0x111   : > { %v1050_v31 = vsel %vm1046_vm5, %v1030_v14, %v1033_v2  ;;  %v1057_v34 = vsel %vm1047_vm7, %v1054_v16, %v1056_v26  ;;  %v1061_v41 = vsel %vm1047_vm7, %v1058_v22, %v1060_v27  ;;  %v499_v52 = vshrl.u32 %v3139_v47, %v3456_v48 }
 0x112   : > { %v644_v1 = vshll.u32 %v3485_v24, 30  ;;  %v1052_v20 = vsel %vm1048_vm8, %v1036_v5, %v1051_v17  ;;  %v3505_v28 = vmul.u32.u64.low %v3458_v50, %v1061_v41  ;;  %v3506_v38 = vmul.u32.u64.high %v3458_v50, %v1061_v41, %v3505_v28 }
 0x113   : > { %v3509_v53 = vmul.u32.u64.low %v3458_v50, %v1057_v34  ;;  %v3510_v42 = vmul.u32.u64.high %v3458_v50, %v1057_v34, %v3509_v53  ;;  %v485_v55 = vand.u32 8388607, %v4966_v51  ;;  %v502_v40 = vshrl.u32 %v3140_v49, %v3456_v48 }
 0x114   : > { %v3517_v56 = vsub.s32 %v641_v62, %v644_v1  ;;  %v495_v57 = vshll.u32 %v3137_v43, %v3410_v35  ;;  %v498_v59 = vshll.u32 %v3138_v45, %v3410_v35  ;;  %v505_v60 = vshrl.u32 %v3141_v54, %v3456_v48 }
 0x115   : > { %v1053_v61 = vsel %vm1047_vm7, %v1050_v31, %v1052_v20  ;;  %v501_v2 = vshll.u32 %v3139_v47, %v3410_v35  ;;  %v504_v5 = vshll.u32 %v3140_v49, %v3410_v35  ;;  %v508_v62 = vshrl.u32 %v3142_v58, %v3456_v48 }
 0x116   : > { %v647_v6 = vsub.s32 0, %v3517_v56  ;;  %vm1071_vm10 = vc.u32 %v3506_v38, %v3509_v53  ;;  %v497_v10 = vor.u32 %v496_v29, %v495_v57  ;;  %v500_v11 = vor.u32 %v499_v52, %v498_v59 }
 0x117   : > { %v1072_v12 = vadd.s32 1, %v3510_v42  ;;  %v503_v30 = vor.u32 %v502_v40, %v501_v2  ;;  %v506_v14 = vor.u32 %v505_v60, %v504_v5  ;;  %v507_v16 = vshll.u32 %v3141_v54, %v3410_v35 }
 0x118   : > { %v3540_v17 = vmul.f32 0.25, %v3448_v39  ;;  %v2662_v21 = vmin.u32 %v647_v6, %v3517_v56  ;;  %v1069_v22 = vmul.u32 %v3458_v50, %v1053_v61  ;;  %v494_v23 = vshrl.u32 %v3137_v43, %v3456_v48 }
 0x119   : > { %v1073_v26 = vsel %vm1071_vm10, %v1072_v12, %v3510_v42  ;;  %v486_v27 = vor.u32 8388608, %v485_v55  ;;  %v509_v29 = vor.u32 %v508_v62, %v507_v16  ;;  %vm510_vm11 = vcmp.lt.s32.totalorder %v3453_v46, 1 }
 0x11a   : > { %v649_v31 = vclz %v2662_v21  ;;  %v1074_v34 = vadd.s32 %v1073_v26, %v1069_v22  ;;  %vm511_vm13 = vcmp.lt.s32.totalorder %v3453_v46, 2  ;;  %vm513_vm15 = vcmp.lt.s32.totalorder %v3453_v46, 4 }
 0x11b   : > { %vm512_vm0 = vcmp.lt.s32.totalorder %v3453_v46, 3  ;;  %v515_v35 = vsel %vm513_vm15, %v503_v30, 2102212464  ;;  %v518_v39 = vsel %vm510_vm11, %v497_v10, %v500_v11  ;;  %v519_v50 = vsel %vm513_vm15, %v506_v14, 920167782 }
 0x11c   : > { %v2663_v41 = vadd.s32 4294967294, %v649_v31  ;;  %v1075_v52 = vadd.s32 536870912, %v1074_v34  ;;  %v520_v48 = vsel %vm512_vm0, %v503_v30, %v519_v50  ;;  %v522_v1 = vsel %vm510_vm11, %v500_v11, %v503_v30 }
 0x11d   : > { %v514_v20 = vsel %vm510_vm11, %v494_v23, %v497_v10  ;;  %v521_v28 = vsel %vm511_vm13, %v518_v39, %v520_v48  ;;  %v523_v42 = vsel %vm513_vm15, %v509_v29, 1326507024  ;;  %v526_v55 = vshll.u32 %v486_v27, 8 }
 0x11e   : > { %vm2664_vm1 = vcmp.lt.s32.totalorder %v2663_v41, 0  ;;  %v3553_v40 = vshrl.u32 %v1075_v52, 30  ;;  %v516_v57 = vsel %vm512_vm0, %v500_v11, %v515_v35  ;;  %v524_v59 = vsel %vm512_vm0, %v506_v14, %v523_v42 }
 0x11f   : > { %v652_v60 = vsel %vm2664_vm1, 0, %v2663_v41  ;;  %v525_v61 = vsel %vm511_vm13, %v522_v1, %v524_v59  ;;  %v3557_v2 = vmul.u32.u64.low %v526_v55, %v521_v28  ;;  %v3558_v5 = vmul.u32.u64.high %v526_v55, %v521_v28, %v3557_v2 }
 0x120   : > { %v471_v62 = vmul.f32 3.1415927, %v3445_v37  ;;  %v790_v6 = vand.u32 2139095040, %v3540_v17  ;;  %v1077_v10 = vshll.u32 %v3553_v40, 30  ;;  %v657_v12 = vsub.s32 4294967266, %v652_v60 }
 0x121   : > { %v3564_v30 = vmul.u32.u64.low %v526_v55, %v525_v61  ;;  %v3565_v16 = vmul.u32.u64.high %v526_v55, %v525_v61, %v3564_v30  ;;  %v517_v14 = vsel %vm511_vm13, %v514_v20, %v516_v57  ;;  %v536_v21 = vadd.s32 1, %v3558_v5 }
 0x122   : > { %v3567_v11 = vsub.s32 %v1074_v34, %v1077_v10  ;;  %v913_v22 = vand.u32 2139095040, %v3450_v44  ;;  %v3573_v23 = vmul.f32 0.25, %v471_v62  ;;  %v791_v26 = vshrl.u32 %v790_v6, 23 }
 0x123   : > { %v658_v29 = vadd.s32 127, %v657_v12  ;;  %v533_v31 = vmul.u32 %v526_v55, %v517_v14  ;;  %vm535_vm2 = vc.u32 %v3565_v16, %v3557_v2  ;;  %v653_v39 = vsub.s32 32, %v652_v60 }
 0x124   : > { %v1080_v27 = vsub.s32 0, %v3567_v11  ;;  %v914_v35 = vshrl.u32 %v913_v22, 23  ;;  %v537_v46 = vsel %vm535_vm2, %v536_v21, %v3558_v5  ;;  %v687_v52 = vand.u32 2139095040, %v3573_v23 }
 0x125   : > { %v538_v50 = vadd.s32 %v537_v46, %v533_v31  ;;  %v2669_v48 = vadd.s32 4294967169, %v791_v26  ;;  %v637_v20 = vadd.s32 %v3439_v33, %v3436_v32  ;;  %v659_v28 = vshll.u32 %v658_v29, 23 }
 0x126   : > { %v2678_v34 = vmin.u32 %v1080_v27, %v3567_v11  ;;  %v2673_v41 = vadd.s32 4294967169, %v914_v35  ;;  %v688_v62 = vshrl.u32 %v687_v52, 23  ;;  %v654_v5 = vshll.u32 %v3517_v56, %v652_v60 }
 0x127   : > { %v539_v42 = vadd.s32 536870912, %v538_v50  ;;  %v655_v59 = vshrl.u32 %v637_v20, %v653_v39  ;;  %v797_v6 = vadd.s32 1, %v2669_v48  ;;  %v660_v10 = vor.u32 4788187, %v659_v28 }
 0x128   : > { %v1082_v1 = vclz %v2678_v34  ;;  %v920_v57 = vadd.s32 1, %v2673_v41  ;;  %v4965_v33 = vand.u32 2147483647, %v3450_v44  ;;  %v2665_v22 = vadd.s32 4294967169, %v688_v62 }
 0x129   : > { %v3583_v61 = vshrl.u32 %v539_v42, 30  ;;  %v656_v14 = vor.u32 %v655_v59, %v654_v5  ;;  %vm798_vm5 = vcmp.gt.s32.totalorder %v797_v6, 0  ;;  %v661_v26 = vand.u32 2147483647, %v660_v10 }
 0x12a   : > { %v2679_v55 = vadd.s32 4294967294, %v1082_v1  ;;  %vm921_vm3 = vcmp.gt.s32.totalorder %v920_v57, 0  ;;  %v799_v31 = vsel %vm798_vm5, %v797_v6, 0  ;;  %v917_v34 = vand.u32 8388607, %v4965_v33 }
 0x12b   : > { %v541_v12 = vshll.u32 %v3583_v61, 30  ;;  %v922_v30 = vsel %vm921_vm3, %v920_v57, 0  ;;  %v663_v35 = vcvt.s32.f32 %v656_v14  ;;  %vm583_vm6 = vcmp.lt.s32.totalorder %v3390_v15, 0 }
 0x12c   : > { %vm2680_vm4 = vcmp.lt.s32.totalorder %v2679_v55, 0  ;;  %v924_v29 = vand.u32 31, %v922_v30  ;;  %v3598_v48 = vshrl.u32 %v799_v31, 5  ;;  %v3600_v1 = vand.u32 31, %v799_v31 }
 0x12d   : > { %v3587_v21 = vsub.s32 %v538_v50, %v541_v12  ;;  %v1085_v32 = vsel %vm2680_vm4, 0, %v2679_v55  ;;  %v3595_v50 = vadd.s32 1, %v2665_v22  ;;  %v664_v41 = vmul.f32 %v663_v35, %v661_v26 }
 0x12e   : > { %v1090_v56 = vsub.s32 4294967266, %v1085_v32  ;;  %v925_v46 = vsub.s32 32, %v924_v29  ;;  %v667_v20 = vsub.s32 4, %v3485_v24  ;;  %v1070_v28 = vadd.s32 %v3509_v53, %v3506_v38 }
 0x12f   : > { %v544_v27 = vsub.s32 0, %v3587_v21  ;;  %v1086_v62 = vsub.s32 32, %v1085_v32  ;;  %v918_v6 = vor.u32 8388608, %v917_v34  ;;  %vm3611_vm7 = vcmp.le.f32.partialorder %v581_v18, 0.7853982 }
 0x130   : > { %v1091_v42 = vadd.s32 127, %v1090_v56  ;;  %v928_v57 = vshrl.u32 %v3138_v45, %v925_v46  ;;  %v931_v59 = vshrl.u32 %v3139_v47, %v925_v46  ;;  %v934_v5 = vshrl.u32 %v3140_v49, %v925_v46 }
 0x131   : > { %v2658_v60 = vmin.u32 %v544_v27, %v3587_v21  ;;  %v937_v10 = vshrl.u32 %v3141_v54, %v925_v46  ;;  %v665_v14 = vxor.u32 2147483648, %v664_v41  ;;  %v927_v38 = vshll.u32 %v3137_v43, %v924_v29 }
 0x132   : > { %v930_v53 = vshll.u32 %v3138_v45, %v924_v29  ;;  %v923_v22 = vshrl.u32 %v922_v30, 5  ;;  %v933_v26 = vshll.u32 %v3139_v47, %v924_v29  ;;  %v936_v27 = vshll.u32 %v3140_v49, %v924_v29 }
 0x133   : > { %v546_v52 = vclz %v2658_v60  ;;  %v940_v31 = vshrl.u32 %v3142_v58, %v925_v46  ;;  %v1092_v35 = vshll.u32 %v1091_v42, 23  ;;  %v929_v18 = vor.u32 %v928_v57, %v927_v38 }
 0x134   : > { %v932_v60 = vor.u32 %v931_v59, %v930_v53  ;;  %v1088_v34 = vshrl.u32 %v1070_v28, %v1086_v62  ;;  %v938_v8 = vor.u32 %v937_v10, %v936_v27  ;;  %v939_v39 = vshll.u32 %v3141_v54, %v924_v29 }
 0x135   : > { %v2659_v55 = vadd.s32 4294967294, %v546_v52  ;;  %v935_v52 = vor.u32 %v934_v5, %v933_v26  ;;  %v3624_v33 = vsub.s32 32, %v3600_v1  ;;  %v3629_v30 = vsel %vm583_vm6, %v667_v20, %v3485_v24 }
 0x136   : > { %v1100_v51 = vsub.s32 4, %v3553_v40  ;;  %v958_v42 = vshll.u32 %v918_v6, 8  ;;  %v941_v28 = vor.u32 %v940_v31, %v939_v39  ;;  %vm942_vm9 = vcmp.lt.s32.totalorder %v923_v22, 1 }
 0x137   : > { %vm2660_vm8 = vcmp.lt.s32.totalorder %v2659_v55, 0  ;;  %v666_v29 = vsel %vm583_vm6, %v665_v14, %v664_v41  ;;  %v1093_v59 = vor.u32 4788187, %v1092_v35  ;;  %vm945_vm10 = vcmp.lt.s32.totalorder %v923_v22, 4 }
 0x138   : > { %v3620_v56 = vsel %vm2660_vm8, 0, %v2659_v55  ;;  %v1087_v55 = vshll.u32 %v3567_v11, %v1085_v32  ;;  %v950_v62 = vsel %vm942_vm9, %v929_v18, %v932_v60  ;;  %vm944_vm11 = vcmp.lt.s32.totalorder %v923_v22, 3 }
 0x139   : > { %v554_v57 = vsub.s32 4294967266, %v3620_v56  ;;  %v947_v24 = vsel %vm945_vm10, %v935_v52, 2102212464  ;;  %v951_v20 = vsel %vm945_vm10, %v938_v8, 920167782  ;;  %v926_v10 = vshrl.u32 %v3137_v43, %v925_v46 }
 0x13a   : > { %v1089_v5 = vor.u32 %v1088_v34, %v1087_v55  ;;  %vm943_vm13 = vcmp.lt.s32.totalorder %v923_v22, 2  ;;  %v952_v6 = vsel %vm944_vm11, %v935_v52, %v951_v20  ;;  %v954_v11 = vsel %vm942_vm9, %v932_v60, %v935_v52 }
 0x13b   : > { %v669_v32 = vsel %vm3611_vm7, %v3390_v15, %v666_v29  ;;  %v555_v39 = vadd.s32 127, %v554_v57  ;;  %v953_v41 = vsel %vm943_vm13, %v950_v62, %v952_v6  ;;  %v955_v14 = vsel %vm945_vm10, %v941_v28, 1326507024 }
 0x13c   : > { %vm695_vm15 = vcmp.gt.s32.totalorder %v3595_v50, 0  ;;  %v1094_v38 = vand.u32 2147483647, %v1093_v59  ;;  %v946_v53 = vsel %vm942_vm9, %v926_v10, %v929_v18  ;;  %v948_v26 = vsel %vm944_vm11, %v932_v60, %v947_v24 }
 0x13d   : > { %v956_v27 = vsel %vm944_vm11, %v938_v8, %v955_v14  ;;  %vm1016_vm0 = vcmp.lt.s32.totalorder %v3394_v19, 0  ;;  %v550_v46 = vsub.s32 32, %v3620_v56  ;;  %v1096_v52 = vcvt.s32.f32 %v1089_v5 }
 0x13e   : > { %v957_v31 = vsel %vm943_vm13, %v954_v11, %v956_v27  ;;  %v3648_v35 = vmul.u32.u64.low %v958_v42, %v953_v41  ;;  %v3649_v34 = vmul.u32.u64.high %v958_v42, %v953_v41, %v3648_v35  ;;  %v534_v55 = vadd.s32 %v3557_v2, %v3565_v16 }
 0x13f   : > { %v3654_v57 = vmul.u32.u64.low %v958_v42, %v957_v31  ;;  %v3655_v28 = vmul.u32.u64.high %v958_v42, %v957_v31, %v3654_v57  ;;  %2963 = vcosq.f32 %v669_v32  ;;  %v556_v18 = vshll.u32 %v555_v39, 23 }
 0x140   : > { %v949_v8 = vsel %vm943_vm13, %v946_v53, %v948_v26  ;;  %v4968_v60 = vand.u32 2147483647, %v3540_v17  ;;  %2965 = vsinq.f32 %v669_v32  ;;  %vm3661_vm1 = vcmp.le.f32.partialorder %v1014_v25, 0.7853982 }
 0x141   : > { %v1097_v59 = vmul.f32 %v1096_v52, %v1094_v38  ;;  %v551_v2 = vshll.u32 %v3587_v21, %v3620_v56  ;;  %v805_v16 = vshrl.u32 %v3138_v45, %v3624_v33  ;;  %v552_v62 = vshrl.u32 %v534_v55, %v550_v46 }
 0x142   : > { %v968_v22 = vadd.s32 1, %v3649_v34  ;;  %v808_v5 = vshrl.u32 %v3139_v47, %v3624_v33  ;;  %v814_v24 = vshrl.u32 %v3141_v54, %v3624_v33  ;;  %v965_v25 = vmul.u32 %v958_v42, %v949_v8 }
 0x143   : > { %vm967_vm2 = vc.u32 %v3655_v28, %v3648_v35  ;;  %v804_v20 = vshll.u32 %v3137_v43, %v3600_v1  ;;  %v811_v21 = vshrl.u32 %v3140_v49, %v3624_v33  ;;  %v557_v56 = vor.u32 4788187, %v556_v18 }
 0x144   : > { %v969_v10 = vsel %vm967_vm2, %v968_v22, %v3649_v34  ;;  %v807_v6 = vshll.u32 %v3138_v45, %v3600_v1  ;;  %v813_v11 = vshll.u32 %v3140_v49, %v3600_v1  ;;  %v794_v42 = vand.u32 8388607, %v4968_v60 }
 0x145   : > { %v970_v32 = vadd.s32 %v969_v10, %v965_v25  ;;  %v3687_v39 = vor.u32 %v805_v16, %v804_v20  ;;  %v810_v41 = vshll.u32 %v3139_v47, %v3600_v1  ;;  %vm901_vm3 = vcmp.eq.f32.partialorder %v3413_v36, 0.0 }
 0x146   : > { %v3692_v14 = vor.u32 %v808_v5, %v807_v6  ;;  %v815_v38 = vor.u32 %v814_v24, %v813_v11  ;;  %v816_v53 = vshll.u32 %v3141_v54, %v3600_v1  ;;  %v817_v26 = vshrl.u32 %v3142_v58, %v3624_v33 }
 0x147   : > { %v1101_v27 = vsel %vm1016_vm0, %v1100_v51, %v3553_v40  ;;  %v553_v46 = vor.u32 %v552_v62, %v551_v2  ;;  %v971_v31 = vadd.s32 536870912, %v970_v32  ;;  %v812_v34 = vor.u32 %v811_v21, %v810_v41 }
 0x148   : > { %v696_v52 = vsel %vm695_vm15, %v3595_v50, 0  ;;  %v670_v1 = vsel %vm3611_vm7, 0, %v3629_v30  ;;  %v1098_v55 = vxor.u32 2147483648, %v1097_v59  ;;  %v818_v57 = vor.u32 %v817_v26, %v816_v53 }
 0x149   : > { %v558_v18 = vand.u32 2147483647, %v557_v56  ;;  %v3709_v8 = vshrl.u32 %v971_v31, 30  ;;  %vm819_vm4 = vcmp.lt.s32.totalorder %v3598_v48, 1  ;;  %vm822_vm5 = vcmp.lt.s32.totalorder %v3598_v48, 4  ;;  %v2964_v51 = vpop.eup %2963 }
 0x14a   : > { %v1103_v40 = vsel %vm3661_vm1, 0, %v1101_v27  ;;  %v795_v2 = vor.u32 8388608, %v794_v42  ;;  %v827_v50 = vsel %vm819_vm4, %v3687_v39, %v3692_v14  ;;  %v828_v12 = vsel %vm822_vm5, %v815_v38, 920167782  ;;  %v2966_v30 = vpop.eup %2965 }
 0x14b   : > { %v560_v16 = vcvt.s32.f32 %v553_v46  ;;  %v973_v62 = vshll.u32 %v3709_v8, 30  ;;  %vm821_vm6 = vcmp.lt.s32.totalorder %v3598_v48, 3  ;;  %v831_v22 = vsel %vm819_vm4, %v3692_v14, %v812_v34 }
 0x14c   : > { %v1099_v5 = vsel %vm1016_vm0, %v1098_v55, %v1097_v59  ;;  %vm820_vm7 = vcmp.lt.s32.totalorder %v3598_v48, 2  ;;  %v829_v24 = vsel %vm821_vm6, %v812_v34, %v828_v12  ;;  %v832_v25 = vsel %vm822_vm5, %v818_v57, 1326507024 }
 0x14d   : > { %v561_v20 = vmul.f32 %v560_v16, %v558_v18  ;;  %v3733_v21 = vsub.s32 %v970_v32, %v973_v62  ;;  %v830_v56 = vsel %vm820_vm7, %v827_v50, %v829_v24  ;;  %v833_v10 = vsel %vm821_vm6, %v815_v38, %v832_v25 }
 0x14e   : > { %v3739_v6 = vand.u32 31, %v696_v52  ;;  %vm480_vm8 = vcmp.lt.s32.totalorder %v3377_v7, 0  ;;  %v834_v59 = vsel %vm820_vm7, %v831_v22, %v833_v10  ;;  %v3744_v11 = vshll.u32 %v795_v2, 8 }
 0x14f   : > { %v3746_v42 = vshrl.u32 %v696_v52, 5  ;;  %v674_v41 = vand.u32 3, %v670_v1  ;;  %v1107_v32 = vadd.s32 3, %v1103_v40  ;;  %v4991_v53 = vand.u32 2147483647, %v3377_v7 }
 0x150   : > { %v976_v38 = vsub.s32 0, %v3733_v21  ;;  %v1102_v27 = vsel %vm3661_vm1, %v3394_v19, %v1099_v5  ;;  %v3759_v46 = vmul.u32.u64.low %v3744_v11, %v830_v56  ;;  %v3760_v31 = vmul.u32.u64.high %v3744_v11, %v830_v56, %v3759_v46 }
 0x151   : > { %vm3750_vm9 = vcmp.le.f32.partialorder %v4991_v53, 0.7853982  ;;  %v905_v52 = vsel %vm901_vm3, 1.0, %v3413_v36  ;;  %v562_v1 = vxor.u32 2147483648, %v561_v20  ;;  %v3772_v40 = vsub.s32 32, %v3739_v6 }
 0x152   : > { %v2674_v55 = vmin.u32 %v976_v38, %v3733_v21  ;;  %v3768_v57 = vmul.u32.u64.low %v3744_v11, %v834_v59  ;;  %v3769_v18 = vmul.u32.u64.high %v3744_v11, %v834_v59, %v3768_v57  ;;  %v677_v29 = vxor.u32 2147483648, %v2966_v30 }
 0x153   : > { %v680_v2 = vxor.u32 2147483648, %v2964_v51  ;;  %v3774_v50 = vmul.f32 3.1415927, %v905_v52  ;;  %vm675_vm10 = vcmp.lt.s32.totalorder %v674_v41, 2  ;;  %vm676_vm11 = vcmp.eq.s32.totalorder %v674_v41, 0 }
 0x154   : > { %vm679_vm13 = vcmp.eq.s32.totalorder %v674_v41, 2  ;;  %v978_v12 = vclz %v2674_v55  ;;  %2967 = vcosq.f32 %v1102_v27  ;;  %v3776_v16 = vand.u32 3, %v1107_v32 }
 0x155   : > { %vm912_vm15 = vcmp.lt.s32.totalorder %v3450_v44, 0  ;;  %v824_v62 = vsel %vm822_vm5, %v812_v34, 2102212464  ;;  %2969 = vsinq.f32 %v1102_v27  ;;  %v563_v22 = vsel %vm480_vm8, %v562_v1, %v561_v20 }
 0x156   : > { %v2675_v5 = vadd.s32 4294967294, %v978_v12  ;;  %v803_v24 = vshrl.u32 %v3137_v43, %v3624_v33  ;;  %vm673_vm0 = vweird.f32 %v3390_v15  ;;  %v678_v25 = vsel %vm676_vm11, %v2964_v51, %v677_v29 }
 0x157   : > { %v681_v56 = vsel %vm679_vm13, %v680_v2, %v2966_v30  ;;  %v564_v10 = vsub.s32 4, %v3583_v61  ;;  %v1225_v59 = vand.u32 2139095040, %v3774_v50  ;;  %v966_v32 = vadd.s32 %v3648_v35, %v3655_v28 }
 0x158   : > { %vm2676_vm1 = vcmp.lt.s32.totalorder %v2675_v5, 0  ;;  %v823_v34 = vsel %vm819_vm4, %v803_v24, %v3687_v39  ;;  %v825_v33 = vsel %vm821_vm6, %v3692_v14, %v824_v62  ;;  %v566_v51 = vsel %vm3750_vm9, %v3377_v7, %v563_v22 }
 0x159   : > { %v981_v30 = vsel %vm2676_vm1, 0, %v2675_v5  ;;  %v845_v20 = vadd.s32 1, %v3760_v31  ;;  %v1226_v53 = vshrl.u32 %v1225_v59, 23  ;;  %v996_v35 = vsub.s32 4, %v3709_v8 }
 0x15a   : > { %v982_v38 = vsub.s32 32, %v981_v30  ;;  %v986_v27 = vsub.s32 4294967266, %v981_v30  ;;  %vm844_vm2 = vc.u32 %v3769_v18, %v3759_v46  ;;  %v682_v28 = vsel %vm675_vm10, %v678_v25, %v681_v56 }
 0x15b   : > { %v565_v39 = vsel %vm480_vm8, %v564_v10, %v3583_v61  ;;  %v826_v14 = vsel %vm820_vm7, %v823_v34, %v825_v33  ;;  %v2685_v52 = vadd.s32 4294967169, %v1226_v53  ;;  %2971 = vcosq.f32 %v566_v51 }
 0x15c   : > { %v983_v1 = vshll.u32 %v3733_v21, %v981_v30  ;;  %v984_v55 = vshrl.u32 %v966_v32, %v982_v38  ;;  %v987_v57 = vadd.s32 127, %v986_v27  ;;  %2973 = vsinq.f32 %v566_v51 }
 0x15d   : > { %v846_v29 = vsel %vm844_vm2, %v845_v20, %v3760_v31  ;;  %v4967_v2 = vand.u32 2147483647, %v3774_v50  ;;  %v1232_v41 = vadd.s32 1, %v2685_v52  ;;  %v997_v61 = vsel %vm912_vm15, %v996_v35, %v3709_v8 }
 0x15e   : > { %v985_v12 = vor.u32 %v984_v55, %v983_v1  ;;  %v988_v62 = vshll.u32 %v987_v57, 23  ;;  %v842_v48 = vmul.u32 %v3744_v11, %v826_v14  ;;  %v2968_v22 = vpop.eup %2967  ;;  %2975 = vrcp.f32 %v3394_v19 }
 0x15f   : > { %v567_v21 = vsel %vm3750_vm9, 0, %v565_v39  ;;  %v4994_v5 = vand.u32 2147483647, %v3450_v44  ;;  %vm1233_vm5 = vcmp.gt.s32.totalorder %v1232_v41, 0  ;;  %v2970_v24 = vpop.eup %2969  ;;  %v683_v25 = vsel %vm673_vm0, nan, %v682_v28 }
 0x160   : > { %v989_v8 = vor.u32 4788187, %v988_v62  ;;  %v3827_v56 = vadd.s32 %v846_v29, %v842_v48  ;;  %v1234_v11 = vsel %vm1233_vm5, %v1232_v41, 0  ;;  %2977 = vrcp.f32 %v3450_v44 }
 0x161   : > { %vm3821_vm4 = vcmp.le.f32.partialorder %v4994_v5, 0.7853982  ;;  %v1229_v26 = vand.u32 8388607, %v4967_v2  ;;  %v1236_v59 = vand.u32 31, %v1234_v11  ;;  %vm1110_vm6 = vcmp.eq.s32.totalorder %v3776_v16, 0 }
 0x162   : > { %v999_v10 = vsel %vm3821_vm4, 0, %v997_v61  ;;  %v3835_v32 = vand.u32 3, %v567_v21  ;;  %v990_v34 = vand.u32 2147483647, %v989_v8  ;;  %v992_v15 = vcvt.s32.f32 %v985_v12 }
 0x163   : > { %v3837_v33 = vadd.f32 1.0, %v683_v25  ;;  %v1111_v51 = vxor.u32 2147483648, %v2970_v24  ;;  %vm1113_vm7 = vcmp.eq.s32.totalorder %v3776_v16, 2  ;;  %v1114_v30 = vxor.u32 2147483648, %v2968_v22 }
 0x164   : > { %v993_v20 = vmul.f32 %v992_v15, %v990_v34  ;;  %v1003_v53 = vadd.s32 3, %v999_v10  ;;  %v848_v38 = vadd.s32 536870912, %v3827_v56  ;;  %v1237_v27 = vsub.s32 32, %v1236_v59 }
 0x165   : > { %v1230_v35 = vor.u32 8388608, %v1229_v26  ;;  %v3841_v28 = vshrl.u32 %v1234_v11, 5  ;;  %v1239_v39 = vshll.u32 %v3137_v43, %v1236_v59  ;;  %v1242_v14 = vshll.u32 %v3138_v45, %v1236_v59  ;;  %v2972_v52 = vpop.eup %2971 }
 0x166   : > { %vm573_vm8 = vcmp.eq.s32.totalorder %v3835_v32, 0  ;;  %vm576_vm9 = vcmp.eq.s32.totalorder %v3835_v32, 2  ;;  %v994_v1 = vxor.u32 2147483648, %v993_v20  ;;  %v1240_v55 = vshrl.u32 %v3138_v45, %v1237_v27  ;;  %v2974_v41 = vpop.eup %2973 }
 0x167   : > { %v1243_v57 = vshrl.u32 %v3139_v47, %v1237_v27  ;;  %v1245_v29 = vshll.u32 %v3139_v47, %v1236_v59  ;;  %v1246_v12 = vshrl.u32 %v3140_v49, %v1237_v27  ;;  %v1248_v62 = vshll.u32 %v3140_v49, %v1236_v59 }
 0x168   : > { %v1249_v61 = vshrl.u32 %v3141_v54, %v1237_v27  ;;  %v1252_v48 = vshrl.u32 %v3142_v58, %v1237_v27  ;;  %v995_v21 = vsel %vm912_vm15, %v994_v1, %v993_v20  ;;  %v1241_v5 = vor.u32 %v1240_v55, %v1239_v39  ;;  %v3857_v11 = vpop.eup %2975 }
 0x169   : > { %v1244_v25 = vor.u32 %v1243_v57, %v1242_v14  ;;  %v1251_v8 = vshll.u32 %v3141_v54, %v1236_v59  ;;  %v3861_v10 = vsel %vm1113_vm7, %v1114_v30, %v2970_v24  ;;  %v998_v26 = vsel %vm3821_vm4, %v3450_v44, %v995_v21 }
 0x16a   : > { %v1247_v34 = vor.u32 %v1246_v12, %v1245_v29  ;;  %v1250_v15 = vor.u32 %v1249_v61, %v1248_v62  ;;  %v3868_v2 = vsel %vm1110_vm6, %v2968_v22, %v1111_v51  ;;  %vm572_vm10 = vcmp.lt.s32.totalorder %v3835_v32, 2  ;;  %v3871_v39 = vpop.eup %2977 }
 0x16b   : > { %v577_v20 = vxor.u32 2147483648, %v2972_v52  ;;  %2979 = vcosq.f32 %v998_v26  ;;  %v1253_v59 = vor.u32 %v1252_v48, %v1251_v8  ;;  %v574_v14 = vxor.u32 2147483648, %v2974_v41 }
 0x16c   : > { %2981 = vsinq.f32 %v998_v26  ;;  %v3873_v24 = vand.u32 3, %v1003_v53  ;;  %vm1254_vm11 = vcmp.lt.s32.totalorder %v3841_v28, 1  ;;  %v3876_v31 = vshrl.u32 %v848_v38, 30 }
 0x16d   : > { %vm1257_vm13 = vcmp.lt.s32.totalorder %v3841_v28, 4  ;;  %v1262_v22 = vsel %vm1254_vm11, %v1241_v5, %v1244_v25  ;;  %v1270_v51 = vshll.u32 %v1230_v35, 8  ;;  %v1238_v30 = vshrl.u32 %v3137_v43, %v1237_v27 }
 0x16e   : > { %vm1256_vm15 = vcmp.lt.s32.totalorder %v3841_v28, 3  ;;  %v1259_v1 = vsel %vm1257_vm13, %v1247_v34, 2102212464  ;;  %v1263_v55 = vsel %vm1257_vm13, %v1250_v15, 920167782  ;;  %vm1255_vm0 = vcmp.lt.s32.totalorder %v3841_v28, 2 }
 0x16f   : > { %v1264_v53 = vsel %vm1256_vm15, %v1247_v34, %v1263_v55  ;;  %v1266_v57 = vsel %vm1254_vm11, %v1244_v25, %v1247_v34  ;;  %v1267_v38 = vsel %vm1257_vm13, %v1253_v59, 1326507024  ;;  %vm570_vm1 = vweird.f32 %v3377_v7 }
 0x170   : > { %v575_v29 = vsel %vm573_vm8, %v2972_v52, %v574_v14  ;;  %v578_v35 = vsel %vm576_vm9, %v577_v20, %v2974_v41  ;;  %v1258_v27 = vsel %vm1254_vm11, %v1238_v30, %v1241_v5  ;;  %v1265_v12 = vsel %vm1255_vm0, %v1262_v22, %v1264_v53 }
 0x171   : > { %v1260_v62 = vsel %vm1256_vm15, %v1244_v25, %v1259_v1  ;;  %v1268_v61 = vsel %vm1256_vm15, %v1250_v15, %v1267_v38  ;;  %v3895_v48 = vmul.u32.u64.low %v1270_v51, %v1265_v12  ;;  %v3896_v21 = vmul.u32.u64.high %v1270_v51, %v1265_v12, %v3895_v48 }
 0x172   : > { %v850_v8 = vshll.u32 %v3876_v31, 30  ;;  %v1269_v52 = vsel %vm1255_vm0, %v1266_v57, %v1268_v61  ;;  %v701_v41 = vshll.u32 %v3137_v43, %v3739_v6  ;;  %v702_v5 = vshrl.u32 %v3138_v45, %v3772_v40 }
 0x173   : > { %vm1006_vm2 = vcmp.eq.s32.totalorder %v3873_v24, 0  ;;  %v3907_v26 = vmul.u32.u64.low %v1270_v51, %v1269_v52  ;;  %v3908_v25 = vmul.u32.u64.high %v1270_v51, %v1269_v52, %v3907_v26  ;;  %v704_v34 = vshll.u32 %v3138_v45, %v3739_v6 }
 0x174   : > { %v705_v15 = vshrl.u32 %v3139_v47, %v3772_v40  ;;  %v579_v20 = vsel %vm572_vm10, %v575_v29, %v578_v35  ;;  %v1261_v59 = vsel %vm1255_vm0, %v1258_v27, %v1260_v62  ;;  %v710_v14 = vshll.u32 %v3140_v49, %v3739_v6 }
 0x175   : > { %v711_v22 = vshrl.u32 %v3141_v54, %v3772_v40  ;;  %v2980_v30 = vpop.eup %2979  ;;  %vm1009_vm4 = vcmp.eq.s32.totalorder %v3873_v24, 2  ;;  %v1280_v1 = vadd.s32 1, %v3896_v21  ;;  %v707_v55 = vshll.u32 %v3139_v47, %v3739_v6 }
 0x176   : > { %v708_v32 = vshrl.u32 %v3140_v49, %v3772_v40  ;;  %v2982_v53 = vpop.eup %2981  ;;  %vm1005_vm5 = vcmp.lt.s32.totalorder %v3873_v24, 2  ;;  %v3930_v28 = vsub.s32 %v3827_v56, %v850_v8  ;;  %v4997_v57 = vand.u32 2147483647, %v3573_v23 }
 0x177   : > { %v713_v29 = vshll.u32 %v3141_v54, %v3739_v6  ;;  %v714_v35 = vshrl.u32 %v3142_v58, %v3772_v40  ;;  %v1277_v27 = vmul.u32 %v1270_v51, %v1261_v59  ;;  %vm1279_vm6 = vc.u32 %v3908_v25, %v3895_v48 }
 0x178   : > { %v691_v38 = vand.u32 8388607, %v4997_v57  ;;  %v703_v12 = vor.u32 %v702_v5, %v701_v41  ;;  %v706_v62 = vor.u32 %v705_v15, %v704_v34  ;;  %vm1109_vm7 = vcmp.lt.s32.totalorder %v3776_v16, 2 }
 0x179   : > { %v1007_v61 = vxor.u32 2147483648, %v2982_v53  ;;  %v1010_v56 = vxor.u32 2147483648, %v2980_v30  ;;  %v1281_v8 = vsel %vm1279_vm6, %v1280_v1, %v3896_v21  ;;  %v712_v52 = vor.u32 %v711_v22, %v710_v14 }
 0x17a   : > { %v580_v26 = vsel %vm570_vm1, nan, %v579_v20  ;;  %v1282_v6 = vadd.s32 %v1281_v8, %v1277_v27  ;;  %v700_v57 = vshrl.u32 %v3137_v43, %v3772_v40  ;;  %v709_v51 = vor.u32 %v708_v32, %v707_v55 }
 0x17b   : > { %v853_v59 = vsub.s32 0, %v3930_v28  ;;  %v692_v60 = vor.u32 8388608, %v691_v38  ;;  %v715_v41 = vor.u32 %v714_v35, %v713_v29  ;;  %vm716_vm8 = vcmp.lt.s32.totalorder %v3746_v42, 1 }
 0x17c   : > { %v1283_v5 = vadd.s32 536870912, %v1282_v6  ;;  %vm717_vm9 = vcmp.lt.s32.totalorder %v3746_v42, 2  ;;  %vm719_vm10 = vcmp.lt.s32.totalorder %v3746_v42, 4  ;;  %v724_v7 = vsel %vm716_vm8, %v703_v12, %v706_v62 }
 0x17d   : > { %v1008_v21 = vsel %vm1006_vm2, %v2980_v30, %v1007_v61  ;;  %v1011_v40 = vsel %vm1009_vm4, %v1010_v56, %v2982_v53  ;;  %vm718_vm11 = vcmp.lt.s32.totalorder %v3746_v42, 3  ;;  %v725_v34 = vsel %vm719_vm10, %v712_v52, 920167782  ;;  %v1341_v42 = vpop.permute.xlu0 %1340 }
 0x17e   : > { %v3957_v15 = vshrl.u32 %v1283_v5, 30  ;;  %v721_v20 = vsel %vm719_vm10, %v709_v51, 2102212464  ;;  %v726_v14 = vsel %vm718_vm11, %v709_v51, %v725_v34  ;;  %v728_v22 = vsel %vm716_vm8, %v706_v62, %v709_v51 }
 0x17f   : > { %v890_v1 = vadd.f32 1.0, %v580_v26  ;;  %v727_v55 = vsel %vm717_vm9, %v724_v7, %v726_v14  ;;  %v729_v32 = vsel %vm719_vm10, %v715_v41, 1326507024  ;;  %v732_v38 = vshll.u32 %v692_v60, 8  ;;  %v3974_v26 = vpop.permute.xlu1 %1437 }
 0x180   : > { %v1012_v30 = vsel %vm1005_vm5, %v1008_v21, %v1011_v40  ;;  %v2670_v53 = vmin.u32 %v853_v59, %v3930_v28  ;;  %v720_v29 = vsel %vm716_vm8, %v700_v57, %v703_v12  ;;  %v730_v35 = vsel %vm718_vm11, %v712_v52, %v729_v32 }
 0x181   : > { %v722_v27 = vsel %vm718_vm11, %v706_v62, %v721_v20  ;;  %v731_v61 = vsel %vm717_vm9, %v728_v22, %v730_v35  ;;  %v3970_v56 = vmul.u32.u64.low %v732_v38, %v727_v55  ;;  %v3971_v8 = vmul.u32.u64.high %v732_v38, %v727_v55, %v3970_v56 }
 0x182   : > { %v1116_v60 = vsel %vm1109_vm7, %v3868_v2, %v3861_v10  ;;  %v1285_v24 = vshll.u32 %v3957_v15, 30  ;;  %v3981_v51 = vmul.u32.u64.low %v732_v38, %v731_v61  ;;  %v3982_v12 = vmul.u32.u64.high %v732_v38, %v731_v61, %v3981_v51 }
 0x183   : > { %vm1106_vm13 = vweird.f32 %v3394_v19  ;;  %v894_v62 = vmul.f32 0.5, %v890_v1  ;;  %vm1002_vm15 = vweird.f32 %v3450_v44  ;;  %vm900_vm0 = vcmp.eq.f32.partialorder %v3445_v37, 0.0  ;;  %v1346_v34 = vpop.permute.xlu1 %1345 }
 0x184   : > { %v1013_v52 = vsel %vm1002_vm15, nan, %v1012_v30  ;;  %v855_v57 = vclz %v2670_v53  ;;  %v723_v59 = vsel %vm717_vm9, %v720_v29, %v722_v27  ;;  %v904_v16 = vsel %vm900_vm0, 1.0, %v3445_v37 }
 0x185   : > { %v895_v2 = vmul.f32 0.5, %v3837_v33  ;;  %v1117_v10 = vsel %vm1106_vm13, nan, %v1116_v60  ;;  %v742_v41 = vadd.s32 1, %v3971_v8  ;;  %v3994_v19 = vmul.f32 3.1415927, %v904_v16 }
 0x186   : > { %v3996_v5 = vsub.s32 %v1282_v6, %v1285_v24  ;;  %vm741_vm1 = vc.u32 %v3982_v12, %v3970_v56  ;;  %v1327_v44 = vmul.f32 %v3871_v39, %v1013_v52  ;;  %v739_v7 = vmul.u32 %v732_v38, %v723_v59 }
 0x187   : > { %v743_v21 = vsel %vm741_vm1, %v742_v41, %v3971_v8  ;;  %v1121_v40 = vand.u32 2139095040, %v3994_v19  ;;  %v1329_v33 = vmul.f32 %v3857_v11, %v1117_v10  ;;  %v1358_v20 = vmul.f32 %v1341_v42, %v894_v62 }
 0x188   : > { %v2671_v14 = vadd.s32 4294967294, %v855_v57  ;;  %v1359_v22 = vmul.f32 %v1346_v34, %v895_v2  ;;  %v744_v1 = vadd.s32 %v743_v21, %v739_v7  ;;  %v1288_v6 = vsub.s32 0, %v3996_v5 }
 0x189   : > { %v1122_v55 = vshrl.u32 %v1121_v40, 23  ;;  %v1334_v32 = vsel %vm898_vm14, 1.0, %v1327_v44  ;;  %v1335_v38 = vsel %vm899_vm12, 1.0, %v1329_v33  ;;  %vm1366_vm4 = vcmask 130048  }
 0x18a   : > { %v745_v39 = vadd.s32 536870912, %v744_v1  ;;  %v4009_v30 = vmul.f32 %v1358_v20, %v1334_v32  ;;  %vm2672_vm2 = vcmp.lt.s32.totalorder %v2671_v14, 0  ;;  %v4011_v29 = vmul.f32 %v1359_v22, %v1335_v38 }
 0x18b   : > { %v2681_v53 = vadd.s32 4294967169, %v1122_v55  ;;  %v2686_v35 = vmin.u32 %v1288_v6, %v3996_v5  ;;  %v4016_v27 = vsel %vm2672_vm2, 0, %v2671_v14  ;;  %v1118_v62 = vand.u32 2147483647, %v3994_v19 }
 0x18c   : > { %v4013_v11 = vshrl.u32 %v745_v39, 30  ;;  %v1367_v9 = vsel %vm1366_vm4, %v4009_v30, -inf  ;;  %v1370_v60 = vsel %vm1366_vm4, %v4011_v29, -inf  ;;  %v863_v24 = vsub.s32 4294967266, %v4016_v27 }
 0x18d   : > { %v1128_v61 = vadd.s32 1, %v2681_v53  ;;  %1368 = vmax.xlane.f32.xlu0 %v1367_v9  ;;  %v1290_v51 = vclz %v2686_v35  ;;  %1371 = vmax.xlane.f32.xlu1 %v1370_v60  ;;  %v859_v16 = vsub.s32 32, %v4016_v27  ;;  %v1125_v44 = vand.u32 8388607, %v1118_v62 }
 0x18e   : > { %v747_v3 = vshll.u32 %v4013_v11, 30  ;;  %v864_v10 = vadd.s32 127, %v863_v24  ;;  %v843_v39 = vadd.s32 %v3759_v46, %v3769_v18  ;;  %vm789_vm11 = vcmp.lt.s32.totalorder %v3540_v17, 0 }
 0x18f   : > { %vm1129_vm12 = vcmp.gt.s32.totalorder %v1128_v61, 0  ;;  %v2687_v41 = vadd.s32 4294967294, %v1290_v51  ;;  %vm686_vm13 = vcmp.lt.s32.totalorder %v3573_v23, 0  ;;  %vm1224_vm2 = vcmp.lt.s32.totalorder %v3774_v50, 0 }
 0x190   : > { %v4021_v8 = vsub.s32 %v744_v1, %v747_v3  ;;  %v1130_v57 = vsel %vm1129_vm12, %v1128_v61, 0  ;;  %v861_v9 = vshrl.u32 %v843_v39, %v859_v16  ;;  %v865_v60 = vshll.u32 %v864_v10, 23 }
 0x191   : > { %v1132_v59 = vand.u32 31, %v1130_v57  ;;  %v1131_v38 = vshrl.u32 %v1130_v57, 5  ;;  %vm2688_vm14 = vcmp.lt.s32.totalorder %v2687_v41, 0  ;;  %v740_v16 = vadd.s32 %v3970_v56, %v3982_v12 }
 0x192   : > { %v750_v52 = vsub.s32 0, %v4021_v8  ;;  %v1293_v51 = vsel %vm2688_vm14, 0, %v2687_v41 }
 0x193   : > { %v1133_v42 = vsub.s32 32, %v1132_v59  ;;  %v1135_v21 = vshll.u32 %v3137_v43, %v1132_v59  ;;  %v1138_v40 = vshll.u32 %v3138_v45, %v1132_v59  ;;  %v1141_v34 = vshll.u32 %v3139_v47, %v1132_v59 }
 0x194   : > { %v2666_v2 = vmin.u32 %v750_v52, %v4021_v8  ;;  %v1144_v14 = vshll.u32 %v3140_v49, %v1132_v59  ;;  %v1147_v22 = vshll.u32 %v3141_v54, %v1132_v59  ;;  %vm1150_vm6 = vcmp.lt.s32.totalorder %v1131_v38, 1 }
 0x195   : > { %v1136_v33 = vshrl.u32 %v3138_v45, %v1133_v42  ;;  %v1139_v20 = vshrl.u32 %v3139_v47, %v1133_v42  ;;  %v1142_v6 = vshrl.u32 %v3140_v49, %v1133_v42  ;;  %v1145_v55 = vshrl.u32 %v3141_v54, %v1133_v42 }
 0x196   : > { %v752_v7 = vclz %v2666_v2  ;;  %v1148_v32 = vshrl.u32 %v3142_v58, %v1133_v42  ;;  %v1126_v49 = vor.u32 8388608, %v1125_v44  ;;  %v1134_v54 = vshrl.u32 %v3137_v43, %v1133_v42 }
 0x197   : > { %v1137_v45 = vor.u32 %v1136_v33, %v1135_v21  ;;  %v1140_v53 = vor.u32 %v1139_v20, %v1138_v40  ;;  %v1143_v35 = vor.u32 %v1142_v6, %v1141_v34  ;;  %v1146_v3 = vor.u32 %v1145_v55, %v1144_v14 }
 0x198   : > { %v2667_v1 = vadd.s32 4294967294, %v752_v7  ;;  %v1149_v61 = vor.u32 %v1148_v32, %v1147_v22  ;;  %vm1152_vm7 = vcmp.lt.s32.totalorder %v1131_v38, 3  ;;  %vm1153_vm8 = vcmp.lt.s32.totalorder %v1131_v38, 4 }
 0x199   : > { %v1158_v18 = vsel %vm1150_vm6, %v1137_v45, %v1140_v53  ;;  %v1155_v52 = vsel %vm1153_vm8, %v1143_v35, 2102212464  ;;  %v1159_v57 = vsel %vm1153_vm8, %v1146_v3, 920167782  ;;  %v1162_v59 = vsel %vm1150_vm6, %v1140_v53, %v1143_v35 }
 0x19a   : > { %vm2668_vm5 = vcmp.lt.s32.totalorder %v2667_v1, 0  ;;  %v1163_v2 = vsel %vm1153_vm8, %v1149_v61, 1326507024  ;;  %v1298_v7 = vsub.s32 4294967266, %v1293_v51  ;;  %vm1151_vm9 = vcmp.lt.s32.totalorder %v1131_v38, 2 }
 0x19b   : > { %v755_v47 = vsel %vm2668_vm5, 0, %v2667_v1  ;;  %v1160_v10 = vsel %vm1152_vm7, %v1143_v35, %v1159_v57  ;;  %v1164_v44 = vsel %vm1152_vm7, %v1146_v3, %v1163_v2  ;;  %v1166_v42 = vshll.u32 %v1126_v49, 8 }
 0x19c   : > { %v760_v24 = vsub.s32 4294967266, %v755_v47  ;;  %v756_v58 = vsub.s32 32, %v755_v47  ;;  %v1161_v41 = vsel %vm1151_vm9, %v1158_v18, %v1160_v10  ;;  %v1154_v40 = vsel %vm1150_vm6, %v1134_v54, %v1137_v45 }
 0x19d   : > { %v1156_v34 = vsel %vm1152_vm7, %v1140_v53, %v1155_v52  ;;  %v1165_v33 = vsel %vm1151_vm9, %v1162_v59, %v1164_v44  ;;  %v4058_v56 = vmul.u32.u64.low %v1166_v42, %v1161_v41  ;;  %v4059_v12 = vmul.u32.u64.high %v1166_v42, %v1161_v41, %v4058_v56 }
 0x19e   : > { %v761_v46 = vadd.s32 127, %v760_v24  ;;  %v758_v21 = vshrl.u32 %v740_v16, %v756_v58  ;;  %v4055_v20 = vmul.u32.u64.low %v1166_v42, %v1165_v33  ;;  %v4056_v14 = vmul.u32.u64.high %v1166_v42, %v1165_v33, %v4055_v20 }
 0x19f   : > { %v860_v22 = vshll.u32 %v3930_v28, %v4016_v27  ;;  %v866_v1 = vor.u32 4788187, %v865_v60  ;;  %v757_v6 = vshll.u32 %v4021_v8, %v755_v47  ;;  %v1157_v32 = vsel %vm1151_vm9, %v1154_v40, %v1156_v34 }
 0x1a0   : > { %v762_v43 = vshll.u32 %v761_v46, 23  ;;  %v1299_v45 = vadd.s32 127, %v1298_v7  ;;  %vm1175_vm10 = vc.u32 %v4056_v14, %v4058_v56  ;;  %v1176_v35 = vadd.s32 1, %v4059_v12 }
 0x1a1   : > { %v862_v39 = vor.u32 %v861_v9, %v860_v22  ;;  %v759_v53 = vor.u32 %v758_v21, %v757_v6  ;;  %v867_v3 = vand.u32 2147483647, %v866_v1  ;;  %v1294_v61 = vsub.s32 32, %v1293_v51 }
 0x1a2   : > { %v763_v55 = vor.u32 4788187, %v762_v43  ;;  %v1173_v24 = vmul.u32 %v1166_v42, %v1157_v32  ;;  %v1177_v54 = vsel %vm1175_vm10, %v1176_v35, %v4059_v12  ;;  %v1278_v27 = vadd.s32 %v3895_v48, %v3908_v25 }
 0x1a3   : > { %v869_v28 = vcvt.s32.f32 %v862_v39  ;;  %v1300_v8 = vshll.u32 %v1299_v45, 23  ;;  %v766_v47 = vcvt.s32.f32 %v759_v53  ;;  %v1295_v18 = vshll.u32 %v3996_v5, %v1293_v51 }
 0x1a4   : > { %v764_v49 = vand.u32 2147483647, %v763_v55  ;;  %v1178_v38 = vadd.s32 %v1177_v54, %v1173_v24  ;;  %v1296_v60 = vshrl.u32 %v1278_v27, %v1294_v61  ;;  %v4998_v51 = vand.u32 2147483647, %v3540_v17 }
 0x1a5   : > { %v870_v9 = vmul.f32 %v869_v28, %v867_v3  ;;  %v1301_v52 = vor.u32 4788187, %v1300_v8  ;;  %v5001_v34 = vand.u32 2147483647, %v3573_v23  ;;  %v873_v6 = vsub.s32 4, %v3876_v31 }
 0x1a6   : > { %v1179_v58 = vadd.s32 536870912, %v1178_v38  ;;  %v767_v46 = vmul.f32 %v766_v47, %v764_v49  ;;  %v1297_v2 = vor.u32 %v1296_v60, %v1295_v18  ;;  %vm4082_vm15 = vcmp.le.f32.partialorder %v4998_v51, 0.7853982 }
 0x1a7   : > { %v871_v59 = vxor.u32 2147483648, %v870_v9  ;;  %v1302_v10 = vand.u32 2147483647, %v1301_v52  ;;  %vm4091_vm1 = vcmp.le.f32.partialorder %v5001_v34, 0.7853982  ;;  %v770_v55 = vsub.s32 4, %v4013_v11 }
 0x1a8   : > { %v4071_v57 = vshrl.u32 %v1179_v58, 30  ;;  %v768_v16 = vxor.u32 2147483648, %v767_v46  ;;  %v1304_v25 = vcvt.s32.f32 %v1297_v2  ;;  %v1174_v45 = vadd.s32 %v4058_v56, %v4056_v14 }
 0x1a9   : > { %v872_v48 = vsel %vm789_vm11, %v871_v59, %v870_v9  ;;  %v5004_v3 = vand.u32 2147483647, %v3774_v50  ;;  %v874_v28 = vsel %vm789_vm11, %v873_v6, %v3876_v31  ;;  %v771_v14 = vsel %vm686_vm13, %v770_v55, %v4013_v11 }
 0x1aa   : > { %v1181_v7 = vshll.u32 %v4071_v57, 30  ;;  %v769_v5 = vsel %vm686_vm13, %v768_v16, %v767_v46  ;;  %v1305_v42 = vmul.f32 %v1304_v25, %v1302_v10  ;;  %v875_v40 = vsel %vm4082_vm15, %v3540_v17, %v872_v48 }
 0x1ab   : > { %v772_v20 = vsel %vm4091_vm1, %v3573_v23, %v769_v5  ;;  %2983 = vcosq.f32 %v875_v40  ;;  %vm4106_vm14 = vcmp.le.f32.partialorder %v5004_v3, 0.7853982  ;;  %v876_v9 = vsel %vm4082_vm15, 0, %v874_v28 }
 0x1ac   : > { %v1182_v43 = vsub.s32 %v1178_v38, %v1181_v7  ;;  %v1306_v22 = vxor.u32 2147483648, %v1305_v42  ;;  %2985 = vcosq.f32 %v772_v20  ;;  %v1308_v38 = vsub.s32 4, %v3957_v15 }
 0x1ad   : > { %2987 = vsinq.f32 %v772_v20  ;;  %v773_v31 = vsel %vm4091_vm1, 0, %v771_v14  ;;  %v880_v11 = vand.u32 3, %v876_v9  ;;  %v1204_v10 = vsub.s32 4, %v4071_v57 }
 0x1ae   : > { %v1184_v41 = vsub.s32 0, %v1182_v43  ;;  %2989 = vsinq.f32 %v875_v40  ;;  %v1307_v39 = vsel %vm1224_vm2, %v1306_v22, %v1305_v42  ;;  %v1309_v2 = vsel %vm1224_vm2, %v1308_v38, %v3957_v15 }
 0x1af   : > { %v1310_v27 = vsel %vm4106_vm14, %v3774_v50, %v1307_v39  ;;  %v777_v7 = vand.u32 3, %v773_v31  ;;  %vm885_vm5 = vcmp.eq.s32.totalorder %v880_v11, 2  ;;  %vm4132_vm6 = vcmp.le.f32.partialorder %v1118_v62, 0.7853982  ;;  %v1351_v31 = vpop.permute.xlu0 %1350 }
 0x1b0   : > { %v2682_v21 = vmin.u32 %v1184_v41, %v1182_v43  ;;  %2991 = vcosq.f32 %v1310_v27  ;;  %v1311_v41 = vsel %vm4106_vm14, 0, %v1309_v2  ;;  %vm1120_vm7 = vcmp.lt.s32.totalorder %v3994_v19, 0 }
 0x1b1   : > { %2993 = vsinq.f32 %v1310_v27  ;;  %vm779_vm8 = vcmp.eq.s32.totalorder %v777_v7, 0  ;;  %vm782_vm9 = vcmp.eq.s32.totalorder %v777_v7, 2  ;;  %v1205_v42 = vsel %vm1120_vm7, %v1204_v10, %v4071_v57 }
 0x1b2   : > { %v1186_v12 = vclz %v2682_v21  ;;  %v1315_v21 = vadd.s32 3, %v1311_v41  ;;  %vm882_vm10 = vcmp.eq.s32.totalorder %v880_v11, 0  ;;  %vm778_vm11 = vcmp.lt.s32.totalorder %v777_v7, 2 }
 0x1b3   : > { %vm881_vm13 = vcmp.lt.s32.totalorder %v880_v11, 2  ;;  %vm776_vm15 = vweird.f32 %v3573_v23  ;;  %vm879_vm1 = vweird.f32 %v3540_v17  ;;  %v1356_v11 = vpop.permute.xlu1 %1355 }
 0x1b4   : > { %v2683_v1 = vadd.s32 4294967294, %v1186_v12  ;;  %v1316_v57 = vand.u32 3, %v1315_v21 }
 0x1b5   : > { %v2984_v47 = vpop.eup %2983 }
 0x1b6   : > { %vm2684_vm12 = vcmp.lt.s32.totalorder %v2683_v1, 0  ;;  %v2986_v58 = vpop.eup %2985  ;;  %v886_v25 = vxor.u32 2147483648, %v2984_v47  ;;  %vm1318_vm2 = vcmp.eq.s32.totalorder %v1316_v57, 0  ;;  %vm1317_vm14 = vcmp.lt.s32.totalorder %v1316_v57, 2 }
 0x1b7   : > { %v1189_v32 = vsel %vm2684_vm12, 0, %v2683_v1  ;;  %v2988_v46 = vpop.eup %2987  ;;  %v783_v48 = vxor.u32 2147483648, %v2986_v58  ;;  %v1207_v1 = vsel %vm4132_vm6, 0, %v1205_v42  ;;  %vm1321_vm12 = vcmp.eq.s32.totalorder %v1316_v57, 2 }
 0x1b8   : > { %v1190_v53 = vsub.s32 32, %v1189_v32  ;;  %v1194_v35 = vsub.s32 4294967266, %v1189_v32  ;;  %v1191_v24 = vshll.u32 %v1182_v43, %v1189_v32  ;;  %v2990_v59 = vpop.eup %2989  ;;  %v780_v43 = vxor.u32 2147483648, %v2988_v46 }
 0x1b9   : > { %v883_v51 = vxor.u32 2147483648, %v2990_v59  ;;  %v784_v34 = vsel %vm782_vm9, %v783_v48, %v2988_v46  ;;  %v887_v62 = vsel %vm885_vm5, %v886_v25, %v2990_v59  ;;  %vm1210_vm9 = vweird.f32 %v3994_v19  ;;  %v4155_v25 = vpop.permute.xlu1 %2326 }
 0x1ba   : > { %v1192_v49 = vshrl.u32 %v1174_v45, %v1190_v53  ;;  %v1195_v54 = vadd.s32 127, %v1194_v35  ;;  %v781_v40 = vsel %vm779_vm8, %v2986_v58, %v780_v43  ;;  %v2992_v20 = vpop.eup %2991  ;;  %v1211_v45 = vadd.s32 3, %v1207_v1  ;;  %5009 = vst [vmem:[#allocation13_spill] sm:$0xff] %v4155_v25 }
 0x1bb   : > { %v2994_v12 = vpop.eup %2993  ;;  %v884_v22 = vsel %vm882_vm10, %v2984_v47, %v883_v51  ;;  %v785_v6 = vsel %vm778_vm11, %v781_v40, %v784_v34  ;;  %v1322_v39 = vxor.u32 2147483648, %v2992_v20 }
 0x1bc   : > { %v1193_v56 = vor.u32 %v1192_v49, %v1191_v24  ;;  %v1196_v8 = vshll.u32 %v1195_v54, 23  ;;  %v888_v55 = vsel %vm881_vm13, %v884_v22, %v887_v62  ;;  %v1319_v32 = vxor.u32 2147483648, %v2994_v12 }
 0x1bd   : > { %v786_v53 = vsel %vm776_vm15, nan, %v785_v6  ;;  %v889_v35 = vsel %vm879_vm1, nan, %v888_v55  ;;  %v1323_v61 = vsel %vm1321_vm12, %v1322_v39, %v2994_v12  ;;  %v1212_v49 = vand.u32 3, %v1211_v45  ;;  %v4157_v41 = vpop.permute.xlu1 %2332 }
 0x1be   : > { %v1197_v60 = vor.u32 4788187, %v1196_v8  ;;  %v1200_v52 = vcvt.s32.f32 %v1193_v56  ;;  %v1320_v3 = vsel %vm1318_vm2, %v2992_v20, %v1319_v32  ;;  %v892_v24 = vadd.f32 1.0, %v786_v53  ;;  %5010 = vst [vmem:[#allocation14_spill] sm:$0xff] %v4157_v41 }
 0x1bf   : > { %v893_v23 = vadd.f32 1.0, %v889_v35  ;;  %v1324_v27 = vsel %vm1317_vm14, %v1320_v3, %v1323_v61  ;;  %vm1217_vm5 = vcmp.eq.s32.totalorder %v1212_v49, 2  ;;  %vm1213_vm8 = vcmp.lt.s32.totalorder %v1212_v49, 2 }
 0x1c0   : > { %v1198_v18 = vand.u32 2147483647, %v1197_v60  ;;  %v896_v56 = vmul.f32 0.5, %v892_v24 }
 0x1c1   : > { %v897_v38 = vmul.f32 0.5, %v893_v23  ;;  %v4161_v51 = vpop.permute.xlu1 %2335  ;;  %v3144_v23 = vmov 2  }
 0x1c2   : > { %v1201_v16 = vmul.f32 %v1200_v52, %v1198_v18  ;;  %v1360_v52 = vmul.f32 %v1351_v31, %v896_v56  ;;  %5012 = vst [vmem:[#allocation16_spill] sm:$0xff] %v4161_v51  ;;  %v3149_v56 = vmov 7   ;;  %v3157_v31 = vmov 15  }
 0x1c3   : > { %v1361_v7 = vmul.f32 %v1356_v11, %v897_v38  ;;  %v3152_v38 = vmov 10  }
 0x1c4   : > { %v1202_v5 = vxor.u32 2147483648, %v1201_v16 }
 0x1c6   : > { %v1203_v15 = vsel %vm1120_vm7, %v1202_v5, %v1201_v16  ;;  %vm1214_vm7 = vcmp.eq.s32.totalorder %v1212_v49, 0  ;;  %v4159_v5 = vpop.permute.xlu0 %2329 }
 0x1c7   : > { %v1206_v33 = vsel %vm4132_vm6, %v3994_v19, %v1203_v15  ;;  %vm1314_vm6 = vweird.f32 %v3774_v50  ;;  %5011 = vst [vmem:[#allocation15_spill] sm:$0xff] %v4159_v5 }
 0x1c8   : > { %2995 = vcosq.f32 %v1206_v33  ;;  %v1325_v47 = vsel %vm1314_vm6, nan, %v1324_v27  ;;  %v3147_v27 = vmov 5  }
 0x1c9   : > { %2997 = vsinq.f32 %v1206_v33 }
 0x1ca   : > { %2999 = vrcp.f32 %v3774_v50 }
 0x1cb   : > { %3001 = vrcp.f32 %v3994_v19 }
 0x1d2   : > { %v2996_v54 = vpop.eup %2995 }
 0x1d3   : > { %v2998_v28 = vpop.eup %2997  ;;  %v1218_v14 = vxor.u32 2147483648, %v2996_v54 }
 0x1d4   : > { %v1215_v8 = vxor.u32 2147483648, %v2998_v28  ;;  %v3000_v60 = vpop.eup %2999 }
 0x1d5   : > { %v1219_v17 = vsel %vm1217_vm5, %v1218_v14, %v2998_v28  ;;  %v3002_v46 = vpop.eup %3001  ;;  %v1333_v59 = vmul.f32 %v3000_v60, %v1325_v47  ;;  %v3146_v28 = vmov 4   ;;  %v3148_v14 = vmov 6  }
 0x1d6   : > { %v1216_v9 = vsel %vm1214_vm7, %v2996_v54, %v1215_v8  ;;  %v3143_v54 = vmov 1   ;;  %v3150_v8 = vmov 8   ;;  %v3153_v47 = vmov 11  }
 0x1d7   : > { %v1220_v58 = vsel %vm1213_vm8, %v1216_v9, %v1219_v17  ;;  %v1337_v10 = vsel %vm901_vm3, 1.0, %v1333_v59  ;;  %v3151_v17 = vmov 9   ;;  %v3154_v9 = vmov 12  }
 0x1d8   : > { %v1221_v18 = vsel %vm1210_vm9, nan, %v1220_v58  ;;  %v1365_v43 = vmul.f32 %v1361_v7, %v1337_v10  ;;  %v3155_v60 = vmov 13   ;;  %v3156_v58 = vmov 14  }
 0x1d9   : > { %v1331_v2 = vmul.f32 %v3002_v46, %v1221_v18  ;;  %v5013_v46 = vmov 0  }
 0x1da   : > { %v1376_v19 = vsel %vm1366_vm4, %v1365_v43, -inf }
 0x1db   : > { %v1336_v50 = vsel %vm900_vm0, 1.0, %v1331_v2 }
 0x1dc   : > { %v1364_v16 = vmul.f32 %v1360_v52, %v1336_v50 }
 0x1de   : > { %v1373_v48 = vsel %vm1366_vm4, %v1364_v16, -inf }
 0x1df   : > { %1374 = vmax.xlane.f32.xlu0 %v1373_v48 }
 0x1e3   : > { %1377 = vmax.xlane.f32.xlu0 %v1376_v19 }
 0x21a   : > { %v1369_v37 = vpop.xlane.xlu0 %1368  ;;  %v1372_v36 = vpop.xlane.xlu1 %1371 }
 0x21b   : > { %vm1379_vm0 = vcmp.eq.f32.partialorder %v4009_v30, %v1369_v37  ;;  %vm1380_vm3 = vcmp.eq.f32.partialorder %v4011_v29, %v1372_v36 }
 0x21c   : > { %v1383_v44 = vsel %vm1379_vm0, %v3364_v63, 16.0  ;;  %v1384_v42 = vsel %vm1380_vm3, %v3364_v63, 16.0  ;;  %vm1443_vm0 = vcmask 121856   ;;  %vm1448_vm3 = vcmask 384000  }
 0x21d   : > { %v1387_v15 = vsel %vm1366_vm4, %v1383_v44, inf  ;;  %v1390_v21 = vsel %vm1366_vm4, %v1384_v42, inf  ;;  %v1445_v7 = vsel %vm1443_vm0, 0.0, %v3366_v0  ;;  %v1444_v37 = vsel %vm1443_vm0, 0.0, %v3374_v4 }
 0x21e   : > { %1388 = vmin.xlane.f32.xlu1 %v1387_v15  ;;  %1391 = vmin.xlane.f32.xlu0 %v1390_v21  ;;  %v4259_v50 = vsel %vm1448_vm3, %v1445_v7, 0.0  ;;  %v4281_v44 = vsel %vm1448_vm3, %v1444_v37, 0.0  ;;  %v1446_v4 = vsel %vm1443_vm0, 0.0, %v3388_v13 }
 0x26c   : > { %v1375_v40 = vpop.xlane.xlu0 %1374 }
 0x26d   : > { %vm1381_vm10 = vcmp.eq.f32.partialorder %v1364_v16, %v1375_v40  ;;  %v4292_v40 = vsel %vm1448_vm3, %v1446_v4, 0.0 }
 0x26e   : > { %v1385_v34 = vsel %vm1381_vm10, %v3364_v63, 16.0 }
 0x26f   : > { %v1393_v33 = vsel %vm1366_vm4, %v1385_v34, inf }
 0x270   : > { %1394 = vmin.xlane.f32.xlu1 %v1393_v33  ;;  %v1378_v20 = vpop.xlane.xlu0 %1377 }
 0x271   : > { %vm1382_vm11 = vcmp.eq.f32.partialorder %v1365_v43, %v1378_v20 }
 0x272   : > { %v1386_v62 = vsel %vm1382_vm11, %v3364_v63, 16.0  ;;  %vm3188_vm11 = vmmov 0  }
 0x273   : > { %v1396_v12 = vsel %vm1366_vm4, %v1386_v62, inf }
 0x274   : > { %1397 = vmin.xlane.f32.xlu0 %v1396_v12 }
 0x2ab   : > { %v1389_v22 = vpop.xlane.xlu1 %1388  ;;  %v1392_v57 = vpop.xlane.xlu0 %1391 }
 0x2ac   : > { %v2689_v1 = vadd.f32 -4.0, %v1389_v22  ;;  %v1407_v6 = vadd.f32 4.0, %v1389_v22  ;;  %v2690_v55 = vadd.f32 -4.0, %v1392_v57  ;;  %v1408_v32 = vadd.f32 4.0, %v1392_v57 }
 0x2ae   : > { %vm1403_vm13 = vcmp.lt.f32.partialorder %v3364_v63, %v2689_v1  ;;  %vm1411_vm15 = vcmp.gt.f32.partialorder %v3364_v63, %v1407_v6  ;;  %vm1404_vm2 = vcmp.lt.f32.partialorder %v3364_v63, %v2690_v55  ;;  %vm1412_vm12 = vcmp.gt.f32.partialorder %v3364_v63, %v1408_v32 }
 0x2af   : > { %vm1415_vm1 = vmor %vm1403_vm13, %vm1411_vm15 }
 0x2b0   : > { %v4178_v39 = vsel %vm1415_vm1, 0.0, %v4009_v30  ;;  %vm1416_vm4 = vmor %vm1404_vm2, %vm1412_vm12  ;;  %vm2377_vm2 = vcmask 261120   ;;  %vm2379_vm12 = vcmask 523264  }
 0x2b1   : > { %v4181_v45 = vsel %vm1416_vm4, 0.0, %v4011_v29  ;;  %1455 = vperm.xlu0 %2914, %v4178_v39   ;;  %vm2381_vm4 = vcmask 785408  }
 0x2b2   : > { %1460 = vperm.xlu1 %2915, %v4181_v45  }
 0x2fd   : > { %v1395_v53 = vpop.xlane.xlu1 %1394 }
 0x2fe   : > { %v2691_v35 = vadd.f32 -4.0, %v1395_v53  ;;  %v1409_v3 = vadd.f32 4.0, %v1395_v53 }
 0x300   : > { %vm1405_vm14 = vcmp.lt.f32.partialorder %v3364_v63, %v2691_v35  ;;  %vm1413_vm5 = vcmp.gt.f32.partialorder %v3364_v63, %v1409_v3 }
 0x301   : > { %vm1417_vm6 = vmor %vm1405_vm14, %vm1413_vm5  ;;  %v1398_v61 = vpop.xlane.xlu0 %1397 }
 0x302   : > { %v4187_v24 = vsel %vm1417_vm6, 0.0, %v1364_v16  ;;  %v2692_v30 = vadd.f32 -4.0, %v1398_v61  ;;  %v1410_v49 = vadd.f32 4.0, %v1398_v61 }
 0x303   : > { %1465 = vperm.xlu0 %2914, %v4187_v24  }
 0x304   : > { %vm1406_vm7 = vcmp.lt.f32.partialorder %v3364_v63, %v2692_v30  ;;  %vm1414_vm8 = vcmp.gt.f32.partialorder %v3364_v63, %v1410_v49  ;;  %v3145_v63 = vmov 3  }
 0x305   : > { %vm1418_vm9 = vmor %vm1406_vm7, %vm1414_vm8 }
 0x306   : > { %v4192_v29 = vsel %vm1418_vm9, 0.0, %v1365_v43  ;;  %v1447_v43 = vsel %vm1443_vm0, 0.0, %v3974_v26 }
 0x307   : > { %2916 = vset.pattern.permute.xlu0 %v3143_v54  ;;  %1470 = vperm.xlu1 %2915, %v4192_v29   ;;  %v4270_v0 = vsel %vm1448_vm3, %v1447_v43, 0.0 }
 0x308   : > { %1482 = vperm.xlu0 %2916, %v4178_v39  }
 0x30b   : > { %2917 = vset.pattern.permute.xlu1 %v3143_v54 }
 0x30c   : > { %1494 = vperm.xlu0 %2916, %v4192_v29   ;;  %1486 = vperm.xlu1 %2917, %v4181_v45  }
 0x310   : > { %2918 = vset.pattern.permute.xlu0 %v3144_v23  ;;  %1490 = vperm.xlu1 %2917, %v4187_v24  }
 0x311   : > { %1538 = vperm.xlu0 %2918, %v4178_v39  }
 0x314   : > { %2919 = vset.pattern.permute.xlu1 %v3144_v23 }
 0x315   : > { %1550 = vperm.xlu0 %2918, %v4192_v29   ;;  %1542 = vperm.xlu1 %2919, %v4181_v45  }
 0x319   : > { %2921 = vset.pattern.permute.xlu0 %v3145_v63  ;;  %1546 = vperm.xlu1 %2919, %v4187_v24  }
 0x31a   : > { %1598 = vperm.xlu0 %2921, %v4181_v45  }
 0x31d   : > { %2920 = vset.pattern.permute.xlu1 %v3145_v63 }
 0x31e   : > { %2922 = vset.pattern.permute.xlu0 %v3146_v28  ;;  %1594 = vperm.xlu1 %2920, %v4178_v39  }
 0x31f   : > { %1650 = vperm.xlu0 %2922, %v4178_v39  }
 0x322   : > { %1602 = vperm.xlu1 %2920, %v4187_v24  }
 0x323   : > { %1662 = vperm.xlu0 %2922, %v4192_v29  }
 0x326   : > { %1606 = vperm.xlu1 %2920, %v4192_v29  }
 0x327   : > { %2925 = vset.pattern.permute.xlu0 %v3147_v27 }
 0x328   : > { %1710 = vperm.xlu0 %2925, %v4181_v45  }
 0x32a   : > { %2923 = vset.pattern.permute.xlu1 %v3146_v28 }
 0x32b   : > { %1654 = vperm.xlu1 %2923, %v4181_v45  }
 0x32c   : > { %2926 = vset.pattern.permute.xlu0 %v3148_v14 }
 0x32d   : > { %1762 = vperm.xlu0 %2926, %v4178_v39  }
 0x32f   : > { %1658 = vperm.xlu1 %2923, %v4187_v24  }
 0x330   : > { %v4245_v18 = vpop.permute.xlu0 %1455 }
 0x331   : > { %1774 = vperm.xlu0 %2926, %v4192_v29   ;;  %v4248_v52 = vpop.permute.xlu1 %1460 }
 0x333   : > { %2924 = vset.pattern.permute.xlu1 %v3147_v27 }
 0x334   : > { %1706 = vperm.xlu1 %2924, %v4178_v39  }
 0x335   : > { %2929 = vset.pattern.permute.xlu0 %v3149_v56 }
 0x336   : > { %1822 = vperm.xlu0 %2929, %v4181_v45  }
 0x338   : > { %1714 = vperm.xlu1 %2924, %v4187_v24  }
 0x33a   : > { %2930 = vset.pattern.permute.xlu0 %v3150_v8 }
 0x33b   : > { %1874 = vperm.xlu0 %2930, %v4178_v39  }
 0x33c   : > { %1718 = vperm.xlu1 %2924, %v4192_v29  }
 0x33f   : > { %1886 = vperm.xlu0 %2930, %v4192_v29  }
 0x340   : > { %2927 = vset.pattern.permute.xlu1 %v3148_v14 }
 0x341   : > { %1766 = vperm.xlu1 %2927, %v4181_v45  }
 0x343   : > { %2933 = vset.pattern.permute.xlu0 %v3151_v17 }
 0x344   : > { %1934 = vperm.xlu0 %2933, %v4181_v45  }
 0x345   : > { %1770 = vperm.xlu1 %2927, %v4187_v24  }
 0x348   : > { %2934 = vset.pattern.permute.xlu0 %v3152_v38 }
 0x349   : > { %1986 = vperm.xlu0 %2934, %v4178_v39   ;;  %2928 = vset.pattern.permute.xlu1 %v3149_v56 }
 0x34a   : > { %1818 = vperm.xlu1 %2928, %v4178_v39  }
 0x34d   : > { %1998 = vperm.xlu0 %2934, %v4192_v29  }
 0x34e   : > { %1826 = vperm.xlu1 %2928, %v4187_v24  }
 0x351   : > { %2937 = vset.pattern.permute.xlu0 %v3153_v47 }
 0x352   : > { %2046 = vperm.xlu0 %2937, %v4181_v45   ;;  %1830 = vperm.xlu1 %2928, %v4192_v29  }
 0x356   : > { %2938 = vset.pattern.permute.xlu0 %v3154_v9  ;;  %2931 = vset.pattern.permute.xlu1 %v3150_v8 }
 0x357   : > { %2098 = vperm.xlu0 %2938, %v4178_v39   ;;  %1878 = vperm.xlu1 %2931, %v4181_v45  }
 0x35b   : > { %2110 = vperm.xlu0 %2938, %v4192_v29   ;;  %1882 = vperm.xlu1 %2931, %v4187_v24  }
 0x35f   : > { %2941 = vset.pattern.permute.xlu0 %v3155_v60  ;;  %2932 = vset.pattern.permute.xlu1 %v3151_v17 }
 0x360   : > { %2158 = vperm.xlu0 %2941, %v4181_v45   ;;  %1930 = vperm.xlu1 %2932, %v4178_v39  }
 0x364   : > { %2942 = vset.pattern.permute.xlu0 %v3156_v58  ;;  %1938 = vperm.xlu1 %2932, %v4187_v24  }
 0x365   : > { %2210 = vperm.xlu0 %2942, %v4178_v39  }
 0x368   : > { %1942 = vperm.xlu1 %2932, %v4192_v29  }
 0x369   : > { %2222 = vperm.xlu0 %2942, %v4192_v29  }
 0x36c   : > { %2935 = vset.pattern.permute.xlu1 %v3152_v38 }
 0x36d   : > { %2945 = vset.pattern.permute.xlu0 %v3157_v31  ;;  %1990 = vperm.xlu1 %2935, %v4181_v45  }
 0x36e   : > { %2270 = vperm.xlu0 %2945, %v4181_v45  }
 0x371   : > { %1994 = vperm.xlu1 %2935, %v4187_v24  }
 0x372   : > { %2946 = vset.pattern.permute.xlu0 %v5013_v46 }
 0x375   : > { %2936 = vset.pattern.permute.xlu1 %v3153_v47 }
 0x376   : > { %2042 = vperm.xlu1 %2936, %v4178_v39  }
 0x37a   : > { %2050 = vperm.xlu1 %2936, %v4187_v24  }
 0x37e   : > { %2054 = vperm.xlu1 %2936, %v4192_v29  }
 0x382   : > { %2939 = vset.pattern.permute.xlu1 %v3154_v9  ;;  %v4250_v59 = vpop.permute.xlu0 %1465 }
 0x383   : > { %2102 = vperm.xlu1 %2939, %v4181_v45  }
 0x386   : > { %v4253_v11 = vpop.permute.xlu1 %1470 }
 0x387   : > { %5014 = vst [vmem:[#allocation17_spill] sm:$0xff] %v4253_v11  ;;  %2106 = vperm.xlu1 %2939, %v4187_v24   ;;  %v1483_v2 = vpop.permute.xlu0 %1482 }
 0x38b   : > { %2940 = vset.pattern.permute.xlu1 %v3155_v60  ;;  %v1487_v16 = vpop.permute.xlu1 %1486  ;;  %v1495_v10 = vpop.permute.xlu0 %1494 }
 0x38c   : > { %v4264_v48 = vmul.f32 %v1487_v16, %v4259_v50  ;;  %2154 = vperm.xlu1 %2940, %v4178_v39   ;;  %v4275_v36 = vmul.f32 %v1495_v10, %v4270_v0 }
 0x38e   : > { %1507 = vrot.lane.b32.xlu0 %v4264_v48, %s3158_s29 }
 0x38f   : > { %v1491_v19 = vpop.permute.xlu1 %1490 }
 0x390   : > { %2162 = vperm.xlu1 %2940, %v4187_v24   ;;  %v1539_v26 = vpop.permute.xlu0 %1538  ;;  %v4325_v61 = vmul.f32 %v1491_v19, %v4292_v40 }
 0x391   : > { %v4284_v15 = vmul.f32 %v1539_v26, %v4281_v44 }
 0x392   : > { %1511 = vrot.lane.b32.xlu0 %v4275_v36, %s3158_s29 }
 0x394   : > { %2166 = vperm.xlu1 %2940, %v4192_v29   ;;  %v1543_v42 = vpop.permute.xlu1 %1542  ;;  %v1551_v21 = vpop.permute.xlu0 %1550 }
 0x395   : > { %v4338_v23 = vmul.f32 %v1543_v42, %v4259_v50  ;;  %v4348_v14 = vmul.f32 %v1551_v21, %v4270_v0 }
 0x396   : > { %1561 = vrot.lane.b32.xlu0 %v4284_v15, %s3159_s14 }
 0x398   : > { %2943 = vset.pattern.permute.xlu1 %v3156_v58  ;;  %v1547_v34 = vpop.permute.xlu1 %1546 }
 0x399   : > { %v4295_v33 = vmul.f32 %v1547_v34, %v4292_v40  ;;  %2214 = vperm.xlu1 %2943, %v4181_v45   ;;  %v1599_v20 = vpop.permute.xlu0 %1598 }
 0x39a   : > { %v4358_v8 = vmul.f32 %v1599_v20, %v4259_v50 }
 0x39b   : > { %1565 = vrot.lane.b32.xlu0 %v4295_v33, %s3159_s14 }
 0x39d   : > { %2218 = vperm.xlu1 %2943, %v4187_v24   ;;  %v1595_v13 = vpop.permute.xlu1 %1594 }
 0x39e   : > { %v4302_v62 = vmul.f32 %v1595_v13, %v4281_v44  ;;  %v1651_v12 = vpop.permute.xlu0 %1650 }
 0x39f   : > { %v4313_v55 = vmul.f32 %v1651_v12, %v4281_v44 }
 0x3a0   : > { %1617 = vrot.lane.b32.xlu0 %v4302_v62, %s3160_s15 }
 0x3a1   : > { %2944 = vset.pattern.permute.xlu1 %v3157_v31  ;;  %v1603_v22 = vpop.permute.xlu1 %1602 }
 0x3a2   : > { %v4307_v1 = vmul.f32 %v1603_v22, %v4292_v40  ;;  %2266 = vperm.xlu1 %2944, %v4178_v39   ;;  %v1663_v6 = vpop.permute.xlu0 %1662  ;;  %v1497_v39 = vmul.f32 %v1483_v2, %v4281_v44 }
 0x3a3   : > { %v4381_v7 = vmul.f32 %v1663_v6, %v4270_v0 }
 0x3a4   : > { %1621 = vrot.lane.b32.xlu0 %v4307_v1, %s3160_s15 }
 0x3a5   : > { %v1607_v57 = vpop.permute.xlu1 %1606 }
 0x3a6   : > { %2274 = vperm.xlu1 %2944, %v4187_v24   ;;  %v4363_v47 = vmul.f32 %v1607_v57, %v4270_v0 }
 0x3a7   : > { %v1711_v32 = vpop.permute.xlu0 %1710 }
 0x3a8   : > { %1673 = vrot.lane.b32.xlu0 %v4313_v55, %s3161_s9  ;;  %v4391_v19 = vmul.f32 %v1711_v32, %v4259_v50 }
 0x3aa   : > { %2278 = vperm.xlu1 %2944, %v4192_v29   ;;  %v1655_v45 = vpop.permute.xlu1 %1654 }
 0x3ab   : > { %v4373_v31 = vmul.f32 %v1655_v45, %v4259_v50 }
 0x3ac   : > { %v1763_v53 = vpop.permute.xlu0 %1762 }
 0x3ad   : > { %v4351_v56 = vmul.f32 %v1763_v53, %v4281_v44 }
 0x3ae   : > { %v1659_v35 = vpop.permute.xlu1 %1658  ;;  %1505 = vrot.lane.b32.xlu1 %v1497_v39, %s3158_s29 }
 0x3af   : > { %v4322_v3 = vmul.f32 %v1659_v35, %v4292_v40 }
 0x3b0   : > { %v1775_v24 = vpop.permute.xlu0 %1774 }
 0x3b1   : > { %1677 = vrot.lane.b32.xlu0 %v4322_v3, %s3161_s9  ;;  %v4416_v22 = vmul.f32 %v1775_v24, %v4270_v0 }
 0x3b2   : > { %1509 = vrot.lane.b32.xlu1 %v4325_v61, %s3158_s29  ;;  %s3172_s29 = smov 14  }
 0x3b3   : > { %v1707_v30 = vpop.permute.xlu1 %1706 }
 0x3b4   : > { %v4332_v49 = vmul.f32 %v1707_v30, %v4281_v44 }
 0x3b5   : > { %v1823_v29 = vpop.permute.xlu0 %1822 }
 0x3b6   : > { %1521 = vrot.lane.b32.xlu1 %v1497_v39, %s3162_s10  ;;  %1729 = vrot.lane.b32.xlu0 %v4332_v49, %s3163_s11  ;;  %v4423_v32 = vmul.f32 %v1823_v29, %v4259_v50 }
 0x3b7   : > { %v1715_v54 = vpop.permute.xlu1 %1714 }
 0x3b8   : > { %v4341_v63 = vmul.f32 %v1715_v54, %v4292_v40 }
 0x3ba   : > { %1563 = vrot.lane.b32.xlu1 %v4338_v23, %s3159_s14  ;;  %1733 = vrot.lane.b32.xlu0 %v4341_v63, %s3163_s11  ;;  %v1875_v28 = vpop.permute.xlu0 %1874 }
 0x3bb   : > { %v1719_v27 = vpop.permute.xlu1 %1718  ;;  %v4396_v26 = vmul.f32 %v1875_v28, %v4281_v44 }
 0x3bc   : > { %v4401_v21 = vmul.f32 %v1719_v27, %v4270_v0 }
 0x3be   : > { %1567 = vrot.lane.b32.xlu1 %v4348_v14, %s3159_s14  ;;  %1785 = vrot.lane.b32.xlu0 %v4351_v56, %s3164_s13  ;;  %v1887_v17 = vpop.permute.xlu0 %1886  ;;  %s3173_s14 = smov 126  }
 0x3bf   : > { %v4450_v27 = vmul.f32 %v1887_v17, %v4270_v0 }
 0x3c0   : > { %v1767_v38 = vpop.permute.xlu1 %1766 }
 0x3c1   : > { %v4408_v34 = vmul.f32 %v1767_v38, %v4259_v50 }
 0x3c2   : > { %1619 = vrot.lane.b32.xlu1 %v4358_v8, %s3160_s15 }
 0x3c3   : > { %v1935_v58 = vpop.permute.xlu0 %1934 }
 0x3c4   : > { %v1771_v9 = vpop.permute.xlu1 %1770 }
 0x3c5   : > { %v4366_v60 = vmul.f32 %v1771_v9, %v4292_v40  ;;  %v4455_v9 = vmul.f32 %v1935_v58, %v4259_v50 }
 0x3c6   : > { %1623 = vrot.lane.b32.xlu1 %v4363_v47, %s3160_s15  ;;  %s3175_s15 = smov 124  }
 0x3c7   : > { %1789 = vrot.lane.b32.xlu0 %v4366_v60, %s3164_s13 }
 0x3c8   : > { %v1987_v16 = vpop.permute.xlu0 %1986 }
 0x3c9   : > { %v1819_v46 = vpop.permute.xlu1 %1818  ;;  %v4441_v29 = vmul.f32 %v1987_v16, %v4281_v44 }
 0x3ca   : > { %v4376_v2 = vmul.f32 %v1819_v46, %v4281_v44  ;;  %1675 = vrot.lane.b32.xlu1 %v4373_v31, %s3161_s9 }
 0x3cc   : > { %1841 = vrot.lane.b32.xlu0 %v4376_v2, %s3165_s16  ;;  %v1999_v42 = vpop.permute.xlu0 %1998 }
 0x3cd   : > { %v1827_v10 = vpop.permute.xlu1 %1826 }
 0x3ce   : > { %v4386_v43 = vmul.f32 %v1827_v10, %v4292_v40  ;;  %1679 = vrot.lane.b32.xlu1 %v4381_v7, %s3161_s9  ;;  %s3176_s9 = smov 123  }
 0x3d0   : > { %1845 = vrot.lane.b32.xlu0 %v4386_v43, %s3165_s16 }
 0x3d1   : > { %v1831_v37 = vpop.permute.xlu1 %1830  ;;  %v2047_v20 = vpop.permute.xlu0 %2046 }
 0x3d2   : > { %1731 = vrot.lane.b32.xlu1 %v4391_v19, %s3163_s11  ;;  %v4432_v53 = vmul.f32 %v1831_v37, %v4270_v0 }
 0x3d4   : > { %1897 = vrot.lane.b32.xlu0 %v4396_v26, %s3166_s17 }
 0x3d6   : > { %v1879_v4 = vpop.permute.xlu1 %1878  ;;  %1735 = vrot.lane.b32.xlu1 %v4401_v21, %s3163_s11  ;;  %v2099_v6 = vpop.permute.xlu0 %2098  ;;  %s3178_s11 = smov 121  }
 0x3d7   : > { %v4444_v54 = vmul.f32 %v1879_v4, %v4259_v50  ;;  %v4482_v51 = vmul.f32 %v2099_v6, %v4281_v44 }
 0x3d9   : > { %5015 = vst [vmem:[#allocation18_spill] sm:$0xff] %v4482_v51 }
 0x3da   : > { %v1883_v13 = vpop.permute.xlu1 %1882  ;;  %1787 = vrot.lane.b32.xlu1 %v4408_v34, %s3164_s13  ;;  %v2111_v35 = vpop.permute.xlu0 %2110 }
 0x3db   : > { %v4413_v12 = vmul.f32 %v1883_v13, %v4292_v40 }
 0x3dd   : > { %1901 = vrot.lane.b32.xlu0 %v4413_v12, %s3166_s17 }
 0x3de   : > { %1791 = vrot.lane.b32.xlu1 %v4416_v22, %s3164_s13  ;;  %s3179_s13 = smov 120  }
 0x3df   : > { %v1931_v57 = vpop.permute.xlu1 %1930  ;;  %v2159_v28 = vpop.permute.xlu0 %2158 }
 0x3e0   : > { %v4426_v45 = vmul.f32 %v1931_v57, %v4281_v44 }
 0x3e2   : > { %1843 = vrot.lane.b32.xlu1 %v4423_v32, %s3165_s16  ;;  %1953 = vrot.lane.b32.xlu0 %v4426_v45, %s3167_s25 }
 0x3e3   : > { %v1939_v39 = vpop.permute.xlu1 %1938 }
 0x3e4   : > { %v4435_v24 = vmul.f32 %v1939_v39, %v4292_v40  ;;  %v2211_v46 = vpop.permute.xlu0 %2210 }
 0x3e6   : > { %1847 = vrot.lane.b32.xlu1 %v4432_v53, %s3165_s16  ;;  %1957 = vrot.lane.b32.xlu0 %v4435_v24, %s3167_s25  ;;  %s3180_s16 = smov 119  }
 0x3e7   : > { %v1943_v30 = vpop.permute.xlu1 %1942 }
 0x3e8   : > { %v4463_v37 = vmul.f32 %v1943_v30, %v4270_v0  ;;  %v2223_v4 = vpop.permute.xlu0 %2222  ;;  %v4478_v30 = vmul.f32 %v1999_v42, %v4270_v0 }
 0x3ea   : > { %1899 = vrot.lane.b32.xlu1 %v4444_v54, %s3166_s17  ;;  %2009 = vrot.lane.b32.xlu0 %v4441_v29, %s3168_s26 }
 0x3ec   : > { %v1991_v38 = vpop.permute.xlu1 %1990 }
 0x3ed   : > { %v4470_v58 = vmul.f32 %v1991_v38, %v4259_v50  ;;  %v4486_v38 = vmul.f32 %v2047_v20, %v4259_v50 }
 0x3ee   : > { %1903 = vrot.lane.b32.xlu1 %v4450_v27, %s3166_s17  ;;  %s3181_s17 = smov 118  }
 0x3f0   : > { %v1995_v16 = vpop.permute.xlu1 %1994 }
 0x3f1   : > { %v4458_v10 = vmul.f32 %v1995_v16, %v4292_v40  ;;  %v2271_v16 = vpop.permute.xlu0 %2270 }
 0x3f2   : > { %1955 = vrot.lane.b32.xlu1 %v4455_v9, %s3167_s25 }
 0x3f3   : > { %2013 = vrot.lane.b32.xlu0 %v4458_v10, %s3168_s26 }
 0x3f5   : > { %v2043_v17 = vpop.permute.xlu1 %2042 }
 0x3f6   : > { %v4466_v13 = vmul.f32 %v2043_v17, %v4281_v44  ;;  %1959 = vrot.lane.b32.xlu1 %v4463_v37, %s3167_s25  ;;  %s3182_s25 = smov 117  }
 0x3f8   : > { %2065 = vrot.lane.b32.xlu0 %v4466_v13, %s3169_s8 }
 0x3f9   : > { %v2051_v57 = vpop.permute.xlu1 %2050 }
 0x3fa   : > { %v4474_v39 = vmul.f32 %v2051_v57, %v4292_v40  ;;  %2011 = vrot.lane.b32.xlu1 %v4470_v58, %s3168_s26 }
 0x3fc   : > { %2069 = vrot.lane.b32.xlu0 %v4474_v39, %s3169_s8 }
 0x3fd   : > { %v2055_v17 = vpop.permute.xlu1 %2054 }
 0x3fe   : > { %2015 = vrot.lane.b32.xlu1 %v4478_v30, %s3168_s26  ;;  %v4493_v42 = vmul.f32 %v2055_v17, %v4270_v0  ;;  %v4509_v17 = vmul.f32 %v2111_v35, %v4270_v0  ;;  %s3183_s26 = smov 116  }
 0x400   : > { %2121 = vrot.lane.b32.xlu0 %v4482_v51, %s3170_s7  ;;  %v4489_v57 = vpop.permute.xlu0 %1507  ;;  %5020 = vst [vmem:[#allocation23_spill] sm:$0xff] %v4509_v17 }
 0x401   : > { %5016 = vst [vmem:[#allocation19_spill] sm:$0xff] %v4489_v57 }
 0x402   : > { %v2103_v5 = vpop.permute.xlu1 %2102  ;;  %2067 = vrot.lane.b32.xlu1 %v4486_v38, %s3169_s8 }
 0x403   : > { %v4502_v20 = vmul.f32 %v2103_v5, %v4259_v50 }
 0x404   : > { %v4495_v41 = vpop.permute.xlu0 %1511 }
 0x405   : > { %5017 = vst [vmem:[#allocation20_spill] sm:$0xff] %v4495_v41  ;;  %5019 = vst [vmem:[#allocation22_spill] sm:$0xff] %v4502_v20 }
 0x406   : > { %v2107_v6 = vpop.permute.xlu1 %2106  ;;  %2071 = vrot.lane.b32.xlu1 %v4493_v42, %s3169_s8  ;;  %s3184_s8 = smov 115  }
 0x407   : > { %v4499_v25 = vmul.f32 %v2107_v6, %v4292_v40  ;;  %v4519_v6 = vmul.f32 %v2159_v28, %v4259_v50 }
 0x408   : > { %v4504_v11 = vpop.permute.xlu0 %1561 }
 0x409   : > { %5018 = vst [vmem:[#allocation21_spill] sm:$0xff] %v4499_v25  ;;  %2125 = vrot.lane.b32.xlu0 %v4499_v25, %s3170_s7  ;;  %5022 = vst [vmem:[#allocation25_spill] sm:$0xff] %v4519_v6 }
 0x40a   : > { %2123 = vrot.lane.b32.xlu1 %v4502_v20, %s3170_s7  ;;  %v4529_v20 = vmul.f32 %v2211_v46, %v4281_v44  ;;  %v4543_v46 = vmul.f32 %v2223_v4, %v4270_v0 }
 0x40b   : > { %v2155_v57 = vpop.permute.xlu1 %2154 }
 0x40c   : > { %v4512_v41 = vmul.f32 %v2155_v57, %v4281_v44  ;;  %5024 = vst [vmem:[#allocation27_spill] sm:$0xff] %v4529_v20  ;;  %5026 = vst [vmem:[#allocation29_spill] sm:$0xff] %v4543_v46 }
 0x40d   : > { %v4514_v51 = vpop.permute.xlu0 %1565 }
 0x40e   : > { %5021 = vst [vmem:[#allocation24_spill] sm:$0xff] %v4512_v41  ;;  %2177 = vrot.lane.b32.xlu0 %v4512_v41, %s3171_s28  ;;  %2127 = vrot.lane.b32.xlu1 %v4509_v17, %s3170_s7  ;;  %s3185_s7 = smov 114  }
 0x40f   : > { %v2163_v5 = vpop.permute.xlu1 %2162 }
 0x410   : > { %v4522_v25 = vmul.f32 %v2163_v5, %v4292_v40 }
 0x412   : > { %5023 = vst [vmem:[#allocation26_spill] sm:$0xff] %v4522_v25  ;;  %2181 = vrot.lane.b32.xlu0 %v4522_v25, %s3171_s28  ;;  %2179 = vrot.lane.b32.xlu1 %v4519_v6, %s3171_s28  ;;  %v4526_v35 = vpop.permute.xlu0 %1617 }
 0x413   : > { %v2167_v57 = vpop.permute.xlu1 %2166 }
 0x414   : > { %v4532_v41 = vmul.f32 %v2167_v57, %v4270_v0 }
 0x416   : > { %5025 = vst [vmem:[#allocation28_spill] sm:$0xff] %v4532_v41  ;;  %2183 = vrot.lane.b32.xlu1 %v4532_v41, %s3171_s28  ;;  %2233 = vrot.lane.b32.xlu0 %v4529_v20, %s3172_s29  ;;  %v4536_v5 = vpop.permute.xlu0 %1621  ;;  %v4553_v20 = vmul.f32 %v2271_v16, %v4259_v50  ;;  %s3186_s28 = smov 113  }
 0x418   : > { %v2215_v28 = vpop.permute.xlu1 %2214  ;;  %5028 = vst [vmem:[#allocation31_spill] sm:$0xff] %v4553_v20 }
 0x419   : > { %v4539_v25 = vmul.f32 %v2215_v28, %v4259_v50 }
 0x41a   : > { %v4548_v17 = vpop.permute.xlu0 %1673 }
 0x41b   : > { %2235 = vrot.lane.b32.xlu1 %v4539_v25, %s3172_s29 }
 0x41c   : > { %v2219_v6 = vpop.permute.xlu1 %2218 }
 0x41d   : > { %v4546_v57 = vmul.f32 %v2219_v6, %v4292_v40 }
 0x41f   : > { %5027 = vst [vmem:[#allocation30_spill] sm:$0xff] %v4546_v57  ;;  %2237 = vrot.lane.b32.xlu0 %v4546_v57, %s3172_s29  ;;  %2239 = vrot.lane.b32.xlu1 %v4543_v46, %s3172_s29  ;;  %s2472_s29 = scalar_lea.sflag [#allocation6], %s3334_s23 }
 0x421   : > { %v2267_v28 = vpop.permute.xlu1 %2266 }
 0x422   : > { %v4556_v41 = vmul.f32 %v2267_v28, %v4281_v44 }
 0x423   : > { %2291 = vrot.lane.b32.xlu1 %v4553_v20, %s3136_s12  ;;  %v4560_v4 = vpop.permute.xlu0 %1677 }
 0x424   : > { %5029 = vst [vmem:[#allocation32_spill] sm:$0xff] %v4556_v41  ;;  %2289 = vrot.lane.b32.xlu0 %v4556_v41, %s3136_s12 }
 0x425   : > { %v2275_v6 = vpop.permute.xlu1 %2274 }
 0x426   : > { %v4565_v57 = vmul.f32 %v2275_v6, %v4292_v40 }
 0x428   : > { %5030 = vst [vmem:[#allocation33_spill] sm:$0xff] %v4565_v57  ;;  %2293 = vrot.lane.b32.xlu0 %v4565_v57, %s3136_s12  ;;  %v4569_v16 = vpop.permute.xlu0 %1729 }
 0x429   : > { %v2279_v46 = vpop.permute.xlu1 %2278 }
 0x42a   : > { %v4572_v28 = vmul.f32 %v2279_v46, %v4270_v0 }
 0x42c   : > { %1523 = vrot.lane.b32.xlu0 %v4264_v48, %s3162_s10  ;;  %2295 = vrot.lane.b32.xlu1 %v4572_v28, %s3136_s12  ;;  %v4580_v20 = vpop.permute.xlu0 %1733  ;;  %s3174_s12 = smov 125  }
 0x42d   : > { %v4578_v41 = vpop.permute.xlu1 %1505 }
 0x430   : > { %1527 = vrot.lane.b32.xlu0 %v4275_v36, %s3162_s10  ;;  %1525 = vrot.lane.b32.xlu1 %v4325_v61, %s3162_s10  ;;  %v4590_v48 = vpop.permute.xlu0 %1785  ;;  %s3177_s10 = smov 122  }
 0x431   : > { %v4586_v6 = vpop.permute.xlu1 %1509 }
 0x434   : > { %1579 = vrot.lane.b32.xlu0 %v4338_v23, %s3173_s14  ;;  %1577 = vrot.lane.b32.xlu1 %v4284_v15, %s3173_s14 }
 0x435   : > { %v4592_v46 = vpop.permute.xlu1 %1521 }
 0x438   : > { %1583 = vrot.lane.b32.xlu0 %v4348_v14, %s3173_s14  ;;  %1581 = vrot.lane.b32.xlu1 %v4295_v33, %s3173_s14 }
 0x439   : > { %v4596_v57 = vpop.permute.xlu1 %1563  ;;  %v4598_v36 = vpop.permute.xlu0 %1789 }
 0x43c   : > { %1635 = vrot.lane.b32.xlu0 %v4358_v8, %s3174_s12  ;;  %1633 = vrot.lane.b32.xlu1 %v4302_v62, %s3174_s12 }
 0x43d   : > { %v4602_v61 = vpop.permute.xlu1 %1567 }
 0x43e   : > { %v4604_v15 = vpop.permute.xlu0 %1841 }
 0x440   : > { %1639 = vrot.lane.b32.xlu0 %v4363_v47, %s3174_s12  ;;  %1637 = vrot.lane.b32.xlu1 %v4307_v1, %s3174_s12  ;;  %s3193_s12 = smov [#allocation7]  }
 0x441   : > { %v4608_v23 = vpop.permute.xlu1 %1619 }
 0x442   : > { %v4612_v33 = vpop.permute.xlu0 %1845 }
 0x444   : > { %1691 = vrot.lane.b32.xlu0 %v4373_v31, %s3175_s15  ;;  %1689 = vrot.lane.b32.xlu1 %v4313_v55, %s3175_s15 }
 0x445   : > { %v4614_v14 = vpop.permute.xlu1 %1623 }
 0x446   : > { %v4620_v8 = vpop.permute.xlu0 %1897 }
 0x448   : > { %1695 = vrot.lane.b32.xlu0 %v4381_v7, %s3175_s15  ;;  %1693 = vrot.lane.b32.xlu1 %v4322_v3, %s3175_s15 }
 0x449   : > { %v4618_v62 = vpop.permute.xlu1 %1675 }
 0x44c   : > { %1747 = vrot.lane.b32.xlu0 %v4391_v19, %s3176_s9  ;;  %1745 = vrot.lane.b32.xlu1 %v4332_v49, %s3176_s9 }
 0x44d   : > { %v4624_v1 = vpop.permute.xlu1 %1679 }
 0x44f   : > { %v4626_v55 = vpop.permute.xlu0 %1901 }
 0x450   : > { %1751 = vrot.lane.b32.xlu0 %v4401_v21, %s3176_s9  ;;  %1749 = vrot.lane.b32.xlu1 %v4341_v63, %s3176_s9  ;;  %s3190_s9 = smov 53  }
 0x451   : > { %v4630_v47 = vpop.permute.xlu1 %1731 }
 0x454   : > { %1803 = vrot.lane.b32.xlu0 %v4408_v34, %s3177_s10  ;;  %1801 = vrot.lane.b32.xlu1 %v4351_v56, %s3177_s10  ;;  %v4634_v3 = vpop.permute.xlu0 %1953 }
 0x455   : > { %v4636_v31 = vpop.permute.xlu1 %1735 }
 0x458   : > { %1807 = vrot.lane.b32.xlu0 %v4416_v22, %s3177_s10  ;;  %1805 = vrot.lane.b32.xlu1 %v4366_v60, %s3177_s10  ;;  %v4642_v7 = vpop.permute.xlu0 %1957  ;;  %s3192_s10 = smov 85  }
 0x459   : > { %v4640_v49 = vpop.permute.xlu1 %1787 }
 0x45c   : > { %1859 = vrot.lane.b32.xlu0 %v4423_v32, %s3178_s11  ;;  %1857 = vrot.lane.b32.xlu1 %v4376_v2, %s3178_s11  ;;  %v4650_v56 = vpop.permute.xlu0 %2009 }
 0x45d   : > { %v4646_v63 = vpop.permute.xlu1 %1791 }
 0x460   : > { %1863 = vrot.lane.b32.xlu0 %v4432_v53, %s3178_s11  ;;  %1861 = vrot.lane.b32.xlu1 %v4386_v43, %s3178_s11  ;;  %v4692_v53 = vmul.f32 %v4245_v18, %v4281_v44  ;;  %s2654_s11 = sshll.u32 %s3334_s23, 3 }
 0x461   : > { %v4652_v19 = vpop.permute.xlu1 %1843 }
 0x464   : > { %1915 = vrot.lane.b32.xlu0 %v4444_v54, %s3179_s13  ;;  %1913 = vrot.lane.b32.xlu1 %v4396_v26, %s3179_s13  ;;  %v4704_v54 = vmul.f32 %v4250_v59, %v4292_v40  ;;  %v4722_v40 = vmul.f32 %v4248_v52, %v4259_v50 }
 0x465   : > { %v4658_v60 = vpop.permute.xlu1 %1847  ;;  %v4660_v2 = vpop.permute.xlu0 %2013 }
 0x466   : > { %v1519_v18 = vadd.f32 %v4586_v6, %v4704_v54  ;;  %v5036_v6 = vld [vmem:[#allocation23_spill] sm:$0xff] }
 0x468   : > { %1919 = vrot.lane.b32.xlu0 %v4450_v27, %s3179_s13  ;;  %1917 = vrot.lane.b32.xlu1 %v4413_v12, %s3179_s13  ;;  %v1575_v59 = vadd.f32 %v4514_v51, %v1519_v18  ;;  %v5034_v51 = vld [vmem:[#allocation17_spill] sm:$0xff]  ;;  %v5037_v18 = vld [vmem:[#allocation20_spill] sm:$0xff] }
 0x469   : > { %v4666_v43 = vpop.permute.xlu1 %1899  ;;  %v4736_v52 = vmul.f32 %v5034_v51, %v4270_v0 }
 0x46a   : > { %v4668_v21 = vpop.permute.xlu0 %2065 }
 0x46c   : > { %1971 = vrot.lane.b32.xlu0 %v4455_v9, %s3180_s16  ;;  %1969 = vrot.lane.b32.xlu1 %v4426_v45, %s3180_s16 }
 0x46d   : > { %v4672_v26 = vpop.permute.xlu1 %1903 }
 0x46e   : > { %v4676_v34 = vpop.permute.xlu0 %2069 }
 0x470   : > { %1975 = vrot.lane.b32.xlu0 %v4463_v37, %s3180_s16  ;;  %1973 = vrot.lane.b32.xlu1 %v4435_v24, %s3180_s16  ;;  %v5032_v37 = vld [vmem:[#allocation22_spill] sm:$0xff]  ;;  %s377_s16 = scalar_lea.vmem [#allocation7], %s2654_s11 }
 0x471   : > { %v4678_v22 = vpop.permute.xlu1 %1955 }
 0x472   : > { %v4684_v32 = vpop.permute.xlu0 %2121 }
 0x474   : > { %2025 = vrot.lane.b32.xlu1 %v4441_v29, %s3181_s17  ;;  %2027 = vrot.lane.b32.xlu0 %v4470_v58, %s3181_s17  ;;  %v1517_v29 = vadd.f32 %v4578_v41, %v4692_v53  ;;  %v5033_v58 = vld [vmem:[#allocation19_spill] sm:$0xff] }
 0x475   : > { %v4682_v12 = vpop.permute.xlu1 %1959 }
 0x476   : > { %v1573_v44 = vadd.f32 %v4504_v11, %v1517_v29  ;;  %v5031_v11 = vld [vmem:[#allocation18_spill] sm:$0xff] }
 0x478   : > { %2029 = vrot.lane.b32.xlu1 %v4458_v10, %s3181_s17  ;;  %2031 = vrot.lane.b32.xlu0 %v4478_v30, %s3181_s17  ;;  %v1629_v10 = vadd.f32 %v4526_v35, %v1573_v44  ;;  %v1631_v30 = vadd.f32 %v4536_v5, %v1575_v59  ;;  %v5035_v35 = vld [vmem:[#allocation21_spill] sm:$0xff]  ;;  %v1520_v44 = vadd.f32 %v5037_v18, %v4736_v52  ;;  %s2695_s17 = sshll.u32 %s3246_s22, 7 }
 0x479   : > { %v4688_v45 = vpop.permute.xlu1 %2011 }
 0x47a   : > { %v1685_v50 = vadd.f32 %v4548_v17, %v1629_v10  ;;  %v1687_v59 = vadd.f32 %v4560_v4, %v1631_v30  ;;  %v1576_v0 = vadd.f32 %v4602_v61, %v1520_v44  ;;  %v5039_v10 = vld [vmem:[#allocation25_spill] sm:$0xff]  ;;  %v5041_v30 = vld [vmem:[#allocation26_spill] sm:$0xff] }
 0x47b   : > { %v4694_v24 = vpop.permute.xlu0 %2125 }
 0x47c   : > { %2081 = vrot.lane.b32.xlu1 %v4466_v13, %s3182_s25  ;;  %2083 = vrot.lane.b32.xlu0 %v4486_v38, %s3182_s25 }
 0x47d   : > { %v4706_v27 = vpop.permute.xlu1 %2015 }
 0x480   : > { %2085 = vrot.lane.b32.xlu1 %v4474_v39, %s3182_s25  ;;  %2087 = vrot.lane.b32.xlu0 %v4493_v42, %s3182_s25  ;;  %v4715_v41 = vpop.permute.xlu0 %2177  ;;  %v1518_v39 = vadd.f32 %v5033_v58, %v4722_v40 }
 0x481   : > { %v4717_v9 = vpop.permute.xlu1 %2067 }
 0x482   : > { %v1574_v42 = vadd.f32 %v4596_v57, %v1518_v39  ;;  %v5038_v57 = vld [vmem:[#allocation24_spill] sm:$0xff]  ;;  %v1632_v39 = vadd.f32 %v4614_v14, %v1576_v0 }
 0x484   : > { %2137 = vrot.lane.b32.xlu1 %v5031_v11, %s3183_s26  ;;  %2139 = vrot.lane.b32.xlu0 %v5032_v37, %s3183_s26  ;;  %v4732_v38 = vpop.permute.xlu0 %2181  ;;  %v1630_v5 = vadd.f32 %v4608_v23, %v1574_v42  ;;  %v1741_v11 = vadd.f32 %v4569_v16, %v1685_v50  ;;  %v1743_v23 = vadd.f32 %v4580_v20, %v1687_v59  ;;  %v5044_v59 = vld [vmem:[#allocation30_spill] sm:$0xff] }
 0x485   : > { %v4727_v13 = vpop.permute.xlu1 %2071  ;;  %v1688_v16 = vadd.f32 %v4624_v1, %v1632_v39 }
 0x486   : > { %v1686_v17 = vadd.f32 %v4618_v62, %v1630_v5  ;;  %v1797_v4 = vadd.f32 %v4590_v48, %v1741_v11  ;;  %v5040_v62 = vld [vmem:[#allocation28_spill] sm:$0xff]  ;;  %v1799_v20 = vadd.f32 %v4598_v36, %v1743_v23  ;;  %v5043_v5 = vld [vmem:[#allocation29_spill] sm:$0xff] }
 0x487   : > { %v1744_v14 = vadd.f32 %v4636_v31, %v1688_v16 }
 0x488   : > { %2141 = vrot.lane.b32.xlu1 %v5035_v35, %s3183_s26  ;;  %2143 = vrot.lane.b32.xlu0 %v5036_v6, %s3183_s26  ;;  %v2234_v37 = vpop.permute.xlu0 %2233  ;;  %v1742_v51 = vadd.f32 %v4630_v47, %v1686_v17  ;;  %v1853_v35 = vadd.f32 %v4604_v15, %v1797_v4  ;;  %v5042_v6 = vld [vmem:[#allocation27_spill] sm:$0xff]  ;;  %v1855_v18 = vadd.f32 %v4612_v33, %v1799_v20 }
 0x489   : > { %v2124_v29 = vpop.permute.xlu1 %2123  ;;  %v1800_v1 = vadd.f32 %v4646_v63, %v1744_v14  ;;  %v5045_v17 = vld [vmem:[#allocation31_spill] sm:$0xff] }
 0x48a   : > { %v1798_v61 = vadd.f32 %v4640_v49, %v1742_v51  ;;  %v1909_v48 = vadd.f32 %v4620_v8, %v1853_v35  ;;  %v1911_v8 = vadd.f32 %v4626_v55, %v1855_v18  ;;  %v3187_v35 = vmov 0.0|0.0  }
 0x48b   : > { %2751 = vmatprep.subr.bf16.mxu0 %v3187_v35 }
 0x48c   : > { %2193 = vrot.lane.b32.xlu1 %v5038_v57, %s3184_s8  ;;  %2195 = vrot.lane.b32.xlu0 %v5039_v10, %s3184_s8  ;;  %v1854_v47 = vadd.f32 %v4652_v19, %v1798_v61  ;;  %v1965_v31 = vadd.f32 %v4634_v3, %v1909_v48  ;;  %v1856_v19 = vadd.f32 %v4658_v60, %v1800_v1  ;;  %v5046_v57 = vld [vmem:[#allocation32_spill] sm:$0xff]  ;;  %v2388_v1 = vld [vmem:[%s4959_s3 + $0x20] sm:$0xff] }
 0x48d   : > { %v2128_v58 = vpop.permute.xlu1 %2127  ;;  %v1967_v33 = vadd.f32 %v4642_v7, %v1911_v8 }
 0x48e   : > { %v1910_v49 = vadd.f32 %v4666_v43, %v1854_v47  ;;  %v2021_v63 = vadd.f32 %v4650_v56, %v1965_v31  ;;  %v1912_v43 = vadd.f32 %v4672_v26, %v1856_v19  ;;  %v2390_v19 = vld [vmem:[%s4959_s3 + $0x30] sm:$0xff] }
 0x48f   : > { %v2023_v56 = vadd.f32 %v4660_v2, %v1967_v33 }
 0x490   : > { %2199 = vrot.lane.b32.xlu1 %v5040_v62, %s3184_s8  ;;  %2197 = vrot.lane.b32.xlu0 %v5041_v30, %s3184_s8  ;;  %v1966_v36 = vadd.f32 %v4678_v22, %v1910_v49  ;;  %v2077_v60 = vadd.f32 %v4668_v21, %v2021_v63  ;;  %v1968_v22 = vadd.f32 %v4682_v12, %v1912_v43  ;;  %v2387_v62 = vld [vmem:[%s4959_s3 + $0x18] sm:$0xff] }
 0x491   : > { %v2180_v50 = vpop.permute.xlu1 %2179  ;;  %v2238_v42 = vpop.permute.xlu0 %2237  ;;  %v2079_v7 = vadd.f32 %v4676_v34, %v2023_v56 }
 0x492   : > { %v2133_v26 = vadd.f32 %v4684_v32, %v2077_v60 }
 0x493   : > { %v2135_v2 = vadd.f32 %v4694_v24, %v2079_v7  ;;  %v2385_v24 = vld [vmem:[%s4959_s3 + $0x8] sm:$0xff] }
 0x494   : > { %2251 = vrot.lane.b32.xlu1 %v4539_v25, %s3185_s7  ;;  %2249 = vrot.lane.b32.xlu0 %v5042_v6, %s3185_s7  ;;  %v2022_v25 = vadd.f32 %v4688_v45, %v1966_v36  ;;  %v2024_v45 = vadd.f32 %v4706_v27, %v1968_v22  ;;  %v2189_v12 = vadd.f32 %v4715_v41, %v2133_v26  ;;  %v2391_v36 = vld [vmem:[%s4959_s3 + $0x38] sm:$0xff] }
 0x495   : > { %v2184_v15 = vpop.permute.xlu1 %2183  ;;  %v2191_v4 = vadd.f32 %v4732_v38, %v2135_v2  ;;  %v2761_v43 = vpack.c.bf16 %v2391_v36, %v2390_v19 }
 0x496   : > { %v2290_v44 = vpop.permute.xlu0 %2289  ;;  %v2078_v11 = vadd.f32 %v4717_v9, %v2022_v25  ;;  %v2080_v9 = vadd.f32 %v4727_v13, %v2024_v45  ;;  %v2245_v32 = vadd.f32 %v2234_v37, %v2189_v12  ;;  %v2384_v13 = vld [vmem:[%s4959_s3] sm:$0xff] }
 0x497   : > { %v2247_v37 = vadd.f32 %v2238_v42, %v2191_v4  ;;  %v2752_v38 = vpack.c.bf16 %v2385_v24, %v2384_v13 }
 0x498   : > { %2255 = vrot.lane.b32.xlu1 %v5043_v5, %s3185_s7  ;;  %2253 = vrot.lane.b32.xlu0 %v5044_v59, %s3185_s7  ;;  %v2134_v0 = vadd.f32 %v2124_v29, %v2078_v11  ;;  %v2136_v51 = vadd.f32 %v2128_v58, %v2080_v9  ;;  %v5047_v29 = vld [vmem:[#allocation33_spill] sm:$0xff]  ;;  %v2301_v16 = vadd.f32 %v2290_v44, %v2245_v32  ;;  %v2393_v59 = vld [vmem:[%s4959_s3 + $0x48] sm:$0xff]  ;;  %s4885_s7 = scalar_lea.hbm %s4960_s4, %s2695_s17 }
 0x499   : > { %v2236_v3 = vpop.permute.xlu1 %2235  ;;  %2753 = vmatpush3.bf16.msra.mxu0 %v2752_v38  ;;  %v1533_v44 = vadd.f32 %v4592_v46, %v4692_v53  ;;  %v2392_v5 = vld [vmem:[%s4959_s3 + $0x40] sm:$0xff] }
 0x49a   : > { %v2294_v55 = vpop.permute.xlu0 %2293  ;;  %v2190_v10 = vadd.f32 %v2180_v50, %v2134_v0  ;;  %v2192_v34 = vadd.f32 %v2184_v15, %v2136_v51  ;;  %2754 = vmatprep.subr.bf16.mxu0 %v3187_v35  ;;  %v2764_v60 = vpack.c.bf16 %v2393_v59, %v2392_v5 }
 0x49b   : > { %v2303_v14 = vadd.f32 %v2294_v55, %v2247_v37 }
 0x49c   : > { %2307 = vrot.lane.b32.xlu1 %v5045_v17, %s3186_s28  ;;  %2305 = vrot.lane.b32.xlu0 %v5046_v57, %s3186_s28  ;;  %v2246_v27 = vadd.f32 %v2236_v3, %v2190_v10 }
 0x49d   : > { %v2240_v21 = vpop.permute.xlu1 %2239 }
 0x49e   : > { %v1524_v39 = vpop.permute.xlu0 %1523  ;;  %v2248_v58 = vadd.f32 %v2240_v21, %v2192_v34 }
 0x49f   : > { %v1534_v30 = vadd.f32 %v1524_v39, %v4722_v40  ;;  %v2389_v40 = vld [vmem:[%s4959_s3 + $0x28] sm:$0xff] }
 0x4a0   : > { %2311 = vrot.lane.b32.xlu1 %v4572_v28, %s3186_s28  ;;  %2309 = vrot.lane.b32.xlu0 %v5047_v29, %s3186_s28  ;;  %v2386_v28 = vld [vmem:[%s4959_s3 + $0x10] sm:$0xff]  ;;  %v2758_v15 = vpack.c.bf16 %v2389_v40, %v2388_v1  ;;  %s2490_s28 = sshll.u32 %s377_s16, 4  ;;  %s2491_s28 = int_to_ptr.vmem [resolvable:$true] %s2490_s28 }
 0x4a1   : > { %v2292_v23 = vpop.permute.xlu1 %2291  ;;  %v2755_v42 = vpack.c.bf16 %v2387_v62, %v2386_v28  ;;  %s3031_s14 = scalar_lea.vmem %s2491_s28, 128 }
 0x4a2   : > { %v2302_v61 = vadd.f32 %v2292_v23, %v2246_v27  ;;  %v1528_v41 = vpop.permute.xlu0 %1527  ;;  %p3032_p5 = scmp.ne.s32.totalorder %s2491_s28, %s3031_s14 }
 0x4a3   : > { %v1536_v49 = vadd.f32 %v1528_v41, %v4736_v52  ;;  %2756 = vmatpush3.bf16.msra.mxu0 %v2755_v42 }
 0x4a4   : > { %2347 = vrot.lane.b32.xlu1 %v2302_v61, %s3179_s13  ;;  %2345 = vrot.lane.b32.xlu0 %v2301_v16, %s3179_s13  ;;  %p3033_p9 = pnand %p3032_p5, %p5052_p6 }
 0x4a5   : > { %v2296_v50 = vpop.permute.xlu1 %2295  ;;  %2757 = vmatprep.subr.bf16.mxu0 %v3187_v35 }
 0x4a6   : > { %v2304_v47 = vadd.f32 %v2296_v50, %v2248_v58  ;;  %v1580_v20 = vpop.permute.xlu0 %1579  ;;  %p3034_p10 = pneg %p3033_p9 }
 0x4a7   : > { %v1590_v48 = vadd.f32 %v1580_v20, %v1534_v30  ;;  %2759 = vmatpush3.bf16.msra.mxu0 %v2758_v15 }
 0x4a8   : > { %2351 = vrot.lane.b32.xlu1 %v2304_v47, %s3179_s13  ;;  %2349 = vrot.lane.b32.xlu0 %v2303_v14, %s3179_s13  ;;  %s3035_s13 = sshll.u32 %s3193_s12, 4  ;;  %s3036_s13 = int_to_ptr.vmem [resolvable:$false] %s3035_s13 }
 0x4a9   : > { %v1526_v6 = vpop.permute.xlu1 %1525  ;;  %2760 = vmatprep.subr.bf16.mxu0 %v3187_v35  ;;  %s3037_s15 = scalar_lea.vmem %s3036_s13, 256  ;;  %p3038_p11 = scmp.lt.s32.totalorder %s2491_s28, %s3036_s13 }
 0x4aa   : > { %v1584_v18 = vpop.permute.xlu0 %1583  ;;  %v1535_v33 = vadd.f32 %v1526_v6, %v4704_v54  ;;  %p3039_p7 = scmp.lt.s32.totalorder %s3037_s15, %s3031_s14 }
 0x4ab   : > { %v1592_v31 = vadd.f32 %v1584_v18, %v1536_v49  ;;  %2762 = vmatpush3.bf16.msra.mxu0 %v2761_v43 }
 0x4ac   : > { %2763 = vmatprep.subr.bf16.mxu0 %v3187_v35  ;;  %p3040_p8 = por %p3039_p7, %p3038_p11 }
 0x4ad   : > { %v1578_v8 = vpop.permute.xlu1 %1577 }
 0x4ae   : > { %v1589_v52 = vadd.f32 %v1578_v8, %v1533_v44  ;;  %v1636_v63 = vpop.permute.xlu0 %1635  ;;  %p3041_p12 = pnand %p3040_p8, %p3034_p10 }
 0x4af   : > { %v1646_v25 = vadd.f32 %v1636_v63, %v1590_v48  ;;  %2765 = vmatpush3.bf16.msra.mxu0 %v2764_v60 }
 0x4b0   : > { %2766 = vmatprep.subr.bf16.mxu0 %v3187_v35 }
 0x4b1   : > { %v1582_v3 = vpop.permute.xlu1 %1581 }
 0x4b2   : > { %v1591_v46 = vadd.f32 %v1582_v3, %v1535_v33  ;;  %v1640_v53 = vpop.permute.xlu0 %1639 }
 0x4b3   : > { %v1648_v22 = vadd.f32 %v1640_v53, %v1592_v31 }
 0x4b5   : > { %v1634_v11 = vpop.permute.xlu1 %1633 }
 0x4b6   : > { %v1645_v55 = vadd.f32 %v1634_v11, %v1589_v52  ;;  %v1692_v56 = vpop.permute.xlu0 %1691 }
 0x4b7   : > { %v1702_v26 = vadd.f32 %v1692_v56, %v1646_v25  ;;  %v2395_v56 = vld [vmem:[%s4959_s3 + $0x58] sm:$0xff] }
 0x4b9   : > { %v1638_v45 = vpop.permute.xlu1 %1637 }
 0x4ba   : > { %v1647_v0 = vadd.f32 %v1638_v45, %v1591_v46  ;;  %v1696_v17 = vpop.permute.xlu0 %1695 }
 0x4bb   : > { %v1704_v57 = vadd.f32 %v1696_v17, %v1648_v22 }
 0x4bd   : > { %v1690_v54 = vpop.permute.xlu1 %1689 }
 0x4be   : > { %v1701_v7 = vadd.f32 %v1690_v54, %v1645_v55  ;;  %v1748_v21 = vpop.permute.xlu0 %1747  ;;  %v2394_v55 = vld [vmem:[%s4959_s3 + $0x50] sm:$0xff] }
 0x4bf   : > { %v1758_v12 = vadd.f32 %v1748_v21, %v1702_v26 }
 0x4c1   : > { %v1694_v9 = vpop.permute.xlu1 %1693 }
 0x4c2   : > { %v1703_v10 = vadd.f32 %v1694_v9, %v1647_v0  ;;  %v1752_v39 = vpop.permute.xlu0 %1751  ;;  %v2767_v0 = vpack.c.bf16 %v2395_v56, %v2394_v55  ;;  %v2396_v9 = vld [vmem:[%s4959_s3 + $0x60] sm:$0xff] }
 0x4c3   : > { %v1760_v2 = vadd.f32 %v1752_v39, %v1704_v57 }
 0x4c4   : > { %2768 = vmatpush3.bf16.msra.mxu0 %v2767_v0 }
 0x4c5   : > { %v1746_v32 = vpop.permute.xlu1 %1745  ;;  %2769 = vmatprep.subr.bf16.mxu0 %v3187_v35 }
 0x4c6   : > { %v1804_v51 = vpop.permute.xlu0 %1803  ;;  %v1757_v36 = vadd.f32 %v1746_v32, %v1701_v7 }
 0x4c7   : > { %v1814_v27 = vadd.f32 %v1804_v51, %v1758_v12 }
 0x4c9   : > { %v1750_v29 = vpop.permute.xlu1 %1749 }
 0x4ca   : > { %v1808_v23 = vpop.permute.xlu0 %1807  ;;  %v1759_v63 = vadd.f32 %v1750_v29, %v1703_v10  ;;  %v2397_v10 = vld [vmem:[%s4959_s3 + $0x68] sm:$0xff] }
 0x4cb   : > { %v1816_v4 = vadd.f32 %v1808_v23, %v1760_v2  ;;  %v2770_v32 = vpack.c.bf16 %v2397_v10, %v2396_v9 }
 0x4cd   : > { %v1802_v34 = vpop.permute.xlu1 %1801  ;;  %2771 = vmatpush3.bf16.msra.mxu0 %v2770_v32 }
 0x4ce   : > { %v1860_v16 = vpop.permute.xlu0 %1859  ;;  %v1813_v44 = vadd.f32 %v1802_v34, %v1757_v36  ;;  %2772 = vmatprep.subr.bf16.mxu0 %v3187_v35  ;;  %v5049_v36 = vld [vmem:[#allocation14_spill] sm:$0xff] }
 0x4cf   : > { %v1870_v17 = vadd.f32 %v1860_v16, %v1814_v27  ;;  %vm2339_vm13 = vcmp.eq.s32.totalorder %v5049_v36, 1 }
 0x4d1   : > { %v1806_v61 = vpop.permute.xlu1 %1805 }
 0x4d2   : > { %v1864_v41 = vpop.permute.xlu0 %1863  ;;  %v1815_v25 = vadd.f32 %v1806_v61, %v1759_v63 }
 0x4d3   : > { %v1872_v51 = vadd.f32 %v1864_v41, %v1816_v4 }
 0x4d5   : > { %v1858_v13 = vpop.permute.xlu1 %1857 }
 0x4d6   : > { %v1916_v24 = vpop.permute.xlu0 %1915  ;;  %v1869_v43 = vadd.f32 %v1858_v13, %v1813_v44  ;;  %v2398_v13 = vld [vmem:[%s4959_s3 + $0x70] sm:$0xff] }
 0x4d7   : > { %v1926_v21 = vadd.f32 %v1916_v24, %v1870_v17  ;;  %v2399_v24 = vld [vmem:[%s4959_s3 + $0x78] sm:$0xff] }
 0x4d9   : > { %v1862_v28 = vpop.permute.xlu1 %1861 }
 0x4da   : > { %v1920_v37 = vpop.permute.xlu0 %1919  ;;  %v1871_v3 = vadd.f32 %v1862_v28, %v1815_v25 }
 0x4db   : > { %v1928_v34 = vadd.f32 %v1920_v37, %v1872_v51  ;;  %v5048_v37 = vld [vmem:[#allocation13_spill] sm:$0xff] }
 0x4dc   : > { %vm2337_vm10 = vcmp.eq.s32.totalorder %v5048_v37, 1 }
 0x4dd   : > { %v1914_v58 = vpop.permute.xlu1 %1913 }
 0x4de   : > { %v1972_v38 = vpop.permute.xlu0 %1971  ;;  %v1925_v5 = vadd.f32 %v1914_v58, %v1869_v43  ;;  %v2773_v58 = vpack.c.bf16 %v2399_v24, %v2398_v13  ;;  %v5050_v43 = vld [vmem:[#allocation15_spill] sm:$0xff] }
 0x4df   : > { %v1982_v27 = vadd.f32 %v1972_v38, %v1926_v21  ;;  %vm2338_vm15 = vcmp.eq.s32.totalorder %v5050_v43, 1 }
 0x4e0   : > { %2774 = vmatpush3.bf16.msra.mxu0 %v2773_v58 }
 0x4e1   : > { %v1918_v62 = vpop.permute.xlu1 %1917 }
 0x4e2   : > { %v1976_v30 = vpop.permute.xlu0 %1975  ;;  %v1927_v53 = vadd.f32 %v1918_v62, %v1871_v3 }
 0x4e3   : > { %v1984_v4 = vadd.f32 %v1976_v30, %v1928_v34 }
 0x4e5   : > { %v1970_v50 = vpop.permute.xlu1 %1969 }
 0x4e6   : > { %v2028_v14 = vpop.permute.xlu0 %2027  ;;  %v1981_v46 = vadd.f32 %v1970_v50, %v1925_v5 }
 0x4e7   : > { %v2038_v16 = vadd.f32 %v2028_v14, %v1982_v27 }
 0x4e9   : > { %v1974_v47 = vpop.permute.xlu1 %1973 }
 0x4ea   : > { %v4839_v20 = vpop.permute.xlu0 %2031  ;;  %v1983_v26 = vadd.f32 %v1974_v47, %v1927_v53 }
 0x4eb   : > { %v2040_v35 = vadd.f32 %v4839_v20, %v1984_v4 }
 0x4ed   : > { %v2026_v42 = vpop.permute.xlu1 %2025 }
 0x4ee   : > { %v2084_v48 = vpop.permute.xlu0 %2083  ;;  %v2037_v60 = vadd.f32 %v2026_v42, %v1981_v46  ;;  %v3189_v42 = vmov 0.0  }
 0x4ef   : > { %v2094_v41 = vadd.f32 %v2084_v48, %v2038_v16  ;;  %2748 = vmatprep.mubr.msk.f32.mxu0 %vm3188_vm11, %v3189_v42 }
 0x4f1   : > { %v2030_v1 = vpop.permute.xlu1 %2029 }
 0x4f2   : > { %v4841_v40 = vpop.permute.xlu0 %2087  ;;  %v2039_v57 = vadd.f32 %v2030_v1, %v1983_v26 }
 0x4f5   : > { %v2082_v49 = vpop.permute.xlu1 %2081 }
 0x4f6   : > { %v2140_v6 = vpop.permute.xlu0 %2139  ;;  %v2093_v45 = vadd.f32 %v2082_v49, %v2037_v60 }
 0x4f7   : > { %v2150_v14 = vadd.f32 %v2140_v6, %v2094_v41 }
 0x4f9   : > { %v2086_v18 = vpop.permute.xlu1 %2085 }
 0x4fa   : > { %v4843_v15 = vpop.permute.xlu0 %2143  ;;  %v2095_v39 = vadd.f32 %v2086_v18, %v2039_v57  ;;  %v2096_v18 = vadd.f32 %v4841_v40, %v2040_v35 }
 0x4fc   : > { %v2152_v44 = vadd.f32 %v4843_v15, %v2096_v18 }
 0x4fd   : > { %v2138_v31 = vpop.permute.xlu1 %2137 }
 0x4fe   : > { %v4845_v19 = vpop.permute.xlu0 %2195  ;;  %v2149_v54 = vadd.f32 %v2138_v31, %v2093_v45 }
 0x4ff   : > { %v2206_v30 = vadd.f32 %v4845_v19, %v2150_v14 }
 0x501   : > { %v2142_v8 = vpop.permute.xlu1 %2141 }
 0x502   : > { %v2198_v52 = vpop.permute.xlu0 %2197  ;;  %v2151_v29 = vadd.f32 %v2142_v8, %v2095_v39 }
 0x504   : > { %v2207_v38 = vadd.f32 %v2198_v52, %v2151_v29 }
 0x505   : > { %v2194_v59 = vpop.permute.xlu1 %2193 }
 0x506   : > { %v2250_v33 = vpop.permute.xlu0 %2249  ;;  %v2205_v2 = vadd.f32 %v2194_v59, %v2149_v54  ;;  %v5051_v59 = vld [vmem:[#allocation16_spill] sm:$0xff] }
 0x507   : > { %vm2340_vm1 = vcmp.eq.s32.totalorder %v5051_v59, 1 }
 0x508   : > { %v2261_v28 = vadd.f32 %v2250_v33, %v2205_v2 }
 0x509   : > { %v2200_v22 = vpop.permute.xlu1 %2199 }
 0x50a   : > { %v2254_v11 = vpop.permute.xlu0 %2253  ;;  %v2208_v52 = vadd.f32 %v2200_v22, %v2152_v44 }
 0x50b   : > { %v2263_v1 = vadd.f32 %v2254_v11, %v2207_v38 }
 0x50d   : > { %v2252_v7 = vpop.permute.xlu1 %2251 }
 0x50e   : > { %v2306_v12 = vpop.permute.xlu0 %2305  ;;  %v2262_v20 = vadd.f32 %v2252_v7, %v2206_v30 }
 0x50f   : > { %v2317_v62 = vadd.f32 %v2306_v12, %v2261_v28 }
 0x511   : > { %v2256_v23 = vpop.permute.xlu1 %2255 }
 0x512   : > { %v2310_v61 = vpop.permute.xlu0 %2309  ;;  %v2264_v19 = vadd.f32 %v2256_v23, %v2208_v52 }
 0x513   : > { %v2319_v48 = vadd.f32 %v2310_v61, %v2263_v1 }
 0x515   : > { %v2308_v50 = vpop.permute.xlu1 %2307 }
 0x516   : > { %v2346_v47 = vpop.permute.xlu0 %2345  ;;  %v2318_v63 = vadd.f32 %v2308_v50, %v2262_v20 }
 0x517   : > { %v2357_v49 = vsel %vm2337_vm10, %v2317_v62, %v2346_v47 }
 0x518   : > { %2362 = vrot.lane.b32.xlu0 %v2357_v49, %s3182_s25  ;;  %s3191_s25 = smov 21  }
 0x519   : > { %v2312_v31 = vpop.permute.xlu1 %2311 }
 0x51a   : > { %v2350_v6 = vpop.permute.xlu0 %2349  ;;  %v2320_v5 = vadd.f32 %v2312_v31, %v2264_v19 }
 0x51b   : > { %v2359_v8 = vsel %vm2339_vm13, %v2319_v48, %v2350_v6 }
 0x51c   : > { %2370 = vrot.lane.b32.xlu0 %v2359_v8, %s3190_s9 }
 0x51d   : > { %v2348_v40 = vpop.permute.xlu1 %2347 }
 0x51e   : > { %v2358_v25 = vsel %vm2338_vm15, %v2318_v63, %v2348_v40 }
 0x51f   : > { %2366 = vrot.lane.b32.xlu1 %v2358_v25, %s3191_s25 }
 0x521   : > { %v2352_v15 = vpop.permute.xlu1 %2351 }
 0x522   : > { %v2360_v33 = vsel %vm2340_vm1, %v2320_v5, %v2352_v15 }
 0x523   : > { %2374 = vrot.lane.b32.xlu1 %v2360_v33, %s3192_s10 }
 0x58a   : > { %v2363_v3 = vpop.permute.xlu0 %2362 }
 0x58e   : > { %v2371_v60 = vpop.permute.xlu0 %2370 }
 0x591   : > { %v2367_v46 = vpop.permute.xlu1 %2366 }
 0x592   : > { %v2378_v53 = vsel %vm2377_vm2, %v2363_v3, %v2367_v46 }
 0x593   : > { %v2380_v11 = vsel %vm2379_vm12, %v2378_v53, %v2371_v60 }
 0x595   : > { %v2375_v22 = vpop.permute.xlu1 %2374 }
 0x596   : > { %v2382_v55 = vsel %vm2381_vm4, %v2380_v11, %v2375_v22 }
 0x597   : > { %2383 = vst [vmem:[%s377_s16] sm:$0xff] %v2382_v55  ;;  %2749 = vmatmul.mubr.f32.vlgmr.msra.gmra.mrb[0].mxu0 %v2382_v55 }
 0x598   : > { %3044 = shalt.err (!%p3041_p12)
}
 0x599   : > { %s3045_s9 = scalar_lea.hbm %s4885_s7, 128  ;;  %s3049_s16 = scalar_lea.hbm %s4960_s4, 256 }
 0x59a   : > { %p3046_p13 = scmp.ne.s32.totalorder %s4885_s7, %s3045_s9  ;;  %p3050_p0 = scmp.lt.u32.totalorder %s4885_s7, %s4960_s4 }
 0x59b   : > { %p3051_p3 = scmp.lt.u32.totalorder %s3049_s16, %s3045_s9  ;;  %p3053_p5 = scmp.lt.u32.totalorder %s3045_s9, %s4885_s7 }
 0x59c   : > { %p3047_p1 = pnand %p3046_p13, %p5052_p6 }
 0x59d   : > { %p3052_p4 = por %p3051_p3, %p3050_p0 }
 0x59e   : > { %p3048_p2 = pneg %p3047_p1 }
 0x59f   : > { %p3054_p9 = por %p3053_p5, %p3052_p4 }
 0x5a1   : > { %p3055_p10 = pnand %p3054_p9, %p3048_p2 }
 0x5a3   : > { %3058 = shalt.err (!%p3055_p10)
}
 0x5a4   : > { %2809 = dma.vmem_to_hbm [thread:$0]  (%p5052_p6), %s2491_s28, 128, %s4885_s7, %s2472_s29  }
 0x5a5   : > { %s384_s14 = scalar_lea.vmem [#allocation8], %s2654_s11  ;;  %s4914_s9 = scalar_lea.hbm %s4961_s5, %s2695_s17 }
 0x5a6   : > { %s2503_s12 = sshll.u32 %s384_s14, 4  ;;  %s2477_s25 = scalar_lea.sflag [#allocation9], %s3334_s23  ;;  %s4907_s12 = int_to_ptr.vmem [resolvable:$true] %s2503_s12 }
 0x5a7   : > { %s3059_s10 = scalar_lea.vmem %s4907_s12, 128  ;;  %s3194_s11 = smov [#allocation8]  }
 0x5a8   : > { %p3060_p11 = scmp.ne.s32.totalorder %s4907_s12, %s3059_s10  ;;  %s3063_s7 = sshll.u32 %s3194_s11, 4  ;;  %s3064_s7 = int_to_ptr.vmem [resolvable:$false] %s3063_s7 }
 0x5a9   : > { %s3065_s22 = scalar_lea.vmem %s3064_s7, 256  ;;  %p3066_p12 = scmp.lt.s32.totalorder %s4907_s12, %s3064_s7 }
 0x5aa   : > { %p3061_p7 = pnand %p3060_p11, %p5052_p6  ;;  %p3067_p13 = scmp.lt.s32.totalorder %s3065_s22, %s3059_s10 }
 0x5ac   : > { %p3062_p8 = pneg %p3061_p7  ;;  %p3068_p1 = por %p3067_p13, %p3066_p12 }
 0x5ae   : > { %p3069_p2 = pnand %p3068_p1, %p3062_p8 }
 0x66a   : > { %v2466_v56 = vpop.f32.mrb[0].mxu0 }
 0x66b   : > { %2470 = vst [vmem:[%s384_s14] sm:$0xff] %v2466_v56  ;;  %v2750_v26 = vpop.f32.mrb[1].mxu0 }
 0x66c   : > { %3072 = shalt.err (!%p3069_p2)
}
 0x66d   : > { %s3073_s23 = scalar_lea.hbm %s4914_s9, 128  ;;  %s3077_s29 = scalar_lea.hbm %s4961_s5, 256 }
 0x66e   : > { %p3074_p0 = scmp.ne.s32.totalorder %s4914_s9, %s3073_s23  ;;  %p3078_p5 = scmp.lt.u32.totalorder %s4914_s9, %s4961_s5 }
 0x66f   : > { %p3079_p9 = scmp.lt.u32.totalorder %s3077_s29, %s3073_s23  ;;  %p3081_p11 = scmp.lt.u32.totalorder %s3073_s23, %s4914_s9 }
 0x670   : > { %p3075_p3 = pnand %p3074_p0, %p5052_p6 }
 0x671   : > { %p3080_p10 = por %p3079_p9, %p3078_p5 }
 0x672   : > { %p3076_p4 = pneg %p3075_p3 }
 0x673   : > { %p3082_p7 = por %p3081_p11, %p3080_p10 }
 0x675   : > { %p3083_p8 = pnand %p3082_p7, %p3076_p4 }
 0x677   : > { %3086 = shalt.err (!%p3083_p8)
}
 0x678   : > { %2810 = dma.vmem_to_hbm [thread:$0]  (%p5052_p6), %s4907_s12, 128, %s4914_s9, %s2477_s25  }
 0x679 PF: > { %s2515_s8 = sand.u32 1, %s3117_s18   ;;  %p5053_p12 = scmp.ne.s32.totalorder %s4986_s6, 0 }
 0x67a   : > { %p5054_p13 = scmp.ge.s32.totalorder %s3129_s21, 2  ;;  %s2516_s14 = scalar_lea.sflag [#allocation6], %s2515_s8 }
 0x67c   : > { %p2814_p1 = pnand %p5054_p13, %p5053_p12 }
 0x67e   : > { %3108 = dma.done.wait (!%p2814_p1), %s2516_s14, 128  }
 0x67f   : > { %3110 = vsyncadd (!%p2814_p1), %s2516_s14, 4294967168  ;;  %s2525_s13 = scalar_lea.sflag [#allocation9], %s2515_s8 }
 0x680   : > { %3112 = dma.done.wait (!%p2814_p1), %s2525_s13, 128  }
 0x681   : > { %3114 = vsyncadd (!%p2814_p1), %s2525_s13, 4294967168  ;;  %p22_p6 = scmp.ge.s32.totalorder %s3250_s24, 4   ;;  %s5055_s18 = smov %s3121_s19 }
 0x682   : > { %s5056_s19 = smov %s3125_s20  ;;  %s5057_s20 = smov %s3262_s27 }
 0x683   : > { %s5058_s21 = smov %s3250_s24  ;;  %24 = sbr.rel (!%p22_p6) target bundleno = 7 (0x7), region = 190 }
 0x68a   :  { %2530 = vsyncpa [#allocation5], 1 }
 0x68b   :  { %2532 = vsyncpa [#allocation5 + $0x1], 1 }
 0x68c   :  { %2533 = vsyncpa [#allocation6], 1 }
 0x68d   :  { %2535 = vsyncpa [#allocation6 + $0x1], 1 }
 0x68e   :  { %2536 = vsyncpa [#allocation9], 1 }
 0x68f   :  { %2538 = vsyncpa [#allocation9 + $0x1], 1 }

</bundles_post_ra>
